<compile_context>
chip_gen: v6e
topology: v6e:2x2x1
jax: 0.10.0
libtpu: 0.0.40
codegen_flags: <defaults>
</compile_context>

<pallas_src>
import functools

import jax
import jax.numpy as jnp
from jax import lax
from jax.experimental import pallas as pl
from jax.experimental.pallas import tpu as pltpu


# ----------------------------------------------------------------------------
# Pallas kernel: G graphs per grid step
# ----------------------------------------------------------------------------
def _edgeconv_kernel(node_dim,
                     h_ref,     # (G, N, Fp)  bf16  node features, zero-padded lanes
                     ids_ref,   # (G, 2E, 1)  i32   concat([src_ids, dst_ids]) per graph
                     w_ref,     # (Fp, Fp)    bf16  augmented alpha weight (row in_feat = bias)
                     o_ref):    # (G, N, Fp)  f32   per-node aggregated output
    f32, bf16 = jnp.float32, jnp.bfloat16
    G, N, Fp = h_ref.shape
    two_e = ids_ref.shape[1]
    E = two_e // 2
    in_feat = node_dim + 4
    inv_e = 1.0 / E
    inv_sqrt_e = float(E) ** -0.5

    # Constants hoisted out of the per-graph loop (broadcast_in_dim is not CSE'd).
    node_iota = lax.broadcasted_iota(jnp.int32, (two_e, N), 1)      # column = node id
    lane = lax.broadcasted_iota(jnp.int32, (1, Fp), 1)
    coord_mask = (lane < 3).astype(f32)                             # x, y, t lanes
    dist_mask = (lane == node_dim + 3).astype(f32)                  # dist lane
    bias_mask = (lane == in_feat).astype(f32)                       # augmented bias lane
    w = w_ref[...]                                                  # resident (Fp, Fp) bf16

    for g in range(G):  # static unroll over the graphs of this block
        h = h_ref[g]                                                # (N, Fp) bf16
        ids = ids_ref[g]                                            # (2E, 1) i32

        # --- single fused gather: one one-hot, one MXU matmul for src AND dst ---
        onehot = (node_iota == ids).astype(bf16)                    # (2E, N)
        gathered = jnp.dot(onehot, h, preferred_element_type=f32)   # (2E, Fp) exact gather
        h_src, h_dst = gathered[:E], gathered[E:]                   # (E, Fp) each
        onehot_dst = onehot[E:]                                     # (E, N), reused for scatter

        # --- geometric edge features (f32, lane-dense masked math) --------------
        mean_dst = jnp.sum(h_dst, axis=0, keepdims=True) * inv_e    # (1, Fp)
        delta = h_dst - h_src                                       # Delta_XYT (lanes < node_dim)
        dist = jnp.sqrt(jnp.sum(jnp.square(delta) * coord_mask,
                                axis=-1, keepdims=True))            # (E, 1), XLU reduce
        dev = jnp.abs(h_src - mean_dst) * inv_sqrt_e * coord_mask   # std_xyt at lanes 0..2
        std_sh = pltpu.roll(dev, shift=node_dim, axis=1)            # -> lanes nd..nd+2 (XLU)

        # concat([delta, std_xyt, dist, 1]) assembled lane-dense; the trailing 1 is
        # the augmented bias lane so alpha's bias becomes deg(v) * b after the sum.
        feat = delta + std_sh + dist * dist_mask + bias_mask        # (E, Fp) f32

        # --- fn.sum('e','x'): scatter-add via transposed-lhs one-hot matmul -----
        agg = lax.dot_general(onehot_dst, feat.astype(bf16),
                              (((0,), (0,)), ((), ())),
                              preferred_element_type=f32)           # (N, Fp) f32

        # --- alpha Linear applied AFTER aggregation (N rows instead of E rows) --
        o_ref[g] = jnp.dot(agg.astype(bf16), w,
                           preferred_element_type=f32)              # lane-dense f32 store


# ----------------------------------------------------------------------------
# Wrapper: lane-dense padding, augmented weight, batch grid
# ----------------------------------------------------------------------------
@functools.partial(jax.jit, static_argnames=("graphs_per_step",))
def e_edgeconv_pallas(h, src_idx, dst_idx, alpha_w, alpha_b, graphs_per_step=2):
    """Batched E_EdgeConv forward (batch_norm=False).

    h:        (B, N, node_dim) float32 node features; columns 0..2 are (x, y, t).
    src_idx:  (B, E) int32 edge source node ids.
    dst_idx:  (B, E) int32 edge destination node ids.
    alpha_w:  (in_feat, in_feat) float32, PyTorch nn.Linear weight (out, in).
    alpha_b:  (in_feat,) float32 bias.
    returns:  (B, N, in_feat) float32 = g.dstdata['x'] per graph.
    """
    B, N, node_dim = h.shape
    E = src_idx.shape[1]
    in_feat = node_dim + 4
    assert alpha_w.shape == (in_feat, in_feat) and alpha_b.shape == (in_feat,)
    G = graphs_per_step if (B % graphs_per_step == 0) else 1
    Fp = max(128, ((in_feat + 1 + 127) // 128) * 128)   # +1 lane for the folded bias

    # zero-pad to lane-dense width; bf16 for everything feeding the MXU
    h_pad = jnp.zeros((B, N, Fp), jnp.float32).at[:, :, :node_dim].set(
        h.astype(jnp.float32)).astype(jnp.bfloat16)
    # augmented weight: feat_aug @ w_pad == feat @ W.T + deg * b
    w_pad = (jnp.zeros((Fp, Fp), jnp.float32)
             .at[:in_feat, :in_feat].set(alpha_w.T)
             .at[in_feat, :in_feat].set(alpha_b)
             .astype(jnp.bfloat16))
    ids = jnp.concatenate([src_idx, dst_idx], axis=1).astype(jnp.int32)[:, :, None]

    kernel = functools.partial(_edgeconv_kernel, node_dim)

    out_pad = pl.pallas_call(
        kernel,
        out_shape=jax.ShapeDtypeStruct((B, N, Fp), jnp.float32),
        grid=(B // G,),
        in_specs=[
            pl.BlockSpec((G, N, Fp), lambda b: (b, 0, 0)),      # G graphs' node features
            pl.BlockSpec((G, 2 * E, 1), lambda b: (b, 0, 0)),   # G graphs' src+dst ids
            pl.BlockSpec((Fp, Fp), lambda b: (0, 0)),           # resident augmented weight
        ],
        out_specs=pl.BlockSpec((G, N, Fp), lambda b: (b, 0, 0)),
        compiler_params=pltpu.CompilerParams(
            dimension_semantics=("parallel",),   # independent graph blocks -> split across TCs
        ),
    )(h_pad, ids, w_pad)

    return out_pad[:, :, :in_feat]


# ----------------------------------------------------------------------------
# Pure-JAX reference (single graph) mirroring the kernel's quantization points
# ----------------------------------------------------------------------------
def e_edgeconv_ref(h, src, dst, alpha_w, alpha_b):
    N, node_dim = h.shape
    E = src.shape[0]
    in_feat = node_dim + 4
    hq = h.astype(jnp.bfloat16).astype(jnp.float32)       # bf16-quantized node features
    hs, hd = hq[src], hq[dst]
    mean = jnp.sum(hd, axis=0) / E
    delta = hd - hs
    dist = jnp.sqrt(jnp.sum(jnp.square(hs[:, :3] - hd[:, :3]), axis=1, keepdims=True))
    std = jnp.sqrt(jnp.square(hs[:, :3] - mean[None, :3]) / E)
    ones = jnp.ones((E, 1), jnp.float32)                  # augmented bias lane
    feat = jnp.concatenate([delta, std, dist, ones], axis=1)
    featq = feat.astype(jnp.bfloat16).astype(jnp.float32) # bf16 rounding before f32 sum
    agg = jnp.zeros((N, in_feat + 1), jnp.float32).at[dst].add(featq)
    w_aug = jnp.concatenate([alpha_w.T, alpha_b[None, :]], axis=0)
    return jnp.dot(agg.astype(jnp.bfloat16), w_aug.astype(jnp.bfloat16),
                   preferred_element_type=jnp.float32)


if __name__ == "__main__":
    B, N, E, node_dim = 4, 64, 256, 3          # node features = (x, y, t)
    in_feat = node_dim + 4                     # E_EdgeConv(in_feat=7, out_feat=7)

    key = jax.random.PRNGKey(0)
    k_h, k_s, k_d, k_w, k_b = jax.random.split(key, 5)
    h = jax.random.normal(k_h, (B, N, node_dim), jnp.float32)
    src_idx = jax.random.randint(k_s, (B, E), 0, N, jnp.int32)
    dst_idx = jax.random.randint(k_d, (B, E), 0, N, jnp.int32)
    alpha_w = jax.random.normal(k_w, (in_feat, in_feat), jnp.float32) * 0.1
    alpha_b = jax.random.normal(k_b, (in_feat,), jnp.float32) * 0.01

    out = e_edgeconv_pallas(h, src_idx, dst_idx, alpha_w, alpha_b, graphs_per_step=2)
    out = jax.block_until_ready(out)

    assert out.shape == (B, N, in_feat)
    assert bool(jnp.all(jnp.isfinite(out)))

    ref = jnp.stack([e_edgeconv_ref(h[b], src_idx[b], dst_idx[b], alpha_w, alpha_b)
                     for b in range(B)])
    max_err = float(jnp.max(jnp.abs(out - ref)))
    assert bool(jnp.allclose(out, ref, rtol=1e-2, atol=1e-2)), max_err

    print("KERNEL_OK")
</pallas_src>

<mosaic_0001>
module attributes {stable_mosaic.version = 11 : i64} {
  func.func @_edgeconv_kernel(%arg0: i32, %arg1: memref<2x64x128xbf16, #tpu.memory_space<vmem>>, %arg2: memref<2x512x1xi32, #tpu.memory_space<vmem>>, %arg3: memref<128x128xbf16, #tpu.memory_space<vmem>>, %arg4: memref<2x64x128xf32, #tpu.memory_space<vmem>>) attributes {dimension_semantics = [#tpu.dimension_semantics<parallel>], iteration_bounds = array<i64: 2>, scalar_prefetch = 0 : i64, scratch_operands = 0 : i64, tpu.core_type = #tpu.core_type<tc>, window_params = [{transform_indices = @transform_0, window_bounds = array<i64: 2, 64, 128>}, {transform_indices = @transform_1, window_bounds = array<i64: 2, 512, 1>}, {pipeline_mode = #tpu.pipeline_mode<synchronous>, transform_indices = @transform_2, window_bounds = array<i64: 128, 128>}, {transform_indices = @transform_3, window_bounds = array<i64: 2, 64, 128>}]} {
    %0 = tpu.iota {dimensions = array<i32: 1>} : vector<512x64xi32>
    %1 = tpu.iota {dimensions = array<i32: 1>} : vector<1x128xi32>
    %c3_i32 = arith.constant 3 : i32
    %2 = vector.broadcast %c3_i32 : i32 to vector<1x128xi32>
    %3 = arith.cmpi slt, %1, %2 : vector<1x128xi32>
    %4 = arith.extui %3 : vector<1x128xi1> to vector<1x128xi32>
    %5 = arith.sitofp %4 : vector<1x128xi32> to vector<1x128xf32>
    %c6_i32 = arith.constant 6 : i32
    %6 = vector.broadcast %c6_i32 : i32 to vector<1x128xi32>
    %7 = arith.cmpi eq, %1, %6 : vector<1x128xi32>
    %8 = arith.extui %7 : vector<1x128xi1> to vector<1x128xi32>
    %9 = arith.sitofp %8 : vector<1x128xi32> to vector<1x128xf32>
    %c7_i32 = arith.constant 7 : i32
    %10 = vector.broadcast %c7_i32 : i32 to vector<1x128xi32>
    %11 = arith.cmpi eq, %1, %10 : vector<1x128xi32>
    %12 = arith.extui %11 : vector<1x128xi1> to vector<1x128xi32>
    %13 = arith.sitofp %12 : vector<1x128xi32> to vector<1x128xf32>
    %c0 = arith.constant 0 : index
    %c0_0 = arith.constant 0 : index
    %14 = vector.load %arg3[%c0, %c0_0] : memref<128x128xbf16, #tpu.memory_space<vmem>>, vector<128x128xbf16>
    %c0_1 = arith.constant 0 : index
    %c0_2 = arith.constant 0 : index
    %c0_3 = arith.constant 0 : index
    %15 = vector.load %arg1[%c0_1, %c0_2, %c0_3] : memref<2x64x128xbf16, #tpu.memory_space<vmem>>, vector<1x64x128xbf16>
    %16 = vector.shape_cast %15 : vector<1x64x128xbf16> to vector<64x128xbf16>
    %c0_4 = arith.constant 0 : index
    %c0_5 = arith.constant 0 : index
    %c0_6 = arith.constant 0 : index
    %17 = vector.load %arg2[%c0_4, %c0_5, %c0_6] : memref<2x512x1xi32, #tpu.memory_space<vmem>>, vector<1x512x1xi32>
    %18 = vector.shape_cast %17 : vector<1x512x1xi32> to vector<512x1xi32>
    %19 = vector.broadcast %18 : vector<512x1xi32> to vector<512x64xi32>
    %20 = arith.cmpi eq, %0, %19 : vector<512x64xi32>
    %21 = arith.extui %20 : vector<512x64xi1> to vector<512x64xi32>
    %22 = arith.sitofp %21 : vector<512x64xi32> to vector<512x64xf32>
    %23 = arith.truncf %22 : vector<512x64xf32> to vector<512x64xbf16>
    %cst = arith.constant dense<0.000000e+00> : vector<512x128xf32>
    %24 = tpu.matmul %23, %16, %cst {dimension_numbers = #tpu.dot_dimension_numbers<[1], [0], [0], [1], [0, 0, 1, 1], [], []>} : vector<512x64xbf16>, vector<64x128xbf16>, vector<512x128xf32> -> vector<512x128xf32>
    %25 = vector.extract_strided_slice %24 {offsets = [0, 0], sizes = [256, 128], strides = [1, 1]} : vector<512x128xf32> to vector<256x128xf32>
    %26 = vector.extract_strided_slice %24 {offsets = [256, 0], sizes = [256, 128], strides = [1, 1]} : vector<512x128xf32> to vector<256x128xf32>
    %27 = vector.extract_strided_slice %23 {offsets = [256, 0], sizes = [256, 64], strides = [1, 1]} : vector<512x64xbf16> to vector<256x64xbf16>
    %cst_7 = arith.constant dense<0.000000e+00> : vector<128xf32>
    %28 = vector.multi_reduction <add>, %26, %cst_7 [0] : vector<256x128xf32> to vector<128xf32>
    %29 = vector.shape_cast %28 : vector<128xf32> to vector<1x128xf32>
    %cst_8 = arith.constant 3.906250e-03 : f32
    %30 = vector.broadcast %cst_8 : f32 to vector<1x128xf32>
    %31 = arith.mulf %29, %30 : vector<1x128xf32>
    %32 = arith.subf %26, %25 : vector<256x128xf32>
    %33 = arith.mulf %32, %32 : vector<256x128xf32>
    %34 = vector.broadcast %5 : vector<1x128xf32> to vector<256x128xf32>
    %35 = arith.mulf %33, %34 : vector<256x128xf32>
    %cst_9 = arith.constant dense<0.000000e+00> : vector<256xf32>
    %36 = vector.multi_reduction <add>, %35, %cst_9 [1] : vector<256x128xf32> to vector<256xf32>
    %37 = vector.shape_cast %36 : vector<256xf32> to vector<256x1xf32>
    %38 = math.sqrt %37 : vector<256x1xf32>
    %39 = vector.broadcast %31 : vector<1x128xf32> to vector<256x128xf32>
    %40 = arith.subf %25, %39 : vector<256x128xf32>
    %41 = math.absf %40 : vector<256x128xf32>
    %cst_10 = arith.constant 6.250000e-02 : f32
    %42 = vector.broadcast %cst_10 : f32 to vector<256x128xf32>
    %43 = arith.mulf %41, %42 : vector<256x128xf32>
    %44 = vector.broadcast %5 : vector<1x128xf32> to vector<256x128xf32>
    %45 = arith.mulf %43, %44 : vector<256x128xf32>
    %c3_i32_11 = arith.constant 3 : i32
    %46 = tpu.dynamic_rotate %45 by %c3_i32_11 dim 1 : vector<256x128xf32>, i32 -> vector<256x128xf32>
    %47 = arith.addf %32, %46 : vector<256x128xf32>
    %48 = vector.broadcast %38 : vector<256x1xf32> to vector<256x128xf32>
    %49 = vector.broadcast %9 : vector<1x128xf32> to vector<256x128xf32>
    %50 = arith.mulf %48, %49 : vector<256x128xf32>
    %51 = arith.addf %47, %50 : vector<256x128xf32>
    %52 = vector.broadcast %13 : vector<1x128xf32> to vector<256x128xf32>
    %53 = arith.addf %51, %52 : vector<256x128xf32>
    %54 = arith.truncf %53 : vector<256x128xf32> to vector<256x128xbf16>
    %cst_12 = arith.constant dense<0.000000e+00> : vector<64x128xf32>
    %55 = tpu.matmul %27, %54, %cst_12 {dimension_numbers = #tpu.dot_dimension_numbers<[0], [0], [1], [1], [0, 1, 1, 1], [], []>} : vector<256x64xbf16>, vector<256x128xbf16>, vector<64x128xf32> -> vector<64x128xf32>
    %56 = arith.truncf %55 : vector<64x128xf32> to vector<64x128xbf16>
    %cst_13 = arith.constant dense<0.000000e+00> : vector<64x128xf32>
    %57 = tpu.matmul %56, %14, %cst_13 {dimension_numbers = #tpu.dot_dimension_numbers<[1], [0], [0], [1], [0, 0, 1, 1], [], []>} : vector<64x128xbf16>, vector<128x128xbf16>, vector<64x128xf32> -> vector<64x128xf32>
    %c0_14 = arith.constant 0 : index
    %c0_15 = arith.constant 0 : index
    %c0_16 = arith.constant 0 : index
    %58 = vector.load %arg4[%c0_14, %c0_15, %c0_16] : memref<2x64x128xf32, #tpu.memory_space<vmem>>, vector<1x64x128xf32>
    %59 = vector.shape_cast %58 : vector<1x64x128xf32> to vector<64x128xf32>
    %60 = vector.shape_cast %57 : vector<64x128xf32> to vector<1x64x128xf32>
    tpu.vector_store %arg4[%c0_14, %c0_15, %c0_16], %60 {strides = array<i32>} : memref<2x64x128xf32, #tpu.memory_space<vmem>>, vector<1x64x128xf32>,
    %c1 = arith.constant 1 : index
    %c0_17 = arith.constant 0 : index
    %c0_18 = arith.constant 0 : index
    %61 = vector.load %arg1[%c1, %c0_17, %c0_18] : memref<2x64x128xbf16, #tpu.memory_space<vmem>>, vector<1x64x128xbf16>
    %62 = vector.shape_cast %61 : vector<1x64x128xbf16> to vector<64x128xbf16>
    %c1_19 = arith.constant 1 : index
    %c0_20 = arith.constant 0 : index
    %c0_21 = arith.constant 0 : index
    %63 = vector.load %arg2[%c1_19, %c0_20, %c0_21] : memref<2x512x1xi32, #tpu.memory_space<vmem>>, vector<1x512x1xi32>
    %64 = vector.shape_cast %63 : vector<1x512x1xi32> to vector<512x1xi32>
    %65 = vector.broadcast %64 : vector<512x1xi32> to vector<512x64xi32>
    %66 = arith.cmpi eq, %0, %65 : vector<512x64xi32>
    %67 = arith.extui %66 : vector<512x64xi1> to vector<512x64xi32>
    %68 = arith.sitofp %67 : vector<512x64xi32> to vector<512x64xf32>
    %69 = arith.truncf %68 : vector<512x64xf32> to vector<512x64xbf16>
    %cst_22 = arith.constant dense<0.000000e+00> : vector<512x128xf32>
    %70 = tpu.matmul %69, %62, %cst_22 {dimension_numbers = #tpu.dot_dimension_numbers<[1], [0], [0], [1], [0, 0, 1, 1], [], []>} : vector<512x64xbf16>, vector<64x128xbf16>, vector<512x128xf32> -> vector<512x128xf32>
    %71 = vector.extract_strided_slice %70 {offsets = [0, 0], sizes = [256, 128], strides = [1, 1]} : vector<512x128xf32> to vector<256x128xf32>
    %72 = vector.extract_strided_slice %70 {offsets = [256, 0], sizes = [256, 128], strides = [1, 1]} : vector<512x128xf32> to vector<256x128xf32>
    %73 = vector.extract_strided_slice %69 {offsets = [256, 0], sizes = [256, 64], strides = [1, 1]} : vector<512x64xbf16> to vector<256x64xbf16>
    %cst_23 = arith.constant dense<0.000000e+00> : vector<128xf32>
    %74 = vector.multi_reduction <add>, %72, %cst_23 [0] : vector<256x128xf32> to vector<128xf32>
    %75 = vector.shape_cast %74 : vector<128xf32> to vector<1x128xf32>
    %cst_24 = arith.constant 3.906250e-03 : f32
    %76 = vector.broadcast %cst_24 : f32 to vector<1x128xf32>
    %77 = arith.mulf %75, %76 : vector<1x128xf32>
    %78 = arith.subf %72, %71 : vector<256x128xf32>
    %79 = arith.mulf %78, %78 : vector<256x128xf32>
    %80 = vector.broadcast %5 : vector<1x128xf32> to vector<256x128xf32>
    %81 = arith.mulf %79, %80 : vector<256x128xf32>
    %cst_25 = arith.constant dense<0.000000e+00> : vector<256xf32>
    %82 = vector.multi_reduction <add>, %81, %cst_25 [1] : vector<256x128xf32> to vector<256xf32>
    %83 = vector.shape_cast %82 : vector<256xf32> to vector<256x1xf32>
    %84 = math.sqrt %83 : vector<256x1xf32>
    %85 = vector.broadcast %77 : vector<1x128xf32> to vector<256x128xf32>
    %86 = arith.subf %71, %85 : vector<256x128xf32>
    %87 = math.absf %86 : vector<256x128xf32>
    %cst_26 = arith.constant 6.250000e-02 : f32
    %88 = vector.broadcast %cst_26 : f32 to vector<256x128xf32>
    %89 = arith.mulf %87, %88 : vector<256x128xf32>
    %90 = vector.broadcast %5 : vector<1x128xf32> to vector<256x128xf32>
    %91 = arith.mulf %89, %90 : vector<256x128xf32>
    %c3_i32_27 = arith.constant 3 : i32
    %92 = tpu.dynamic_rotate %91 by %c3_i32_27 dim 1 : vector<256x128xf32>, i32 -> vector<256x128xf32>
    %93 = arith.addf %78, %92 : vector<256x128xf32>
    %94 = vector.broadcast %84 : vector<256x1xf32> to vector<256x128xf32>
    %95 = vector.broadcast %9 : vector<1x128xf32> to vector<256x128xf32>
    %96 = arith.mulf %94, %95 : vector<256x128xf32>
    %97 = arith.addf %93, %96 : vector<256x128xf32>
    %98 = vector.broadcast %13 : vector<1x128xf32> to vector<256x128xf32>
    %99 = arith.addf %97, %98 : vector<256x128xf32>
    %100 = arith.truncf %99 : vector<256x128xf32> to vector<256x128xbf16>
    %cst_28 = arith.constant dense<0.000000e+00> : vector<64x128xf32>
    %101 = tpu.matmul %73, %100, %cst_28 {dimension_numbers = #tpu.dot_dimension_numbers<[0], [0], [1], [1], [0, 1, 1, 1], [], []>} : vector<256x64xbf16>, vector<256x128xbf16>, vector<64x128xf32> -> vector<64x128xf32>
    %102 = arith.truncf %101 : vector<64x128xf32> to vector<64x128xbf16>
    %cst_29 = arith.constant dense<0.000000e+00> : vector<64x128xf32>
    %103 = tpu.matmul %102, %14, %cst_29 {dimension_numbers = #tpu.dot_dimension_numbers<[1], [0], [0], [1], [0, 0, 1, 1], [], []>} : vector<64x128xbf16>, vector<128x128xbf16>, vector<64x128xf32> -> vector<64x128xf32>
    %c1_30 = arith.constant 1 : index
    %c0_31 = arith.constant 0 : index
    %c0_32 = arith.constant 0 : index
    %104 = vector.load %arg4[%c1_30, %c0_31, %c0_32] : memref<2x64x128xf32, #tpu.memory_space<vmem>>, vector<1x64x128xf32>
    %105 = vector.shape_cast %104 : vector<1x64x128xf32> to vector<64x128xf32>
    %106 = vector.shape_cast %103 : vector<64x128xf32> to vector<1x64x128xf32>
    tpu.vector_store %arg4[%c1_30, %c0_31, %c0_32], %106 {strides = array<i32>} : memref<2x64x128xf32, #tpu.memory_space<vmem>>, vector<1x64x128xf32>,
    return
  }
  func.func @transform_0(%arg0: i32) -> (i32, i32, i32) {
    %c0_i32 = arith.constant 0 : i32
    %c0_i32_0 = arith.constant 0 : i32
    %c0_i32_1 = arith.constant 0 : i32
    return %arg0, %c0_i32, %c0_i32_0 : i32, i32, i32
  }
  func.func @transform_1(%arg0: i32) -> (i32, i32, i32) {
    %c0_i32 = arith.constant 0 : i32
    %c0_i32_0 = arith.constant 0 : i32
    %c0_i32_1 = arith.constant 0 : i32
    return %arg0, %c0_i32, %c0_i32_0 : i32, i32, i32
  }
  func.func @transform_2(%arg0: i32) -> (i32, i32) {
    %c0_i32 = arith.constant 0 : i32
    %c0_i32_0 = arith.constant 0 : i32
    %c0_i32_1 = arith.constant 0 : i32
    return %c0_i32, %c0_i32_0 : i32, i32
  }
  func.func @transform_3(%arg0: i32) -> (i32, i32, i32) {
    %c0_i32 = arith.constant 0 : i32
    %c0_i32_0 = arith.constant 0 : i32
    %c0_i32_1 = arith.constant 0 : i32
    return %arg0, %c0_i32, %c0_i32_0 : i32, i32, i32
  }
}

</mosaic_0001>

<bundles_post_ra>
// kernel: e_edgeconv_pallas.1
= control target key start
LH: loop header
LB: loop body
LE: loop exit
PB: predicated region body
PF: predicated region fallthrough
CT: control target
= control target key end

     0   :  { %s4886_s12 = smov 0   ;;  %s7388_s0 = inlined_call_operand.vmem [shape: bf16[4,64,128], index: 0, kind: input, shape index: {}]   ;;  %s7389_s1 = inlined_call_operand.vmem [shape: s32[4,512,1], index: 1, kind: input, shape index: {}]   ;;  %s7390_s2 = inlined_call_operand.vmem [shape: bf16[128,128], index: 2, kind: input, shape index: {}]   ;;  %s7391_s3 = inlined_call_operand.vmem [shape: f32[4,64,128], index: 3, kind: output, shape index: {}]  }
   0x1 LB: > { %s4012_s13 = sadd.s32 4294967295, %s4861_s12   ;;  %p4016_p0 = scmp.ge.s32.totalorder %s4861_s12, 1  ;;  %s4861_s12 = sphi %s4886_s12, %s13_s12  }
   0x2   : > { %p151_p1 = scmp.lt.s32.totalorder %s4861_s12, 3 }
   0x4   : > { %p152_p2 = pnand %p4016_p0, %p151_p1 }
   0x6   : > { %155 = sbr.rel (%p152_p2) target bundleno = 1949 (0x79d), region = 32 }
   0xb   : > { %s4017_s14 = sshll.u32 %s4012_s13, 1  ;;  %v4863_v0 = vmov 0   ;;  %vm744_vm4 = vcmask 523264   ;;  %s4865_s23 = smov 3  }
   0xc   : > { %4702 = vset.pattern.permute.xlu1 %v4863_v0  ;;  %4701 = vset.pattern.permute.xlu0 %v4863_v0  ;;  %p184_p3 = scmp.lt.s32.totalorder %s4017_s14, 3 }
   0xe   : > { %s7634_s14 = smov (!%p184_p3, %s4017_s14), 3 }
   0xf   : > { %s4320_s15 = sshll.u32 %s7634_s14, 9  ;;  %s4319_s19 = sshll.u32 %s7634_s14, 5 }
  0x10   : > { %s4900_s18 = scalar_lea.vmem %s7389_s1, %s4320_s15  ;;  %s4916_s22 = scalar_lea.vmem %s7388_s0, %s4319_s19 }
  0x11   : > { %v242_v1 = vld [vmem:[%s4900_s18 + $0x10] sm:$0xff]  ;;  %v240_v2 = vld [vmem:[%s4900_s18] sm:$0xff]  ;;  %v243_v3 = vld [vmem:[%s4900_s18 + $0x18] sm:$0xff]  ;;  %s4321_s15 = sshll.u32 %s7634_s14, 6 }
  0x12   : > { %311 = vperm.xlu1 %4702, %v242_v1   ;;  %305 = vperm.xlu0 %4701, %v240_v2   ;;  %v241_v4 = vld [vmem:[%s4900_s18 + $0x8] sm:$0xff]  ;;  %v244_v6 = vld [vmem:[%s4900_s18 + $0x20] sm:$0xff]  ;;  %v247_v7 = vld [vmem:[%s4900_s18 + $0x38] sm:$0xff] }
  0x13   : > { %v245_v5 = vld [vmem:[%s4900_s18 + $0x28] sm:$0xff]  ;;  %v246_v8 = vld [vmem:[%s4900_s18 + $0x30] sm:$0xff]  ;;  %v248_v10 = vld [vmem:[%s4900_s18 + $0x40] sm:$0xff] }
  0x14   : > { %v249_v9 = vld [vmem:[%s4900_s18 + $0x48] sm:$0xff]  ;;  %v251_v11 = vld [vmem:[%s4900_s18 + $0x58] sm:$0xff]  ;;  %v250_v12 = vld [vmem:[%s4900_s18 + $0x50] sm:$0xff] }
  0x15   : > { %v4703_v13 = vld [vmem:[%s4916_s22 + $0x18] sm:$0xff]   ;;  %v253_v14 = vld [vmem:[%s4900_s18 + $0x68] sm:$0xff]  ;;  %v252_v15 = vld [vmem:[%s4900_s18 + $0x60] sm:$0xff] }
  0x16   : > { %314 = vperm.xlu1 %4702, %v243_v3   ;;  %308 = vperm.xlu0 %4701, %v241_v4   ;;  %v4704_v16 = vld [vmem:[%s4916_s22 + $0x10] sm:$0xff]   ;;  %v255_v17 = vld [vmem:[%s4900_s18 + $0x78] sm:$0xff]  ;;  %v4705_v18 = vld [vmem:[%s4916_s22 + $0x8] sm:$0xff]   ;;  %v205_v3 = vlaneseq }
  0x17   : > { %4498 = vmatprep.subr.bf16.mxu0 %v4703_v13  ;;  %v254_v19 = vld [vmem:[%s4900_s18 + $0x70] sm:$0xff]  ;;  %v4706_v20 = vld [vmem:[%s4916_s22] sm:$0xff]   ;;  %v257_v21 = vld [vmem:[%s4900_s18 + $0x88] sm:$0xff] }
  0x18   : > { %4499 = vmatpush3.bf16.msra.mxu0 %v4703_v13  ;;  %v256_v22 = vld [vmem:[%s4900_s18 + $0x80] sm:$0xff]  ;;  %v259_v23 = vld [vmem:[%s4900_s18 + $0x98] sm:$0xff]  ;;  %v258_v24 = vld [vmem:[%s4900_s18 + $0x90] sm:$0xff] }
  0x19   : > { %4500 = vmatprep.subr.bf16.mxu0 %v4704_v16  ;;  %v261_v25 = vld [vmem:[%s4900_s18 + $0xa8] sm:$0xff]  ;;  %v260_v26 = vld [vmem:[%s4900_s18 + $0xa0] sm:$0xff]  ;;  %v263_v27 = vld [vmem:[%s4900_s18 + $0xb8] sm:$0xff] }
  0x1a   : > { %320 = vperm.xlu1 %4702, %v245_v5   ;;  %317 = vperm.xlu0 %4701, %v244_v6   ;;  %v262_v28 = vld [vmem:[%s4900_s18 + $0xb0] sm:$0xff]  ;;  %v265_v29 = vld [vmem:[%s4900_s18 + $0xc8] sm:$0xff]  ;;  %v264_v30 = vld [vmem:[%s4900_s18 + $0xc0] sm:$0xff]  ;;  %v4976_v6 = vand.u32 127, %v205_v3 }
  0x1b   : > { %v267_v31 = vld [vmem:[%s4900_s18 + $0xd8] sm:$0xff]  ;;  %v266_v32 = vld [vmem:[%s4900_s18 + $0xd0] sm:$0xff]  ;;  %v269_v33 = vld [vmem:[%s4900_s18 + $0xe8] sm:$0xff] }
  0x1c   : > { %4501 = vmatpush3.bf16.msra.mxu0 %v4704_v16  ;;  %v268_v34 = vld [vmem:[%s4900_s18 + $0xe0] sm:$0xff]  ;;  %v271_v35 = vld [vmem:[%s4900_s18 + $0xf8] sm:$0xff]  ;;  %v270_v36 = vld [vmem:[%s4900_s18 + $0xf0] sm:$0xff] }
  0x1d   : > { %4502 = vmatprep.subr.bf16.mxu0 %v4705_v18  ;;  %v273_v37 = vld [vmem:[%s4900_s18 + $0x108] sm:$0xff]  ;;  %v272_v38 = vld [vmem:[%s4900_s18 + $0x100] sm:$0xff]  ;;  %v275_v39 = vld [vmem:[%s4900_s18 + $0x118] sm:$0xff] }
  0x1e   : > { %326 = vperm.xlu1 %4702, %v247_v7   ;;  %323 = vperm.xlu0 %4701, %v246_v8   ;;  %v274_v40 = vld [vmem:[%s4900_s18 + $0x110] sm:$0xff]  ;;  %v277_v41 = vld [vmem:[%s4900_s18 + $0x128] sm:$0xff]  ;;  %v276_v42 = vld [vmem:[%s4900_s18 + $0x120] sm:$0xff] }
  0x1f   : > { %v279_v43 = vld [vmem:[%s4900_s18 + $0x138] sm:$0xff]  ;;  %v278_v44 = vld [vmem:[%s4900_s18 + $0x130] sm:$0xff]  ;;  %v281_v45 = vld [vmem:[%s4900_s18 + $0x148] sm:$0xff] }
  0x20   : > { %4503 = vmatpush3.bf16.msra.mxu0 %v4705_v18  ;;  %v280_v46 = vld [vmem:[%s4900_s18 + $0x140] sm:$0xff]  ;;  %v283_v47 = vld [vmem:[%s4900_s18 + $0x158] sm:$0xff]  ;;  %v282_v48 = vld [vmem:[%s4900_s18 + $0x150] sm:$0xff] }
  0x21   : > { %4504 = vmatprep.subr.bf16.mxu0 %v4706_v20  ;;  %v285_v49 = vld [vmem:[%s4900_s18 + $0x168] sm:$0xff]  ;;  %v284_v50 = vld [vmem:[%s4900_s18 + $0x160] sm:$0xff]  ;;  %v287_v51 = vld [vmem:[%s4900_s18 + $0x178] sm:$0xff] }
  0x22   : > { %332 = vperm.xlu1 %4702, %v249_v9   ;;  %329 = vperm.xlu0 %4701, %v248_v10   ;;  %v286_v52 = vld [vmem:[%s4900_s18 + $0x170] sm:$0xff]  ;;  %v289_v53 = vld [vmem:[%s4900_s18 + $0x188] sm:$0xff]  ;;  %v288_v54 = vld [vmem:[%s4900_s18 + $0x180] sm:$0xff] }
  0x23   : > { %v291_v55 = vld [vmem:[%s4900_s18 + $0x198] sm:$0xff]  ;;  %v290_v56 = vld [vmem:[%s4900_s18 + $0x190] sm:$0xff]  ;;  %v293_v57 = vld [vmem:[%s4900_s18 + $0x1a8] sm:$0xff] }
  0x24   : > { %4505 = vmatpush3.bf16.msra.mxu0 %v4706_v20  ;;  %v292_v58 = vld [vmem:[%s4900_s18 + $0x1a0] sm:$0xff]  ;;  %v295_v59 = vld [vmem:[%s4900_s18 + $0x1b8] sm:$0xff]  ;;  %v294_v60 = vld [vmem:[%s4900_s18 + $0x1b0] sm:$0xff] }
  0x25   : > { %v297_v61 = vld [vmem:[%s4900_s18 + $0x1c8] sm:$0xff]  ;;  %v296_v62 = vld [vmem:[%s4900_s18 + $0x1c0] sm:$0xff]  ;;  %v299_v63 = vld [vmem:[%s4900_s18 + $0x1d8] sm:$0xff] }
  0x26   : > { %338 = vperm.xlu1 %4702, %v251_v11   ;;  %335 = vperm.xlu0 %4701, %v250_v12   ;;  %v298_v0 = vld [vmem:[%s4900_s18 + $0x1d0] sm:$0xff]  ;;  %v301_v1 = vld [vmem:[%s4900_s18 + $0x1e8] sm:$0xff]  ;;  %v300_v2 = vld [vmem:[%s4900_s18 + $0x1e0] sm:$0xff]  ;;  %v7392_v11 = vmov 0.0  }
  0x27   : > { %v303_v4 = vld [vmem:[%s4900_s18 + $0x1f8] sm:$0xff]  ;;  %v302_v5 = vld [vmem:[%s4900_s18 + $0x1f0] sm:$0xff] }
  0x2a   : > { %344 = vperm.xlu1 %4702, %v253_v14   ;;  %341 = vperm.xlu0 %4701, %v252_v15  }
  0x2e   : > { %350 = vperm.xlu1 %4702, %v255_v17   ;;  %347 = vperm.xlu0 %4701, %v254_v19  }
  0x32   : > { %356 = vperm.xlu1 %4702, %v257_v21   ;;  %353 = vperm.xlu0 %4701, %v256_v22  }
  0x36   : > { %362 = vperm.xlu1 %4702, %v259_v23   ;;  %359 = vperm.xlu0 %4701, %v258_v24  }
  0x3a   : > { %368 = vperm.xlu1 %4702, %v261_v25   ;;  %365 = vperm.xlu0 %4701, %v260_v26  }
  0x3e   : > { %374 = vperm.xlu1 %4702, %v263_v27   ;;  %371 = vperm.xlu0 %4701, %v262_v28  }
  0x42   : > { %380 = vperm.xlu1 %4702, %v265_v29   ;;  %377 = vperm.xlu0 %4701, %v264_v30  }
  0x46   : > { %386 = vperm.xlu1 %4702, %v267_v31   ;;  %383 = vperm.xlu0 %4701, %v266_v32  }
  0x4a   : > { %392 = vperm.xlu1 %4702, %v269_v33   ;;  %389 = vperm.xlu0 %4701, %v268_v34  }
  0x4e   : > { %398 = vperm.xlu1 %4702, %v271_v35   ;;  %395 = vperm.xlu0 %4701, %v270_v36  }
  0x52   : > { %404 = vperm.xlu1 %4702, %v273_v37   ;;  %401 = vperm.xlu0 %4701, %v272_v38  }
  0x56   : > { %410 = vperm.xlu1 %4702, %v275_v39   ;;  %407 = vperm.xlu0 %4701, %v274_v40  }
  0x5a   : > { %416 = vperm.xlu1 %4702, %v277_v41   ;;  %413 = vperm.xlu0 %4701, %v276_v42  }
  0x5e   : > { %422 = vperm.xlu1 %4702, %v279_v43   ;;  %419 = vperm.xlu0 %4701, %v278_v44  }
  0x62   : > { %428 = vperm.xlu1 %4702, %v281_v45   ;;  %425 = vperm.xlu0 %4701, %v280_v46  }
  0x66   : > { %434 = vperm.xlu1 %4702, %v283_v47   ;;  %431 = vperm.xlu0 %4701, %v282_v48  }
  0x6a   : > { %440 = vperm.xlu1 %4702, %v285_v49   ;;  %437 = vperm.xlu0 %4701, %v284_v50  }
  0x6e   : > { %446 = vperm.xlu1 %4702, %v287_v51   ;;  %443 = vperm.xlu0 %4701, %v286_v52  }
  0x72   : > { %452 = vperm.xlu1 %4702, %v289_v53   ;;  %449 = vperm.xlu0 %4701, %v288_v54  }
  0x76   : > { %458 = vperm.xlu1 %4702, %v291_v55   ;;  %455 = vperm.xlu0 %4701, %v290_v56  }
  0x7a   : > { %464 = vperm.xlu1 %4702, %v293_v57   ;;  %461 = vperm.xlu0 %4701, %v292_v58  }
  0x7e   : > { %470 = vperm.xlu1 %4702, %v295_v59   ;;  %467 = vperm.xlu0 %4701, %v294_v60  }
  0x82   : > { %476 = vperm.xlu1 %4702, %v297_v61   ;;  %473 = vperm.xlu0 %4701, %v296_v62  }
  0x86   : > { %482 = vperm.xlu1 %4702, %v299_v63   ;;  %479 = vperm.xlu0 %4701, %v298_v0  }
  0x8a   : > { %488 = vperm.xlu1 %4702, %v301_v1   ;;  %485 = vperm.xlu0 %4701, %v300_v2  }
  0x8d   : > { %v312_v7 = vpop.permute.xlu1 %311  ;;  %v306_v8 = vpop.permute.xlu0 %305 }
  0x8e   : > { %494 = vperm.xlu1 %4702, %v303_v4   ;;  %491 = vperm.xlu0 %4701, %v302_v5   ;;  %vm498_vm0 = vcmp.eq.s32.totalorder %v4976_v6, %v312_v7  ;;  %vm496_vm1 = vcmp.eq.s32.totalorder %v4976_v6, %v306_v8 }
  0x8f   : > { %v4031_v12 = vsel %vm498_vm0, 1.0, %v7392_v11  ;;  %v4029_v14 = vsel %vm496_vm1, 1.0, %v7392_v11 }
  0x91   : > { %v315_v9 = vpop.permute.xlu1 %314  ;;  %v309_v10 = vpop.permute.xlu0 %308 }
  0x92   : > { %vm499_vm2 = vcmp.eq.s32.totalorder %v4976_v6, %v315_v9  ;;  %vm497_vm3 = vcmp.eq.s32.totalorder %v4976_v6, %v309_v10 }
  0x93   : > { %v4032_v13 = vsel %vm499_vm2, 1.0, %v7392_v11  ;;  %v4030_v15 = vsel %vm497_vm3, 1.0, %v7392_v11 }
  0x94   : > { %v689_v16 = vpack.c.bf16 %v4032_v13, %v4031_v12  ;;  %v688_v17 = vpack.c.bf16 %v4030_v15, %v4029_v14 }
  0x95   : > { %v321_v18 = vpop.permute.xlu1 %320  ;;  %v318_v19 = vpop.permute.xlu0 %317 }
  0x96   : > { %vm501_vm5 = vcmp.eq.s32.totalorder %v4976_v6, %v321_v18  ;;  %vm500_vm6 = vcmp.eq.s32.totalorder %v4976_v6, %v318_v19  ;;  %4506 = vmatprep.mubr.msk.bf16.mxu0 %vm744_vm4, %v688_v17 }
  0x97   : > { %v4034_v20 = vsel %vm501_vm5, 1.0, %v7392_v11  ;;  %v4033_v21 = vsel %vm500_vm6, 1.0, %v7392_v11  ;;  %4507 = vmatmul.mubr.msk.bf16.vlgmr.msra.gmra.mxu0 %vm744_vm4, %v689_v16 }
  0x98   : > { %v690_v22 = vpack.c.bf16 %v4034_v20, %v4033_v21 }
  0x99   : > { %v327_v23 = vpop.permute.xlu1 %326  ;;  %v324_v24 = vpop.permute.xlu0 %323 }
  0x9a   : > { %vm503_vm7 = vcmp.eq.s32.totalorder %v4976_v6, %v327_v23  ;;  %vm502_vm8 = vcmp.eq.s32.totalorder %v4976_v6, %v324_v24  ;;  %4510 = vmatprep.mubr.msk.bf16.mxu0 %vm744_vm4, %v690_v22 }
  0x9b   : > { %v4036_v25 = vsel %vm503_vm7, 1.0, %v7392_v11  ;;  %v4035_v26 = vsel %vm502_vm8, 1.0, %v7392_v11 }
  0x9c   : > { %v691_v27 = vpack.c.bf16 %v4036_v25, %v4035_v26 }
  0x9d   : > { %v333_v28 = vpop.permute.xlu1 %332  ;;  %v330_v29 = vpop.permute.xlu0 %329 }
  0x9e   : > { %vm505_vm9 = vcmp.eq.s32.totalorder %v4976_v6, %v333_v28  ;;  %vm504_vm10 = vcmp.eq.s32.totalorder %v4976_v6, %v330_v29 }
  0x9f   : > { %v4038_v30 = vsel %vm505_vm9, 1.0, %v7392_v11  ;;  %v4037_v31 = vsel %vm504_vm10, 1.0, %v7392_v11  ;;  %4511 = vmatmul.mubr.msk.bf16.gmra.mxu0 %vm744_vm4, %v691_v27 }
  0xa0   : > { %v692_v32 = vpack.c.bf16 %v4038_v30, %v4037_v31 }
  0xa1   : > { %v339_v33 = vpop.permute.xlu1 %338  ;;  %v336_v34 = vpop.permute.xlu0 %335 }
  0xa2   : > { %vm507_vm11 = vcmp.eq.s32.totalorder %v4976_v6, %v339_v33  ;;  %vm506_vm12 = vcmp.eq.s32.totalorder %v4976_v6, %v336_v34  ;;  %4514 = vmatprep.mubr.msk.bf16.mxu0 %vm744_vm4, %v692_v32 }
  0xa3   : > { %v4040_v35 = vsel %vm507_vm11, 1.0, %v7392_v11  ;;  %v4039_v36 = vsel %vm506_vm12, 1.0, %v7392_v11 }
  0xa4   : > { %v693_v37 = vpack.c.bf16 %v4040_v35, %v4039_v36 }
  0xa5   : > { %v345_v38 = vpop.permute.xlu1 %344  ;;  %v342_v39 = vpop.permute.xlu0 %341 }
  0xa6   : > { %vm509_vm13 = vcmp.eq.s32.totalorder %v4976_v6, %v345_v38  ;;  %vm508_vm14 = vcmp.eq.s32.totalorder %v4976_v6, %v342_v39 }
  0xa7   : > { %v4042_v40 = vsel %vm509_vm13, 1.0, %v7392_v11  ;;  %v4041_v41 = vsel %vm508_vm14, 1.0, %v7392_v11  ;;  %4515 = vmatmul.mubr.msk.bf16.gmra.mxu0 %vm744_vm4, %v693_v37 }
  0xa8   : > { %v694_v42 = vpack.c.bf16 %v4042_v40, %v4041_v41 }
  0xa9   : > { %v351_v43 = vpop.permute.xlu1 %350  ;;  %v348_v44 = vpop.permute.xlu0 %347 }
  0xaa   : > { %vm511_vm15 = vcmp.eq.s32.totalorder %v4976_v6, %v351_v43  ;;  %vm510_vm0 = vcmp.eq.s32.totalorder %v4976_v6, %v348_v44  ;;  %4518 = vmatprep.mubr.msk.bf16.mxu0 %vm744_vm4, %v694_v42 }
  0xab   : > { %v4044_v45 = vsel %vm511_vm15, 1.0, %v7392_v11  ;;  %v4043_v46 = vsel %vm510_vm0, 1.0, %v7392_v11 }
  0xac   : > { %v695_v47 = vpack.c.bf16 %v4044_v45, %v4043_v46 }
  0xad   : > { %v357_v48 = vpop.permute.xlu1 %356  ;;  %v354_v49 = vpop.permute.xlu0 %353 }
  0xae   : > { %vm513_vm1 = vcmp.eq.s32.totalorder %v4976_v6, %v357_v48  ;;  %vm512_vm2 = vcmp.eq.s32.totalorder %v4976_v6, %v354_v49 }
  0xaf   : > { %v4046_v50 = vsel %vm513_vm1, 1.0, %v7392_v11  ;;  %v4045_v51 = vsel %vm512_vm2, 1.0, %v7392_v11  ;;  %4519 = vmatmul.mubr.msk.bf16.gmra.mxu0 %vm744_vm4, %v695_v47 }
  0xb0   : > { %v696_v52 = vpack.c.bf16 %v4046_v50, %v4045_v51 }
  0xb1   : > { %v363_v53 = vpop.permute.xlu1 %362  ;;  %v360_v54 = vpop.permute.xlu0 %359 }
  0xb2   : > { %vm515_vm3 = vcmp.eq.s32.totalorder %v4976_v6, %v363_v53  ;;  %vm514_vm5 = vcmp.eq.s32.totalorder %v4976_v6, %v360_v54  ;;  %4522 = vmatprep.mubr.msk.bf16.mxu0 %vm744_vm4, %v696_v52 }
  0xb3   : > { %v4048_v55 = vsel %vm515_vm3, 1.0, %v7392_v11  ;;  %v4047_v56 = vsel %vm514_vm5, 1.0, %v7392_v11 }
  0xb4   : > { %v697_v57 = vpack.c.bf16 %v4048_v55, %v4047_v56 }
  0xb5   : > { %v369_v58 = vpop.permute.xlu1 %368  ;;  %v366_v59 = vpop.permute.xlu0 %365 }
  0xb6   : > { %vm517_vm6 = vcmp.eq.s32.totalorder %v4976_v6, %v369_v58  ;;  %vm516_vm7 = vcmp.eq.s32.totalorder %v4976_v6, %v366_v59 }
  0xb7   : > { %v4050_v60 = vsel %vm517_vm6, 1.0, %v7392_v11  ;;  %v4049_v61 = vsel %vm516_vm7, 1.0, %v7392_v11  ;;  %4523 = vmatmul.mubr.msk.bf16.gmra.mxu0 %vm744_vm4, %v697_v57 }
  0xb8   : > { %v698_v62 = vpack.c.bf16 %v4050_v60, %v4049_v61 }
  0xb9   : > { %v375_v63 = vpop.permute.xlu1 %374  ;;  %v372_v0 = vpop.permute.xlu0 %371 }
  0xba   : > { %vm519_vm8 = vcmp.eq.s32.totalorder %v4976_v6, %v375_v63  ;;  %vm518_vm9 = vcmp.eq.s32.totalorder %v4976_v6, %v372_v0  ;;  %4526 = vmatprep.mubr.msk.bf16.mxu0 %vm744_vm4, %v698_v62 }
  0xbb   : > { %v4052_v1 = vsel %vm519_vm8, 1.0, %v7392_v11  ;;  %v4051_v2 = vsel %vm518_vm9, 1.0, %v7392_v11 }
  0xbc   : > { %v699_v3 = vpack.c.bf16 %v4052_v1, %v4051_v2 }
  0xbd   : > { %v381_v4 = vpop.permute.xlu1 %380  ;;  %v378_v5 = vpop.permute.xlu0 %377 }
  0xbe   : > { %vm521_vm10 = vcmp.eq.s32.totalorder %v4976_v6, %v381_v4  ;;  %vm520_vm11 = vcmp.eq.s32.totalorder %v4976_v6, %v378_v5 }
  0xbf   : > { %v4054_v7 = vsel %vm521_vm10, 1.0, %v7392_v11  ;;  %v4053_v8 = vsel %vm520_vm11, 1.0, %v7392_v11  ;;  %4527 = vmatmul.mubr.msk.bf16.gmra.mxu0 %vm744_vm4, %v699_v3 }
  0xc0   : > { %v700_v9 = vpack.c.bf16 %v4054_v7, %v4053_v8 }
  0xc1   : > { %v387_v10 = vpop.permute.xlu1 %386  ;;  %v384_v12 = vpop.permute.xlu0 %383 }
  0xc2   : > { %vm523_vm12 = vcmp.eq.s32.totalorder %v4976_v6, %v387_v10  ;;  %vm522_vm13 = vcmp.eq.s32.totalorder %v4976_v6, %v384_v12  ;;  %4530 = vmatprep.mubr.msk.bf16.mxu0 %vm744_vm4, %v700_v9 }
  0xc3   : > { %v4056_v13 = vsel %vm523_vm12, 1.0, %v7392_v11  ;;  %v4055_v14 = vsel %vm522_vm13, 1.0, %v7392_v11 }
  0xc4   : > { %v701_v15 = vpack.c.bf16 %v4056_v13, %v4055_v14 }
  0xc5   : > { %v393_v16 = vpop.permute.xlu1 %392  ;;  %v390_v17 = vpop.permute.xlu0 %389 }
  0xc6   : > { %vm525_vm14 = vcmp.eq.s32.totalorder %v4976_v6, %v393_v16  ;;  %vm524_vm15 = vcmp.eq.s32.totalorder %v4976_v6, %v390_v17 }
  0xc7   : > { %v4058_v18 = vsel %vm525_vm14, 1.0, %v7392_v11  ;;  %v4057_v19 = vsel %vm524_vm15, 1.0, %v7392_v11  ;;  %4531 = vmatmul.mubr.msk.bf16.gmra.mxu0 %vm744_vm4, %v701_v15 }
  0xc8   : > { %v702_v20 = vpack.c.bf16 %v4058_v18, %v4057_v19 }
  0xc9   : > { %v399_v21 = vpop.permute.xlu1 %398  ;;  %v396_v22 = vpop.permute.xlu0 %395 }
  0xca   : > { %vm527_vm0 = vcmp.eq.s32.totalorder %v4976_v6, %v399_v21  ;;  %vm526_vm1 = vcmp.eq.s32.totalorder %v4976_v6, %v396_v22  ;;  %4534 = vmatprep.mubr.msk.bf16.mxu0 %vm744_vm4, %v702_v20 }
  0xcb   : > { %v4060_v23 = vsel %vm527_vm0, 1.0, %v7392_v11  ;;  %v4059_v24 = vsel %vm526_vm1, 1.0, %v7392_v11 }
  0xcc   : > { %v703_v25 = vpack.c.bf16 %v4060_v23, %v4059_v24 }
  0xcd   : > { %v405_v26 = vpop.permute.xlu1 %404  ;;  %v402_v27 = vpop.permute.xlu0 %401 }
  0xce   : > { %vm529_vm2 = vcmp.eq.s32.totalorder %v4976_v6, %v405_v26  ;;  %vm528_vm3 = vcmp.eq.s32.totalorder %v4976_v6, %v402_v27 }
  0xcf   : > { %v4062_v28 = vsel %vm529_vm2, 1.0, %v7392_v11  ;;  %v4061_v29 = vsel %vm528_vm3, 1.0, %v7392_v11  ;;  %4535 = vmatmul.mubr.msk.bf16.gmra.mxu0 %vm744_vm4, %v703_v25 }
  0xd0   : > { %v5062_v30 = vpack.c.bf16 %v4062_v28, %v4061_v29 }
  0xd1   : > { %v411_v31 = vpop.permute.xlu1 %410  ;;  %v408_v32 = vpop.permute.xlu0 %407 }
  0xd2   : > { %vm531_vm5 = vcmp.eq.s32.totalorder %v4976_v6, %v411_v31  ;;  %vm530_vm6 = vcmp.eq.s32.totalorder %v4976_v6, %v408_v32  ;;  %4538 = vmatprep.mubr.msk.bf16.mxu0 %vm744_vm4, %v5062_v30 }
  0xd3   : > { %v4064_v33 = vsel %vm531_vm5, 1.0, %v7392_v11  ;;  %v4063_v34 = vsel %vm530_vm6, 1.0, %v7392_v11 }
  0xd4   : > { %v5070_v35 = vpack.c.bf16 %v4064_v33, %v4063_v34 }
  0xd5   : > { %v417_v36 = vpop.permute.xlu1 %416  ;;  %v414_v37 = vpop.permute.xlu0 %413 }
  0xd6   : > { %vm533_vm7 = vcmp.eq.s32.totalorder %v4976_v6, %v417_v36  ;;  %vm532_vm8 = vcmp.eq.s32.totalorder %v4976_v6, %v414_v37 }
  0xd7   : > { %v4066_v38 = vsel %vm533_vm7, 1.0, %v7392_v11  ;;  %v4065_v39 = vsel %vm532_vm8, 1.0, %v7392_v11  ;;  %4539 = vmatmul.mubr.msk.bf16.gmra.mxu0 %vm744_vm4, %v5070_v35 }
  0xd8   : > { %v5078_v40 = vpack.c.bf16 %v4066_v38, %v4065_v39 }
  0xd9   : > { %v423_v41 = vpop.permute.xlu1 %422  ;;  %v420_v42 = vpop.permute.xlu0 %419 }
  0xda   : > { %vm535_vm9 = vcmp.eq.s32.totalorder %v4976_v6, %v423_v41  ;;  %vm534_vm10 = vcmp.eq.s32.totalorder %v4976_v6, %v420_v42  ;;  %4542 = vmatprep.mubr.msk.bf16.mxu0 %vm744_vm4, %v5078_v40 }
  0xdb   : > { %v4068_v43 = vsel %vm535_vm9, 1.0, %v7392_v11  ;;  %v4067_v44 = vsel %vm534_vm10, 1.0, %v7392_v11 }
  0xdc   : > { %v5086_v45 = vpack.c.bf16 %v4068_v43, %v4067_v44 }
  0xdd   : > { %v429_v46 = vpop.permute.xlu1 %428  ;;  %v426_v47 = vpop.permute.xlu0 %425 }
  0xde   : > { %vm537_vm11 = vcmp.eq.s32.totalorder %v4976_v6, %v429_v46  ;;  %vm536_vm12 = vcmp.eq.s32.totalorder %v4976_v6, %v426_v47 }
  0xdf   : > { %v4070_v48 = vsel %vm537_vm11, 1.0, %v7392_v11  ;;  %v4069_v49 = vsel %vm536_vm12, 1.0, %v7392_v11  ;;  %4543 = vmatmul.mubr.msk.bf16.gmra.mxu0 %vm744_vm4, %v5086_v45 }
  0xe0   : > { %v5094_v50 = vpack.c.bf16 %v4070_v48, %v4069_v49 }
  0xe1   : > { %v435_v51 = vpop.permute.xlu1 %434  ;;  %v432_v52 = vpop.permute.xlu0 %431 }
  0xe2   : > { %7470 = vst [vmem:[#allocation2_spill] sm:$0xff] %v5094_v50  ;;  %vm539_vm13 = vcmp.eq.s32.totalorder %v4976_v6, %v435_v51  ;;  %vm538_vm14 = vcmp.eq.s32.totalorder %v4976_v6, %v432_v52  ;;  %4546 = vmatprep.mubr.msk.bf16.mxu0 %vm744_vm4, %v5094_v50 }
  0xe3   : > { %v4072_v53 = vsel %vm539_vm13, 1.0, %v7392_v11  ;;  %v4071_v54 = vsel %vm538_vm14, 1.0, %v7392_v11 }
  0xe4   : > { %v5102_v55 = vpack.c.bf16 %v4072_v53, %v4071_v54 }
  0xe5   : > { %v441_v56 = vpop.permute.xlu1 %440  ;;  %v438_v57 = vpop.permute.xlu0 %437 }
  0xe6   : > { %7471 = vst [vmem:[#allocation3_spill] sm:$0xff] %v5102_v55  ;;  %vm541_vm15 = vcmp.eq.s32.totalorder %v4976_v6, %v441_v56  ;;  %vm540_vm0 = vcmp.eq.s32.totalorder %v4976_v6, %v438_v57 }
  0xe7   : > { %v4074_v58 = vsel %vm541_vm15, 1.0, %v7392_v11  ;;  %v4073_v59 = vsel %vm540_vm0, 1.0, %v7392_v11  ;;  %4547 = vmatmul.mubr.msk.bf16.gmra.mxu0 %vm744_vm4, %v5102_v55 }
  0xe8   : > { %v5110_v60 = vpack.c.bf16 %v4074_v58, %v4073_v59 }
  0xe9   : > { %v447_v61 = vpop.permute.xlu1 %446  ;;  %v444_v62 = vpop.permute.xlu0 %443 }
  0xea   : > { %7472 = vst [vmem:[#allocation4_spill] sm:$0xff] %v5110_v60  ;;  %vm543_vm1 = vcmp.eq.s32.totalorder %v4976_v6, %v447_v61  ;;  %vm542_vm2 = vcmp.eq.s32.totalorder %v4976_v6, %v444_v62  ;;  %4550 = vmatprep.mubr.msk.bf16.mxu0 %vm744_vm4, %v5110_v60 }
  0xeb   : > { %v4076_v63 = vsel %vm543_vm1, 1.0, %v7392_v11  ;;  %v4075_v0 = vsel %vm542_vm2, 1.0, %v7392_v11 }
  0xec   : > { %v5118_v1 = vpack.c.bf16 %v4076_v63, %v4075_v0 }
  0xed   : > { %v453_v2 = vpop.permute.xlu1 %452  ;;  %v450_v3 = vpop.permute.xlu0 %449 }
  0xee   : > { %7473 = vst [vmem:[#allocation5_spill] sm:$0xff] %v5118_v1  ;;  %vm545_vm3 = vcmp.eq.s32.totalorder %v4976_v6, %v453_v2  ;;  %vm544_vm5 = vcmp.eq.s32.totalorder %v4976_v6, %v450_v3 }
  0xef   : > { %v4078_v4 = vsel %vm545_vm3, 1.0, %v7392_v11  ;;  %v4077_v5 = vsel %vm544_vm5, 1.0, %v7392_v11  ;;  %4551 = vmatmul.mubr.msk.bf16.gmra.mxu0 %vm744_vm4, %v5118_v1  ;;  %vm207_vm5 = vcmp.lt.s32.totalorder %v4976_v6, 3 }
  0xf0   : > { %v5126_v7 = vpack.c.bf16 %v4078_v4, %v4077_v5 }
  0xf1   : > { %v459_v8 = vpop.permute.xlu1 %458  ;;  %v456_v9 = vpop.permute.xlu0 %455 }
  0xf2   : > { %vm547_vm6 = vcmp.eq.s32.totalorder %v4976_v6, %v459_v8  ;;  %vm546_vm7 = vcmp.eq.s32.totalorder %v4976_v6, %v456_v9  ;;  %4554 = vmatprep.mubr.msk.bf16.mxu0 %vm744_vm4, %v5126_v7 }
  0xf3   : > { %v4080_v10 = vsel %vm547_vm6, 1.0, %v7392_v11  ;;  %v4079_v12 = vsel %vm546_vm7, 1.0, %v7392_v11  ;;  %vm210_vm6 = vcmp.eq.s32.totalorder %v4976_v6, 6  ;;  %vm213_vm7 = vcmp.eq.s32.totalorder %v4976_v6, 7 }
  0xf4   : > { %v5134_v13 = vpack.c.bf16 %v4080_v10, %v4079_v12 }
  0xf5   : > { %v465_v14 = vpop.permute.xlu1 %464  ;;  %v462_v15 = vpop.permute.xlu0 %461 }
  0xf6   : > { %vm549_vm8 = vcmp.eq.s32.totalorder %v4976_v6, %v465_v14  ;;  %vm548_vm9 = vcmp.eq.s32.totalorder %v4976_v6, %v462_v15 }
  0xf7   : > { %v4082_v16 = vsel %vm549_vm8, 1.0, %v7392_v11  ;;  %v4081_v17 = vsel %vm548_vm9, 1.0, %v7392_v11  ;;  %4555 = vmatmul.mubr.msk.bf16.gmra.mxu0 %vm744_vm4, %v5134_v13 }
  0xf8   : > { %v5142_v18 = vpack.c.bf16 %v4082_v16, %v4081_v17 }
  0xf9   : > { %v471_v19 = vpop.permute.xlu1 %470  ;;  %v468_v20 = vpop.permute.xlu0 %467 }
  0xfa   : > { %vm551_vm10 = vcmp.eq.s32.totalorder %v4976_v6, %v471_v19  ;;  %vm550_vm11 = vcmp.eq.s32.totalorder %v4976_v6, %v468_v20  ;;  %4558 = vmatprep.mubr.msk.bf16.mxu0 %vm744_vm4, %v5142_v18 }
  0xfb   : > { %v4084_v21 = vsel %vm551_vm10, 1.0, %v7392_v11  ;;  %v4083_v22 = vsel %vm550_vm11, 1.0, %v7392_v11 }
  0xfc   : > { %v5150_v23 = vpack.c.bf16 %v4084_v21, %v4083_v22 }
  0xfd   : > { %v477_v24 = vpop.permute.xlu1 %476  ;;  %v474_v25 = vpop.permute.xlu0 %473 }
  0xfe   : > { %vm553_vm12 = vcmp.eq.s32.totalorder %v4976_v6, %v477_v24  ;;  %vm552_vm13 = vcmp.eq.s32.totalorder %v4976_v6, %v474_v25 }
  0xff   : > { %v4086_v26 = vsel %vm553_vm12, 1.0, %v7392_v11  ;;  %v4085_v27 = vsel %vm552_vm13, 1.0, %v7392_v11  ;;  %4559 = vmatmul.mubr.msk.bf16.gmra.mxu0 %vm744_vm4, %v5150_v23 }
 0x100   : > { %v5158_v28 = vpack.c.bf16 %v4086_v26, %v4085_v27 }
 0x101   : > { %v483_v29 = vpop.permute.xlu1 %482  ;;  %v480_v31 = vpop.permute.xlu0 %479 }
 0x102   : > { %vm555_vm14 = vcmp.eq.s32.totalorder %v4976_v6, %v483_v29  ;;  %vm554_vm15 = vcmp.eq.s32.totalorder %v4976_v6, %v480_v31  ;;  %4562 = vmatprep.mubr.msk.bf16.mxu0 %vm744_vm4, %v5158_v28  ;;  %v5255_v29 = vsel %vm207_vm5, 1.0, %v7392_v11 }
 0x103   : > { %v4088_v32 = vsel %vm555_vm14, 1.0, %v7392_v11  ;;  %v4087_v33 = vsel %vm554_vm15, 1.0, %v7392_v11  ;;  %7476 = vst [vmem:[#allocation8_spill] sm:$0xff] %v5255_v29 }
 0x104   : > { %v5166_v34 = vpack.c.bf16 %v4088_v32, %v4087_v33 }
 0x105   : > { %v489_v36 = vpop.permute.xlu1 %488  ;;  %v486_v37 = vpop.permute.xlu0 %485 }
 0x106   : > { %vm557_vm0 = vcmp.eq.s32.totalorder %v4976_v6, %v489_v36  ;;  %vm556_vm1 = vcmp.eq.s32.totalorder %v4976_v6, %v486_v37 }
 0x107   : > { %v4090_v38 = vsel %vm557_vm0, 1.0, %v7392_v11  ;;  %v4089_v39 = vsel %vm556_vm1, 1.0, %v7392_v11  ;;  %4563 = vmatmul.mubr.msk.bf16.gmra.mxu0 %vm744_vm4, %v5166_v34 }
 0x108   : > { %v5174_v41 = vpack.c.bf16 %v4090_v38, %v4089_v39 }
 0x109   : > { %v495_v42 = vpop.permute.xlu1 %494  ;;  %v492_v43 = vpop.permute.xlu0 %491 }
 0x10a   : > { %vm559_vm2 = vcmp.eq.s32.totalorder %v4976_v6, %v495_v42  ;;  %vm558_vm3 = vcmp.eq.s32.totalorder %v4976_v6, %v492_v43  ;;  %4566 = vmatprep.mubr.msk.bf16.mxu0 %vm744_vm4, %v5174_v41 }
 0x10b   : > { %v4092_v44 = vsel %vm559_vm2, 1.0, %v7392_v11  ;;  %v4091_v46 = vsel %vm558_vm3, 1.0, %v7392_v11 }
 0x10c   : > { %v5182_v47 = vpack.c.bf16 %v4092_v44, %v4091_v46 }
 0x10e   : > { %7474 = vst [vmem:[#allocation6_spill] sm:$0xff] %v5182_v47 }
 0x10f   : > { %4567 = vmatmul.mubr.msk.bf16.gmra.mxu0 %vm744_vm4, %v5182_v47 }
 0x157   : > { %v5186_v48 = vpop.f32.mrf.mxu0 }
 0x159   : > { %v5188_v49 = vpop.f32.mrf.mxu0 }
 0x15b   : > { %v5190_v51 = vpop.f32.mrf.mxu0 }
 0x15d   : > { %v5192_v52 = vpop.f32.mrf.mxu0 }
 0x15f   : > { %v5194_v53 = vpop.f32.mrf.mxu0 }
 0x161   : > { %v5196_v54 = vpop.f32.mrf.mxu0 }
 0x163   : > { %v5198_v56 = vpop.f32.mrf.mxu0 }
 0x165   : > { %v5200_v57 = vpop.f32.mrf.mxu0 }
 0x167   : > { %v5202_v58 = vpop.f32.mrf.mxu0 }
 0x169   : > { %v5204_v59 = vpop.f32.mrf.mxu0 }
 0x16b   : > { %v5206_v61 = vpop.f32.mrf.mxu0 }
 0x16d   : > { %v5208_v62 = vpop.f32.mrf.mxu0 }
 0x16f   : > { %v5210_v63 = vpop.f32.mrf.mxu0 }
 0x171   : > { %v5212_v0 = vpop.f32.mrf.mxu0 }
 0x173   : > { %v5214_v2 = vpop.f32.mrf.mxu0 }
 0x175   : > { %v5216_v3 = vpop.f32.mrf.mxu0 }
 0x177   : > { %v5218_v4 = vpop.f32.mrf.mxu0 }
 0x179   : > { %v5220_v5 = vpop.f32.mrf.mxu0 }
 0x17b   : > { %v5222_v8 = vpop.f32.mrf.mxu0 }
 0x17d   : > { %v5224_v9 = vpop.f32.mrf.mxu0 }
 0x17f   : > { %v5226_v10 = vpop.f32.mrf.mxu0 }
 0x181   : > { %v5228_v12 = vpop.f32.mrf.mxu0 }
 0x183   : > { %v5230_v14 = vpop.f32.mrf.mxu0 }
 0x185   : > { %v5232_v15 = vpop.f32.mrf.mxu0 }
 0x187   : > { %v5234_v16 = vpop.f32.mrf.mxu0 }
 0x189   : > { %v5236_v17 = vpop.f32.mrf.mxu0 }
 0x18b   : > { %v5238_v19 = vpop.f32.mrf.mxu0 }
 0x18d   : > { %v5240_v20 = vpop.f32.mrf.mxu0 }
 0x18f   : > { %v5242_v21 = vpop.f32.mrf.mxu0 }
 0x191   : > { %v5244_v22 = vpop.f32.mrf.mxu0 }
 0x193   : > { %v5246_v24 = vpop.f32.mrf.mxu0 }
 0x195   : > { %v5248_v25 = vpop.f32.mrf.mxu0 }
 0x197   : > { %v4540_v26 = vpop.f32.mrf.mxu0 }
 0x198   : > { %v5252_v27 = vsub.f32 %v4540_v26, %v5186_v48 }
 0x199   : > { %v1003_v31 = vpop.f32.mrf.mxu0 }
 0x19a   : > { %7475 = vst [vmem:[#allocation7_spill] sm:$0xff] %v5252_v27  ;;  %v5258_v32 = vsub.f32 %v1003_v31, %v5188_v49  ;;  %v1202_v33 = vmul.f32 %v5252_v27, %v5252_v27 }
 0x19b   : > { %v4541_v36 = vpop.f32.mrf.mxu0 }
 0x19c   : > { %7477 = vst [vmem:[#allocation9_spill] sm:$0xff] %v5258_v32  ;;  %v5263_v37 = vsub.f32 %v4541_v36, %v5190_v51  ;;  %v1234_v38 = vmul.f32 %v5255_v29, %v1202_v33  ;;  %v1200_v39 = vmul.f32 %v5258_v32, %v5258_v32 }
 0x19d   : > { %v1006_v42 = vpop.f32.mrf.mxu0 }
 0x19e   : > { %7478 = vst [vmem:[#allocation10_spill] sm:$0xff] %v5263_v37  ;;  %v1130_v43 = vadd.f32 %v1006_v42, %v1003_v31  ;;  %v5269_v44 = vsub.f32 %v1006_v42, %v5192_v52  ;;  %1268 = vadd.xlane.f32.xlu1 %v1234_v38  ;;  %v1203_v46 = vmul.f32 %v5263_v37, %v5263_v37 }
 0x19f   : > { %v4544_v11 = vpop.f32.mrf.mxu0  ;;  %v1232_v27 = vmul.f32 %v5255_v29, %v1200_v39 }
 0x1a0   : > { %7479 = vst [vmem:[#allocation11_spill] sm:$0xff] %v5269_v44  ;;  %v1131_v1 = vadd.f32 %v4540_v26, %v1130_v43  ;;  %v5275_v60 = vsub.f32 %v4544_v11, %v5194_v53  ;;  %v1235_v33 = vmul.f32 %v5255_v29, %v1203_v46  ;;  %v1201_v32 = vmul.f32 %v5269_v44, %v5269_v44 }
 0x1a1   : > { %v1019_v31 = vpop.f32.mrf.mxu0 }
 0x1a2   : > { %7480 = vst [vmem:[#allocation12_spill] sm:$0xff] %v5275_v60  ;;  %v1132_v55 = vadd.f32 %v4541_v36, %v1131_v1  ;;  %v5281_v42 = vsub.f32 %v1019_v31, %v5196_v54  ;;  %1264 = vadd.xlane.f32.xlu1 %v1232_v27  ;;  %1270 = vadd.xlane.f32.xlu0 %v1235_v33 }
 0x1a3   : > { %v4545_v38 = vpop.f32.mrf.mxu0  ;;  %v1206_v39 = vmul.f32 %v5275_v60, %v5275_v60  ;;  %v1233_v46 = vmul.f32 %v5255_v29, %v1201_v32 }
 0x1a4   : > { %7481 = vst [vmem:[#allocation13_spill] sm:$0xff] %v5281_v42  ;;  %v1133_v26 = vadd.f32 %v1132_v55, %v1019_v31  ;;  %v5286_v43 = vsub.f32 %v4545_v38, %v5198_v56  ;;  %v1204_v1 = vmul.f32 %v5281_v42, %v5281_v42 }
 0x1a5   : > { %v1022_v37 = vpop.f32.mrf.mxu0  ;;  %v1238_v44 = vmul.f32 %v5255_v29, %v1206_v39 }
 0x1a6   : > { %7482 = vst [vmem:[#allocation14_spill] sm:$0xff] %v5286_v43  ;;  %v1134_v36 = vadd.f32 %v1133_v26, %v1022_v37  ;;  %v5293_v27 = vsub.f32 %v1022_v37, %v5200_v57  ;;  %1266 = vadd.xlane.f32.xlu0 %v1233_v46  ;;  %v1207_v33 = vmul.f32 %v5286_v43, %v5286_v43 }
 0x1a7   : > { %1276 = vadd.xlane.f32.xlu1 %v1238_v44  ;;  %v4548_v55 = vpop.f32.mrf.mxu0  ;;  %v1236_v26 = vmul.f32 %v5255_v29, %v1204_v1 }
 0x1a8   : > { %7483 = vst [vmem:[#allocation15_spill] sm:$0xff] %v5293_v27  ;;  %v1135_v31 = vadd.f32 %v4544_v11, %v1134_v36  ;;  %v5298_v60 = vsub.f32 %v4548_v55, %v5202_v58  ;;  %v1239_v32 = vmul.f32 %v5255_v29, %v1207_v33  ;;  %v1205_v39 = vmul.f32 %v5293_v27, %v5293_v27 }
 0x1a9   : > { %v1035_v42 = vpop.f32.mrf.mxu0 }
 0x1aa   : > { %7484 = vst [vmem:[#allocation16_spill] sm:$0xff] %v5298_v60  ;;  %v1136_v37 = vadd.f32 %v4545_v38, %v1135_v31  ;;  %v5305_v46 = vsub.f32 %v1035_v42, %v5204_v59  ;;  %1278 = vadd.xlane.f32.xlu0 %v1239_v32  ;;  %v1210_v44 = vmul.f32 %v5298_v60, %v5298_v60 }
 0x1ab   : > { %1272 = vadd.xlane.f32.xlu1 %v1236_v26  ;;  %v4549_v11 = vpop.f32.mrf.mxu0  ;;  %v1237_v33 = vmul.f32 %v5255_v29, %v1205_v39 }
 0x1ac   : > { %7485 = vst [vmem:[#allocation17_spill] sm:$0xff] %v5305_v46  ;;  %v1137_v36 = vadd.f32 %v1136_v37, %v1035_v42  ;;  %v5310_v43 = vsub.f32 %v4549_v11, %v5206_v61  ;;  %v1242_v27 = vmul.f32 %v5255_v29, %v1210_v44  ;;  %v1208_v38 = vmul.f32 %v5305_v46, %v5305_v46 }
 0x1ad   : > { %v1038_v50 = vpop.f32.mrf.mxu0 }
 0x1ae   : > { %7486 = vst [vmem:[#allocation18_spill] sm:$0xff] %v5310_v43  ;;  %v1138_v1 = vadd.f32 %v1137_v36, %v1038_v50  ;;  %v5317_v31 = vsub.f32 %v1038_v50, %v5208_v62  ;;  %1274 = vadd.xlane.f32.xlu0 %v1237_v33  ;;  %v1211_v32 = vmul.f32 %v5310_v43, %v5310_v43 }
 0x1af   : > { %1284 = vadd.xlane.f32.xlu1 %v1242_v27  ;;  %v4552_v42 = vpop.f32.mrf.mxu0  ;;  %v1240_v36 = vmul.f32 %v5255_v29, %v1208_v38 }
 0x1b0   : > { %7487 = vst [vmem:[#allocation19_spill] sm:$0xff] %v5317_v31  ;;  %v1139_v26 = vadd.f32 %v4548_v55, %v1138_v1  ;;  %v5322_v37 = vsub.f32 %v4552_v42, %v5210_v63  ;;  %v1243_v39 = vmul.f32 %v5255_v29, %v1211_v32  ;;  %v1209_v44 = vmul.f32 %v5317_v31, %v5317_v31 }
 0x1b1   : > { %v1051_v46 = vpop.f32.mrf.mxu0 }
 0x1b2   : > { %7488 = vst [vmem:[#allocation20_spill] sm:$0xff] %v5322_v37  ;;  %v1140_v50 = vadd.f32 %v4549_v11, %v1139_v26  ;;  %v5329_v33 = vsub.f32 %v1051_v46, %v5212_v0  ;;  %1286 = vadd.xlane.f32.xlu0 %v1243_v39  ;;  %v1241_v55 = vmul.f32 %v5255_v29, %v1209_v44 }
 0x1b3   : > { %1280 = vadd.xlane.f32.xlu1 %v1240_v36  ;;  %v4553_v27 = vpop.f32.mrf.mxu0  ;;  %v1214_v31 = vmul.f32 %v5322_v37, %v5322_v37 }
 0x1b4   : > { %7489 = vst [vmem:[#allocation21_spill] sm:$0xff] %v5329_v33  ;;  %v1141_v1 = vadd.f32 %v1140_v50, %v1051_v46  ;;  %v5333_v43 = vsub.f32 %v4553_v27, %v5214_v2  ;;  %v1212_v32 = vmul.f32 %v5329_v33, %v5329_v33 }
 0x1b5   : > { %v1054_v38 = vpop.f32.mrf.mxu0  ;;  %v1246_v60 = vmul.f32 %v5255_v29, %v1214_v31 }
 0x1b6   : > { %7490 = vst [vmem:[#allocation22_spill] sm:$0xff] %v5333_v43  ;;  %v1142_v11 = vadd.f32 %v1141_v1, %v1054_v38  ;;  %1282 = vadd.xlane.f32.xlu0 %v1241_v55  ;;  %v1244_v26 = vmul.f32 %v5255_v29, %v1212_v32  ;;  %v5341_v39 = vsub.f32 %v1054_v38, %v5216_v3 }
 0x1b7   : > { %v4556_v36 = vpop.f32.mrf.mxu0  ;;  %v1215_v46 = vmul.f32 %v5333_v43, %v5333_v43 }
 0x1b8   : > { %7491 = vst [vmem:[#allocation23_spill] sm:$0xff] %v5341_v39  ;;  %v1143_v44 = vadd.f32 %v4552_v42, %v1142_v11  ;;  %v5346_v50 = vsub.f32 %v4556_v36, %v5218_v4  ;;  %1288 = vadd.xlane.f32.xlu1 %v1244_v26  ;;  %v1213_v42 = vmul.f32 %v5341_v39, %v5341_v39 }
 0x1b9   : > { %v1067_v33 = vpop.f32.mrf.mxu0  ;;  %v1247_v38 = vmul.f32 %v5255_v29, %v1215_v46 }
 0x1ba   : > { %7492 = vst [vmem:[#allocation24_spill] sm:$0xff] %v5346_v50  ;;  %v1144_v37 = vadd.f32 %v4553_v27, %v1143_v44  ;;  %v5350_v55 = vsub.f32 %v1067_v33, %v5220_v5  ;;  %1292 = vadd.xlane.f32.xlu0 %v1246_v60  ;;  %v1218_v1 = vmul.f32 %v5346_v50, %v5346_v50 }
 0x1bb   : > { %v4557_v32 = vpop.f32.mrf.mxu0 }
 0x1bc   : > { %7493 = vst [vmem:[#allocation25_spill] sm:$0xff] %v5350_v55  ;;  %v1145_v11 = vadd.f32 %v1144_v37, %v1067_v33  ;;  %v5358_v26 = vsub.f32 %v4557_v32, %v5222_v8  ;;  %v1250_v31 = vmul.f32 %v5255_v29, %v1218_v1  ;;  %v1216_v27 = vmul.f32 %v5350_v55, %v5350_v55 }
 0x1bd   : > { %v1070_v44 = vpop.f32.mrf.mxu0  ;;  %v1245_v1 = vmul.f32 %v5255_v29, %v1213_v42 }
 0x1be   : > { %7494 = vst [vmem:[#allocation26_spill] sm:$0xff] %v5358_v26  ;;  %v1146_v60 = vadd.f32 %v1145_v11, %v1070_v44  ;;  %1294 = vadd.xlane.f32.xlu0 %v1247_v38  ;;  %1300 = vadd.xlane.f32.xlu1 %v1250_v31  ;;  %v5364_v50 = vsub.f32 %v1070_v44, %v5224_v9 }
 0x1bf   : > { %v4560_v46 = vpop.f32.mrf.mxu0  ;;  %v1219_v39 = vmul.f32 %v5358_v26, %v5358_v26  ;;  %v1248_v43 = vmul.f32 %v5255_v29, %v1216_v27 }
 0x1c0   : > { %7495 = vst [vmem:[#allocation27_spill] sm:$0xff] %v5364_v50  ;;  %v1147_v37 = vadd.f32 %v4556_v36, %v1146_v60  ;;  %v5369_v33 = vsub.f32 %v4560_v46, %v5226_v10  ;;  %v1217_v44 = vmul.f32 %v5364_v50, %v5364_v50 }
 0x1c1   : > { %v1083_v55 = vpop.f32.mrf.mxu0  ;;  %v1251_v36 = vmul.f32 %v5255_v29, %v1219_v39 }
 0x1c2   : > { %7496 = vst [vmem:[#allocation28_spill] sm:$0xff] %v5369_v33  ;;  %v1148_v47 = vadd.f32 %v4557_v32, %v1147_v37  ;;  %v5374_v38 = vsub.f32 %v1083_v55, %v5228_v12  ;;  %1290 = vadd.xlane.f32.xlu0 %v1245_v1  ;;  %1296 = vadd.xlane.f32.xlu1 %v1248_v43 }
 0x1c3   : > { %v1222_v11 = vmul.f32 %v5369_v33, %v5369_v33  ;;  %v4561_v31 = vpop.f32.mrf.mxu0 }
 0x1c4   : > { %7497 = vst [vmem:[#allocation29_spill] sm:$0xff] %v5374_v38  ;;  %v1149_v60 = vadd.f32 %v1148_v47, %v1083_v55  ;;  %v5382_v42 = vsub.f32 %v4561_v31, %v5230_v14  ;;  %v1220_v27 = vmul.f32 %v5374_v38, %v5374_v38 }
 0x1c5   : > { %v1254_v32 = vmul.f32 %v5255_v29, %v1222_v11  ;;  %v1086_v37 = vpop.f32.mrf.mxu0  ;;  %v1249_v11 = vmul.f32 %v5255_v29, %v1217_v44 }
 0x1c6   : > { %7498 = vst [vmem:[#allocation30_spill] sm:$0xff] %v5382_v42  ;;  %v1150_v43 = vadd.f32 %v1149_v60, %v1086_v37  ;;  %1302 = vadd.xlane.f32.xlu0 %v1251_v36  ;;  %v5388_v1 = vsub.f32 %v1086_v37, %v5232_v15  ;;  %v1223_v50 = vmul.f32 %v5382_v42, %v5382_v42 }
 0x1c7   : > { %1308 = vadd.xlane.f32.xlu1 %v1254_v32  ;;  %v4564_v39 = vpop.f32.mrf.mxu0  ;;  %v1252_v26 = vmul.f32 %v5255_v29, %v1220_v27 }
 0x1c8   : > { %7499 = vst [vmem:[#allocation31_spill] sm:$0xff] %v5388_v1  ;;  %v1151_v47 = vadd.f32 %v4560_v46, %v1150_v43  ;;  %v5393_v55 = vsub.f32 %v4564_v39, %v5234_v16  ;;  %v1255_v46 = vmul.f32 %v5255_v29, %v1223_v50  ;;  %v1221_v37 = vmul.f32 %v5388_v1, %v5388_v1 }
 0x1c9   : > { %v1099_v38 = vpop.f32.mrf.mxu0 }
 0x1ca   : > { %7500 = vst [vmem:[#allocation32_spill] sm:$0xff] %v5393_v55  ;;  %v1152_v33 = vadd.f32 %v4561_v31, %v1151_v47  ;;  %v5398_v36 = vsub.f32 %v1099_v38, %v5236_v17  ;;  %1298 = vadd.xlane.f32.xlu0 %v1249_v11  ;;  %v1226_v60 = vmul.f32 %v5393_v55, %v5393_v55 }
 0x1cb   : > { %1304 = vadd.xlane.f32.xlu1 %v1252_v26  ;;  %v4565_v32 = vpop.f32.mrf.mxu0  ;;  %v1253_v1 = vmul.f32 %v5255_v29, %v1221_v37 }
 0x1cc   : > { %7501 = vst [vmem:[#allocation33_spill] sm:$0xff] %v5398_v36  ;;  %v1153_v43 = vadd.f32 %v1152_v33, %v1099_v38  ;;  %v5406_v44 = vsub.f32 %v4565_v32, %v5238_v19  ;;  %v1258_v31 = vmul.f32 %v5255_v29, %v1226_v60  ;;  %v1224_v27 = vmul.f32 %v5398_v36, %v5398_v36 }
 0x1cd   : > { %v1102_v47 = vpop.f32.mrf.mxu0 }
 0x1ce   : > { %7502 = vst [vmem:[#allocation34_spill] sm:$0xff] %v5406_v44  ;;  %v1154_v26 = vadd.f32 %v1153_v43, %v1102_v47  ;;  %1310 = vadd.xlane.f32.xlu0 %v1255_v46  ;;  %v5412_v11 = vsub.f32 %v1102_v47, %v5240_v20  ;;  %v1256_v33 = vmul.f32 %v5255_v29, %v1224_v27 }
 0x1cf   : > { %1316 = vadd.xlane.f32.xlu1 %v1258_v31  ;;  %v4568_v50 = vpop.f32.mrf.mxu0  ;;  %v1227_v38 = vmul.f32 %v5406_v44, %v5406_v44 }
 0x1d0   : > { %7503 = vst [vmem:[#allocation35_spill] sm:$0xff] %v5412_v11  ;;  %v1155_v42 = vadd.f32 %v4564_v39, %v1154_v26  ;;  %v5422_v46 = vsub.f32 %v4568_v50, %v5242_v21  ;;  %v1225_v39 = vmul.f32 %v5412_v11, %v5412_v11 }
 0x1d1   : > { %v1115_v60 = vpop.f32.mrf.mxu0  ;;  %v1259_v27 = vmul.f32 %v5255_v29, %v1227_v38 }
 0x1d2   : > { %v1156_v55 = vadd.f32 %v4565_v32, %v1155_v42  ;;  %v5419_v36 = vsub.f32 %v1115_v60, %v5244_v22  ;;  %1306 = vadd.xlane.f32.xlu0 %v1253_v1  ;;  %7505 = vst [vmem:[#allocation37_spill] sm:$0xff] %v5422_v46  ;;  %v1230_v38 = vmul.f32 %v5422_v46, %v5422_v46 }
 0x1d3   : > { %1312 = vadd.xlane.f32.xlu1 %v1256_v33  ;;  %v4569_v43 = vpop.f32.mrf.mxu0 }
 0x1d4   : > { %7504 = vst [vmem:[#allocation36_spill] sm:$0xff] %v5419_v36  ;;  %v1157_v37 = vadd.f32 %v1156_v55, %v1115_v60  ;;  %v5427_v31 = vsub.f32 %v4569_v43, %v5246_v24  ;;  %v1228_v42 = vmul.f32 %v5419_v36, %v5419_v36  ;;  %v1257_v55 = vmul.f32 %v5255_v29, %v1225_v39 }
 0x1d5   : > { %v1118_v32 = vpop.f32.mrf.mxu0 }
 0x1d6   : > { %7506 = vst [vmem:[#allocation38_spill] sm:$0xff] %v5427_v31  ;;  %1318 = vadd.xlane.f32.xlu0 %v1259_v27  ;;  %v1260_v1 = vmul.f32 %v5255_v29, %v1228_v42  ;;  %v1231_v47 = vmul.f32 %v5427_v31, %v5427_v31  ;;  %v1158_v26 = vadd.f32 %v1157_v37, %v1118_v32 }
 0x1d7   : > { %v5436_v33 = vsub.f32 %v1118_v32, %v5248_v25  ;;  %v1262_v27 = vmul.f32 %v5255_v29, %v1230_v38 }
 0x1d8   : > { %1320 = vadd.xlane.f32.xlu1 %v1260_v1  ;;  %v1263_v60 = vmul.f32 %v5255_v29, %v1231_v47  ;;  %v1159_v11 = vadd.f32 %v4568_v50, %v1158_v26 }
 0x1d9   : > { %v1229_v42 = vmul.f32 %v5436_v33, %v5436_v33 }
 0x1da   : > { %1314 = vadd.xlane.f32.xlu0 %v1257_v55  ;;  %v1160_v37 = vadd.f32 %v4569_v43, %v1159_v11 }
 0x1db   : > { %v1261_v32 = vmul.f32 %v5255_v29, %v1229_v42 }
 0x1dc   : > { %1326 = vadd.xlane.f32.xlu1 %v1263_v60  ;;  %v1161_v1 = vrot.slane %v1160_v37, 4 }
 0x1de   : > { %1324 = vadd.xlane.f32.xlu0 %v1262_v27  ;;  %v1162_v39 = vadd.f32 %v1161_v1, %v1160_v37 }
 0x1e0   : > { %v1163_v44 = vrot.slane %v1162_v39, 2 }
 0x1e2   : > { %1322 = vadd.xlane.f32.xlu0 %v1261_v32  ;;  %v1164_v36 = vadd.f32 %v1163_v44, %v1162_v39 }
 0x1e4   : > { %v1165_v46 = vrot.slane %v1164_v36, 1 }
 0x1e6   : > { %v1166_v55 = vadd.f32 %v1165_v46, %v1164_v36 }
 0x1e8   : > { %v5446_v31 = vmul.f32 0.00390625, %v1166_v55 }
 0x1ea   : > { %v1583_v50 = vsub.f32 %v5246_v24, %v5446_v31  ;;  %v1582_v47 = vsub.f32 %v5242_v21, %v5446_v31  ;;  %v1580_v11 = vsub.f32 %v5244_v22, %v5446_v31  ;;  %v1566_v26 = vsub.f32 %v5210_v63, %v5446_v31 }
 0x1eb   : > { %v1564_v44 = vsub.f32 %v5212_v0, %v5446_v31  ;;  %v1567_v60 = vsub.f32 %v5214_v2, %v5446_v31  ;;  %v1578_v21 = vsub.f32 %v5234_v16, %v5446_v31  ;;  %v1581_v63 = vsub.f32 %v5248_v25, %v5446_v31 }
 0x1ec   : > { %v1615_v43 = vand.u32 2147483647, %v1583_v50  ;;  %v1614_v38 = vand.u32 2147483647, %v1582_v47  ;;  %v1612_v36 = vand.u32 2147483647, %v1580_v11  ;;  %v1562_v2 = vsub.f32 %v5202_v58, %v5446_v31 }
 0x1ed   : > { %v1598_v24 = vand.u32 2147483647, %v1566_v26  ;;  %v1596_v42 = vand.u32 2147483647, %v1564_v44  ;;  %v1599_v32 = vand.u32 2147483647, %v1567_v60  ;;  %v1565_v50 = vsub.f32 %v5216_v3, %v5446_v31 }
 0x1ee   : > { %v1647_v46 = vmul.f32 0.0625, %v1615_v43  ;;  %v1646_v27 = vmul.f32 0.0625, %v1614_v38  ;;  %v1644_v22 = vmul.f32 0.0625, %v1612_v36  ;;  %v1610_v16 = vand.u32 2147483647, %v1578_v21 }
 0x1ef   : > { %v1630_v1 = vmul.f32 0.0625, %v1598_v24  ;;  %v1628_v39 = vmul.f32 0.0625, %v1596_v42  ;;  %v1613_v25 = vand.u32 2147483647, %v1581_v63  ;;  %v1631_v47 = vmul.f32 0.0625, %v1599_v32 }
 0x1f0   : > { %v1679_v37 = vmul.f32 %v5255_v29, %v1647_v46  ;;  %v1678_v0 = vmul.f32 %v5255_v29, %v1646_v27  ;;  %v1676_v55 = vmul.f32 %v5255_v29, %v1644_v22  ;;  %v1576_v43 = vsub.f32 %v5236_v17, %v5446_v31 }
 0x1f1   : > { %v1662_v11 = vmul.f32 %v5255_v29, %v1630_v1  ;;  %v1594_v26 = vand.u32 2147483647, %v1562_v2  ;;  %v1642_v58 = vmul.f32 0.0625, %v1610_v16  ;;  %v1660_v38 = vmul.f32 %v5255_v29, %v1628_v39 }
 0x1f2   : > { %1740 = vrot.lane.b32.xlu1 %v1678_v0, %s4865_s23  ;;  %v1579_v44 = vsub.f32 %v5238_v19, %v5446_v31  ;;  %v1597_v36 = vand.u32 2147483647, %v1565_v50  ;;  %v1645_v3 = vmul.f32 0.0625, %v1613_v25  ;;  %v1663_v46 = vmul.f32 %v5255_v29, %v1631_v47 }
 0x1f3   : > { %v1560_v60 = vsub.f32 %v5204_v59, %v5446_v31  ;;  %v1608_v24 = vand.u32 2147483647, %v1576_v43  ;;  %v1626_v17 = vmul.f32 0.0625, %v1594_v26  ;;  %v1674_v27 = vmul.f32 %v5255_v29, %v1642_v58 }
 0x1f4   : > { %v1563_v21 = vsub.f32 %v5206_v61, %v5446_v31  ;;  %v1611_v42 = vand.u32 2147483647, %v1579_v44  ;;  %v1629_v19 = vmul.f32 0.0625, %v1597_v36  ;;  %v1677_v22 = vmul.f32 %v5255_v29, %v1645_v3 }
 0x1f5   : > { %v1592_v63 = vand.u32 2147483647, %v1560_v60  ;;  %v1640_v59 = vmul.f32 0.0625, %v1608_v24  ;;  %v1658_v32 = vmul.f32 %v5255_v29, %v1626_v17  ;;  %v1577_v1 = vsub.f32 %v5240_v20, %v5446_v31 }
 0x1f6   : > { %1708 = vrot.lane.b32.xlu1 %v1662_v11, %s4865_s23  ;;  %v1595_v0 = vand.u32 2147483647, %v1563_v21  ;;  %v1643_v61 = vmul.f32 0.0625, %v1611_v42  ;;  %v1661_v2 = vmul.f32 %v5255_v29, %v1629_v19  ;;  %v1558_v16 = vsub.f32 %v5194_v53, %v5446_v31 }
 0x1f7   : > { %v1561_v50 = vsub.f32 %v5208_v62, %v5446_v31  ;;  %v1609_v25 = vand.u32 2147483647, %v1577_v1  ;;  %v1572_v11 = vsub.f32 %v5228_v12, %v5446_v31  ;;  %v1575_v58 = vsub.f32 %v5230_v14, %v5446_v31 }
 0x1f8   : > { %1742 = vrot.lane.b32.xlu0 %v1679_v37, %s4865_s23  ;;  %v1574_v37 = vsub.f32 %v5226_v10, %v5446_v31  ;;  %v1624_v10 = vmul.f32 0.0625, %v1592_v63  ;;  %v1627_v20 = vmul.f32 0.0625, %v1595_v0  ;;  %v1675_v47 = vmul.f32 %v5255_v29, %v1643_v61 }
 0x1f9   : > { %v1590_v43 = vand.u32 2147483647, %v1558_v16  ;;  %v1641_v62 = vmul.f32 0.0625, %v1609_v25  ;;  %v1556_v36 = vsub.f32 %v5196_v54, %v5446_v31  ;;  %v1604_v3 = vand.u32 2147483647, %v1572_v11 }
 0x1fa   : > { %1710 = vrot.lane.b32.xlu1 %v1663_v46, %s4865_s23  ;;  %v1606_v39 = vand.u32 2147483647, %v1574_v37  ;;  %v1656_v26 = vmul.f32 %v5255_v29, %v1624_v10  ;;  %v1659_v44 = vmul.f32 %v5255_v29, %v1627_v20  ;;  %v1559_v14 = vsub.f32 %v5198_v56, %v5446_v31 }
 0x1fb   : > { %v1622_v12 = vmul.f32 0.0625, %v1590_v43  ;;  %v1607_v24 = vand.u32 2147483647, %v1575_v58  ;;  %v1570_v54 = vsub.f32 %v5218_v4, %v5446_v31  ;;  %v1588_v21 = vand.u32 2147483647, %v1556_v36 }
 0x1fc   : > { %1736 = vrot.lane.b32.xlu0 %v1676_v55, %s4865_s23  ;;  %v1672_v55 = vmul.f32 %v5255_v29, %v1640_v59  ;;  %v1638_v53 = vmul.f32 0.0625, %v1606_v39  ;;  %v1636_v42 = vmul.f32 0.0625, %v1604_v3  ;;  %v1573_v56 = vsub.f32 %v5232_v15, %v5446_v31 }
 0x1fd   : > { %v1654_v19 = vmul.f32 %v5255_v29, %v1622_v12  ;;  %v1591_v63 = vand.u32 2147483647, %v1559_v14  ;;  %v1639_v59 = vmul.f32 0.0625, %v1607_v24  ;;  %v1554_v4 = vsub.f32 %v5186_v48, %v5446_v31 }
 0x1fe   : > { %1738 = vrot.lane.b32.xlu1 %v1677_v22, %s4865_s23  ;;  %v1670_v46 = vmul.f32 %v5255_v29, %v1638_v53  ;;  %v1602_v1 = vand.u32 2147483647, %v1570_v54  ;;  %v1620_v0 = vmul.f32 0.0625, %v1588_v21  ;;  %v1668_v61 = vmul.f32 %v5255_v29, %v1636_v42 }
 0x1ff   : > { %v1557_v15 = vsub.f32 %v5200_v57, %v5446_v31  ;;  %v1605_v16 = vand.u32 2147483647, %v1573_v56  ;;  %v1623_v39 = vmul.f32 0.0625, %v1591_v63  ;;  %v1671_v10 = vmul.f32 %v5255_v29, %v1639_v59 }
 0x200   : > { %1704 = vrot.lane.b32.xlu0 %v1660_v38, %s4865_s23  ;;  %v1593_v38 = vand.u32 2147483647, %v1561_v50  ;;  %v1568_v48 = vsub.f32 %v5220_v5, %v5446_v31  ;;  %v1586_v50 = vand.u32 2147483647, %v1554_v4  ;;  %v1634_v25 = vmul.f32 0.0625, %v1602_v1 }
 0x201   : > { %v1652_v20 = vmul.f32 %v5255_v29, %v1620_v0  ;;  %v1571_v57 = vsub.f32 %v5222_v8, %v5446_v31  ;;  %v1589_v11 = vand.u32 2147483647, %v1557_v15  ;;  %v1637_v43 = vmul.f32 0.0625, %v1605_v16 }
 0x202   : > { %1706 = vrot.lane.b32.xlu1 %v1661_v2, %s4865_s23  ;;  %v1625_v17 = vmul.f32 0.0625, %v1593_v38  ;;  %v1655_v53 = vmul.f32 %v5255_v29, %v1623_v39  ;;  %v1552_v5 = vsub.f32 %v5188_v49, %v5446_v31  ;;  %v1600_v58 = vand.u32 2147483647, %v1568_v48 }
 0x203   : > { %v1618_v38 = vmul.f32 0.0625, %v1586_v50  ;;  %v1555_v8 = vsub.f32 %v5190_v51, %v5446_v31  ;;  %v1603_v36 = vand.u32 2147483647, %v1571_v57  ;;  %v1621_v3 = vmul.f32 0.0625, %v1589_v11 }
 0x204   : > { %1732 = vrot.lane.b32.xlu0 %v1674_v27, %s4865_s23  ;;  %v1673_v27 = vmul.f32 %v5255_v29, %v1641_v62  ;;  %v1666_v62 = vmul.f32 %v5255_v29, %v1634_v25  ;;  %v1669_v12 = vmul.f32 %v5255_v29, %v1637_v43  ;;  %v1584_v49 = vand.u32 2147483647, %v1552_v5 }
 0x205   : > { %v1632_v14 = vmul.f32 0.0625, %v1600_v58  ;;  %v1650_v24 = vmul.f32 %v5255_v29, %v1618_v38  ;;  %v1587_v51 = vand.u32 2147483647, %v1555_v8  ;;  %v1635_v54 = vmul.f32 0.0625, %v1603_v36 }
 0x206   : > { %1734 = vrot.lane.b32.xlu1 %v1675_v47, %s4865_s23  ;;  %v1653_v21 = vmul.f32 %v5255_v29, %v1621_v3  ;;  %v1616_v42 = vmul.f32 0.0625, %v1584_v49  ;;  %v1553_v59 = vsub.f32 %v5192_v52, %v5446_v31 }
 0x207   : > { %v1667_v4 = vmul.f32 %v5255_v29, %v1635_v54 }
 0x208   : > { %1700 = vrot.lane.b32.xlu0 %v1658_v32, %s4865_s23  ;;  %v1657_v32 = vmul.f32 %v5255_v29, %v1625_v17  ;;  %v1648_v1 = vmul.f32 %v5255_v29, %v1616_v42  ;;  %v1585_v15 = vand.u32 2147483647, %v1553_v59 }
 0x20a   : > { %1702 = vrot.lane.b32.xlu1 %v1659_v44, %s4865_s23 }
 0x20c   : > { %1728 = vrot.lane.b32.xlu0 %v1672_v55, %s4865_s23 }
 0x20e   : > { %1730 = vrot.lane.b32.xlu1 %v1673_v27, %s4865_s23  ;;  %v1569_v27 = vsub.f32 %v5224_v9, %v5446_v31  ;;  %v1619_v9 = vmul.f32 0.0625, %v1587_v51 }
 0x210   : > { %1696 = vrot.lane.b32.xlu0 %v1656_v26, %s4865_s23  ;;  %v1651_v39 = vmul.f32 %v5255_v29, %v1619_v9 }
 0x212   : > { %1698 = vrot.lane.b32.xlu1 %v1657_v32, %s4865_s23  ;;  %v1601_v32 = vand.u32 2147483647, %v1569_v27  ;;  %v7507_v27 = vmov 0.0  }
 0x213   : > { %v5658_v51 = vsel %vm210_vm6, 1.0, %v7507_v27 }
 0x214   : > { %1724 = vrot.lane.b32.xlu0 %v1670_v46, %s4865_s23  ;;  %v1633_v16 = vmul.f32 0.0625, %v1601_v32 }
 0x216   : > { %1726 = vrot.lane.b32.xlu1 %v1671_v10, %s4865_s23  ;;  %v1617_v10 = vmul.f32 0.0625, %v1585_v15  ;;  %v1665_v48 = vmul.f32 %v5255_v29, %v1633_v16 }
 0x218   : > { %1692 = vrot.lane.b32.xlu0 %v1654_v19, %s4865_s23  ;;  %v1664_v19 = vmul.f32 %v5255_v29, %v1632_v14 }
 0x21a   : > { %1694 = vrot.lane.b32.xlu1 %v1655_v53, %s4865_s23 }
 0x21c   : > { %1720 = vrot.lane.b32.xlu0 %v1668_v61, %s4865_s23 }
 0x21e   : > { %1722 = vrot.lane.b32.xlu1 %v1669_v12, %s4865_s23 }
 0x220   : > { %1688 = vrot.lane.b32.xlu0 %v1652_v20, %s4865_s23  ;;  %v1649_v20 = vmul.f32 %v5255_v29, %v1617_v10 }
 0x222   : > { %1690 = vrot.lane.b32.xlu1 %v1653_v21, %s4865_s23 }
 0x224   : > { %1716 = vrot.lane.b32.xlu0 %v1666_v62, %s4865_s23 }
 0x226   : > { %1718 = vrot.lane.b32.xlu1 %v1667_v4, %s4865_s23 }
 0x227   : > { %v5519_v60 = vpop.xlane.xlu1 %1268 }
 0x228   : > { %1684 = vrot.lane.b32.xlu0 %v1650_v24, %s4865_s23  ;;  %4719 = vrsqrt.f32 %v5519_v60  ;;  %vm1344_vm8 = vcmp.eq.f32.partialorder %v5519_v60, inf  ;;  %vm1346_vm9 = vcmp.eq.f32.partialorder %v5519_v60, 0.0  ;;  %v1347_v21 = vand.u32 2147483648, %v5519_v60 }
 0x22a   : > { %1686 = vrot.lane.b32.xlu1 %v1651_v39, %s4865_s23 }
 0x22b   : > { %v5529_v22 = vpop.xlane.xlu1 %1264  ;;  %v5531_v37 = vpop.xlane.xlu0 %1270 }
 0x22c   : > { %1712 = vrot.lane.b32.xlu0 %v1664_v19, %s4865_s23  ;;  %vm1351_vm10 = vcmp.eq.f32.partialorder %v5531_v37, inf }
 0x22e   : > { %1714 = vrot.lane.b32.xlu1 %v1665_v48, %s4865_s23 }
 0x22f   : > { %v5541_v2 = vpop.xlane.xlu0 %1266 }
 0x230   : > { %v5546_v55 = vpop.xlane.xlu1 %1276  ;;  %1680 = vrot.lane.b32.xlu0 %v1648_v1, %s4865_s23 }
 0x231   : > { %4721 = vrsqrt.f32 %v5546_v55  ;;  %vm1372_vm11 = vcmp.eq.f32.partialorder %v5546_v55, inf  ;;  %vm1374_vm12 = vcmp.eq.f32.partialorder %v5546_v55, 0.0  ;;  %v1375_v4 = vand.u32 2147483648, %v5546_v55 }
 0x232   : > { %1682 = vrot.lane.b32.xlu1 %v1649_v20, %s4865_s23  ;;  %4723 = vrsqrt.f32 %v5531_v37 }
 0x233   : > { %v5553_v47 = vpop.xlane.xlu0 %1278  ;;  %4725 = vrsqrt.f32 %v5529_v22 }
 0x234   : > { %v5558_v26 = vpop.xlane.xlu1 %1272  ;;  %4727 = vrsqrt.f32 %v5553_v47  ;;  %v1382_v1 = vand.u32 2147483648, %v5553_v47  ;;  %vm1379_vm14 = vcmp.eq.f32.partialorder %v5553_v47, inf  ;;  %vm1381_vm3 = vcmp.eq.f32.partialorder %v5553_v47, 0.0 }
 0x235   : > { %v4720_v49 = vpop.eup %4719  ;;  %vm1358_vm15 = vcmp.eq.f32.partialorder %v5558_v26, inf  ;;  %v1361_v16 = vand.u32 2147483648, %v5558_v26  ;;  %vm1360_vm5 = vcmp.eq.f32.partialorder %v5558_v26, 0.0 }
 0x237   : > { %v5565_v44 = vpop.xlane.xlu0 %1274 }
 0x238   : > { %v5571_v46 = vpop.xlane.xlu1 %1284 }
 0x239   : > { %4729 = vrsqrt.f32 %v5571_v46  ;;  %vm1400_vm13 = vcmp.eq.f32.partialorder %v5571_v46, inf  ;;  %vm1402_vm0 = vcmp.eq.f32.partialorder %v5571_v46, 0.0  ;;  %v1403_v10 = vand.u32 2147483648, %v5571_v46 }
 0x23a   : > { %4731 = vrsqrt.f32 %v5558_v26 }
 0x23b   : > { %v5575_v17 = vpop.xlane.xlu0 %1286 }
 0x23c   : > { %v5583_v56 = vpop.xlane.xlu1 %1280  ;;  %4733 = vrsqrt.f32 %v5575_v17  ;;  %vm1407_vm1 = vcmp.eq.f32.partialorder %v5575_v17, inf  ;;  %vm1409_vm6 = vcmp.eq.f32.partialorder %v5575_v17, 0.0 }
 0x23d   : > { %vm1386_vm2 = vcmp.eq.f32.partialorder %v5583_v56, inf }
 0x23e   : > { %v4722_v24 = vpop.eup %4721 }
 0x23f   : > { %v5585_v63 = vpop.xlane.xlu0 %1282  ;;  %v4724_v54 = vpop.eup %4723  ;;  %v1371_v59 = vmul.f32 %v4722_v24, %v5546_v55 }
 0x240   : > { %v4726_v42 = vpop.eup %4725  ;;  %v1350_v39 = vmul.f32 %v4724_v54, %v5531_v37 }
 0x241   : > { %v5593_v0 = vpop.xlane.xlu1 %1288  ;;  %v4728_v9 = vpop.eup %4727 }
 0x243   : > { %v5595_v61 = vpop.xlane.xlu0 %1292 }
 0x246   : > { %v4730_v15 = vpop.eup %4729 }
 0x247   : > { %v5600_v52 = vpop.xlane.xlu0 %1294  ;;  %v5602_v31 = vpop.xlane.xlu1 %1300 }
 0x24b   : > { %v5606_v50 = vpop.xlane.xlu0 %1290  ;;  %v5608_v25 = vpop.xlane.xlu1 %1296 }
 0x24e   : > { %1904 = vxpose.xlu0.c.b16.start [1/8] (narrow) %v5126_v7, 64  ;;  %v1343_v7 = vmul.f32 %v4720_v49, %v5519_v60  ;;  %v1410_v49 = vand.u32 2147483648, %v5575_v17 }
 0x24f   : > { %v5612_v57 = vpop.xlane.xlu0 %1302 }
 0x250   : > { %v5614_v11 = vpop.xlane.xlu1 %1308  ;;  %v1345_v32 = vsel %vm1344_vm8, %v5519_v60, %v1343_v7  ;;  %v1373_v7 = vsel %vm1372_vm11, %v5546_v55, %v1371_v59  ;;  %v1399_v60 = vmul.f32 %v4730_v15, %v5571_v46  ;;  %vm1428_vm8 = vcmp.eq.f32.partialorder %v5595_v61, inf }
 0x251   : > { %v1348_v48 = vsel %vm1346_vm9, %v1347_v21, %v1345_v32  ;;  %vm1414_vm11 = vcmp.eq.f32.partialorder %v5593_v0, inf }
 0x252   : > { %1905 = vxpose.xlu0.c.b16.cont [2/8] (narrow) %v5134_v13, 64  ;;  %v5662_v13 = vsel %vm213_vm7, 1.0, %v7507_v27  ;;  %v5711_v32 = vmul.f32 %v5658_v51, %v1348_v48  ;;  %vm1388_vm7 = vcmp.eq.f32.partialorder %v5583_v56, 0.0  ;;  %v1378_v48 = vmul.f32 %v4728_v9, %v5553_v47 }
 0x253   : > { %v5616_v43 = vpop.xlane.xlu0 %1298  ;;  %7508 = vst [vmem:[#allocation39_spill] sm:$0xff] %v5662_v13  ;;  %v1401_v55 = vsel %vm1400_vm13, %v5571_v46, %v1399_v60 }
 0x254   : > { %v5618_v53 = vpop.xlane.xlu1 %1304 }
 0x255   : > { %1888 = vxpose.xlu1.c.b16.start [1/8] (narrow) %v5062_v30, 64  ;;  %v5699_v30 = vmul.f32 %v4726_v42, %v5529_v22 }
 0x256   : > { %1906 = vxpose.xlu0.c.b16.cont [3/8] (narrow) %v5142_v18, 64 }
 0x257   : > { %v5620_v5 = vpop.xlane.xlu0 %1310 }
 0x258   : > { %v5622_v58 = vpop.xlane.xlu1 %1316 }
 0x259   : > { %1889 = vxpose.xlu1.c.b16.cont [2/8] (narrow) %v5070_v35, 64 }
 0x25a   : > { %1907 = vxpose.xlu0.c.b16.cont [4/8] (narrow) %v5150_v23, 64  ;;  %v4732_v23 = vpop.eup %4731 }
 0x25b   : > { %v5625_v38 = vpop.xlane.xlu0 %1306  ;;  %v4734_v20 = vpop.eup %4733  ;;  %v1357_v42 = vmul.f32 %v4732_v23, %v5558_v26 }
 0x25c   : > { %v5627_v62 = vpop.xlane.xlu1 %1312  ;;  %v1406_v35 = vmul.f32 %v4734_v20, %v5575_v17 }
 0x25d   : > { %1890 = vxpose.xlu1.c.b16.cont [3/8] (narrow) %v5078_v40, 64  ;;  %v1404_v40 = vsel %vm1402_vm0, %v1403_v10, %v1401_v55  ;;  %vm1435_vm0 = vcmp.eq.f32.partialorder %v5600_v52, inf  ;;  %v1438_v55 = vand.u32 2147483648, %v5600_v52 }
 0x25e   : > { %1908 = vxpose.xlu0.c.b16.cont [5/8] (narrow) %v5158_v28, 64  ;;  %v5716_v28 = vsel %vm1351_vm10, %v5531_v37, %v1350_v39 }
 0x25f   : > { %v5630_v8 = vpop.xlane.xlu0 %1318 }
 0x261   : > { %v5634_v36 = vpop.xlane.xlu1 %1320  ;;  %1891 = vxpose.xlu1.c.b16.cont [4/8] (narrow) %v5086_v45, 64 }
 0x262   : > { %1909 = vxpose.xlu0.c.b16.cont [6/8] (narrow) %v5166_v34, 64 }
 0x263   : > { %v5639_v3 = vpop.xlane.xlu0 %1314 }
 0x265   : > { %v5643_v12 = vpop.xlane.xlu1 %1326 }
 0x266   : > { %4735 = vrsqrt.f32 %v5643_v12  ;;  %vm1547_vm9 = vcmp.eq.f32.partialorder %v5643_v12, inf  ;;  %v1550_v60 = vand.u32 2147483648, %v5643_v12  ;;  %vm1549_vm13 = vcmp.eq.f32.partialorder %v5643_v12, 0.0  ;;  %1910 = vxpose.xlu0.c.b16.cont [7/8] (narrow) %v5174_v41, 64 }
 0x267   : > { %4737 = vrsqrt.f32 %v5583_v56  ;;  %v5648_v14 = vpop.xlane.xlu0 %1324 }
 0x268   : > { %4739 = vrsqrt.f32 %v5648_v14  ;;  %vm1540_vm10 = vcmp.eq.f32.partialorder %v5648_v14, inf }
 0x269   : > { %4741 = vrsqrt.f32 %v5541_v2 }
 0x26a   : > { %4743 = vrsqrt.f32 %v5595_v61 }
 0x26b   : > { %4745 = vrsqrt.f32 %v5593_v0  ;;  %v5671_v19 = vpop.xlane.xlu0 %1322 }
 0x26c   : > { %4747 = vrsqrt.f32 %v5634_v36 }
 0x26d   : > { %4749 = vrsqrt.f32 %v5565_v44 }
 0x26e   : > { %4751 = vrsqrt.f32 %v5600_v52 }
 0x26f   : > { %4753 = vrsqrt.f32 %v5585_v63 }
 0x270   : > { %4755 = vrsqrt.f32 %v5671_v19 }
 0x271   : > { %4757 = vrsqrt.f32 %v5606_v50 }
 0x272   : > { %4759 = vrsqrt.f32 %v5622_v58 }
 0x273   : > { %v4736_v24 = vpop.eup %4735  ;;  %4761 = vrsqrt.f32 %v5630_v8 }
 0x274   : > { %v4738_v21 = vpop.eup %4737  ;;  %v1546_v59 = vmul.f32 %v4736_v24, %v5643_v12  ;;  %v1376_v24 = vsel %vm1374_vm12, %v1375_v4, %v1373_v7  ;;  %vm1430_vm12 = vcmp.eq.f32.partialorder %v5595_v61, 0.0  ;;  %4763 = vrsqrt.f32 %v5627_v62 }
 0x275   : > { %v4740_v15 = vpop.eup %4739  ;;  %v1385_v9 = vmul.f32 %v4738_v21, %v5583_v56  ;;  %v5744_v20 = vmul.f32 %v5658_v51, %v1376_v24  ;;  %v1380_v21 = vsel %vm1379_vm14, %v5553_v47, %v1378_v48  ;;  %v1543_v24 = vand.u32 2147483648, %v5648_v14 }
 0x276   : > { %v1539_v54 = vmul.f32 %v4740_v15, %v5648_v14  ;;  %v5730_v18 = vpop.eup %4741  ;;  %v1548_v23 = vsel %vm1547_vm9, %v5643_v12, %v1546_v59  ;;  %v1359_v59 = vsel %vm1358_vm15, %v5558_v26, %v1357_v42  ;;  %vm1542_vm14 = vcmp.eq.f32.partialorder %v5648_v14, 0.0 }
 0x277   : > { %v4744_v4 = vpop.eup %4743  ;;  %v1551_v48 = vsel %vm1549_vm13, %v1550_v60, %v1548_v23  ;;  %vm1416_vm15 = vcmp.eq.f32.partialorder %v5593_v0, 0.0  ;;  %v1387_v46 = vsel %vm1386_vm2, %v5583_v56, %v1385_v9  ;;  %v5777_v41 = vsel %vm1381_vm3, %v1382_v1, %v1380_v21  ;;  %v1743_v21 = vpop.permute.xlu0 %1742 }
 0x278   : > { %v4746_v34 = vpop.eup %4745  ;;  %v1541_v7 = vsel %vm1540_vm10, %v5648_v14, %v1539_v54  ;;  %v1408_v54 = vsel %vm1407_vm1, %v5575_v17, %v1406_v35  ;;  %v1427_v42 = vmul.f32 %v4744_v4, %v5595_v61  ;;  %v5783_v14 = vsel %vm1360_vm5, %v1361_v16, %v1359_v59  ;;  %v1741_v59 = vpop.permute.xlu1 %1740 }
 0x279   : > { %v4748_v15 = vpop.eup %4747  ;;  %v1544_v10 = vsel %vm1542_vm14, %v1543_v24, %v1541_v7  ;;  %vm1437_vm1 = vcmp.eq.f32.partialorder %v5600_v52, 0.0  ;;  %v1413_v4 = vmul.f32 %v4746_v34, %v5593_v0  ;;  %v5791_v47 = vmul.f32 %v5658_v51, %v1404_v40  ;;  %v7510_v7 = vld [vmem:[#allocation6_spill] sm:$0xff] }
 0x27a   : > { %v5763_v39 = vpop.eup %4749  ;;  %v1525_v9 = vmul.f32 %v4748_v15, %v5634_v36  ;;  %v1807_v23 = vmul.f32 %v5658_v51, %v1551_v48  ;;  %vm1421_vm2 = vcmp.eq.f32.partialorder %v5606_v50, inf  ;;  %v1411_v45 = vsel %vm1409_vm6, %v1410_v49, %v1408_v54  ;;  %1911 = vxpose.xlu0.c.b16.end [8/8] (narrow) %v7510_v7, 64  ;;  %v7512_v40 = vld [vmem:[#allocation2_spill] sm:$0xff]  ;;  %v7513_v54 = vld [vmem:[#allocation37_spill] sm:$0xff] }
 0x27b   : > { %v4752_v12 = vpop.eup %4751  ;;  %v7509_v26 = vand.u32 2147483648, %v5583_v56  ;;  %v1806_v34 = vmul.f32 %v5658_v51, %v1544_v10  ;;  %v1429_v60 = vsel %vm1428_vm8, %v5595_v61, %v1427_v42  ;;  %4765 = vrsqrt.f32 %v5639_v3  ;;  %v7511_v56 = vld [vmem:[#allocation38_spill] sm:$0xff]  ;;  %1892 = vxpose.xlu1.c.b16.cont [5/8] (narrow) %v7512_v40, 64 }
 0x27c   : > { %v4754_v35 = vpop.eup %4753  ;;  %v1434_v17 = vmul.f32 %v4752_v12, %v5600_v52  ;;  %v1775_v15 = vadd.f32 %v1743_v21, %v7511_v56  ;;  %vm1526_vm3 = vcmp.eq.f32.partialorder %v5634_v36, inf  ;;  %v1774_v48 = vadd.f32 %v1741_v59, %v7513_v54  ;;  %v4145_v40 = vld [vmem:[%s4900_s18 + $0x200] sm:$0xff] }
 0x27d   : > { %v4756_v1 = vpop.eup %4755  ;;  %v5803_v16 = vsel %vm1388_vm7, %v7509_v26, %v1387_v46  ;;  %v5816_v24 = vmul.f32 %v4754_v35, %v5585_v63  ;;  %v1527_v42 = vsel %vm1526_vm3, %v5634_v36, %v1525_v9  ;;  %v1415_v12 = vsel %vm1414_vm11, %v5593_v0, %v1413_v4  ;;  %v1737_v4 = vpop.permute.xlu0 %1736 }
 0x27e   : > { %v4758_v49 = vpop.eup %4757  ;;  %v1532_v46 = vmul.f32 %v4756_v1, %v5671_v19  ;;  %v7514_v10 = vand.u32 2147483648, %v5595_v61  ;;  %v1839_v7 = vadd.f32 %v1807_v23, %v1775_v15  ;;  %v1529_v35 = vand.u32 2147483648, %v5634_v36  ;;  %v1709_v23 = vpop.permute.xlu1 %1708  ;;  %v7516_v15 = vld [vmem:[#allocation3_spill] sm:$0xff] }
 0x27f   : > { %vm1423_vm5 = vcmp.eq.f32.partialorder %v5606_v50, 0.0  ;;  %v5832_v21 = vmul.f32 %v5658_v51, %v1411_v45  ;;  %v1838_v9 = vadd.f32 %v1806_v34, %v1774_v48  ;;  %v1436_v1 = vsel %vm1435_vm0, %v5600_v52, %v1434_v17  ;;  %1893 = vxpose.xlu1.c.b16.cont [6/8] (narrow) %v7516_v15, 64  ;;  %v7517_v17 = vld [vmem:[#allocation20_spill] sm:$0xff] }
 0x280   : > { %v1432_v26 = vsel %vm1430_vm12, %v7514_v10, %v1429_v60  ;;  %vm1528_vm6 = vcmp.eq.f32.partialorder %v5634_v36, 0.0  ;;  %v1420_v61 = vmul.f32 %v4758_v49, %v5606_v50  ;;  %v4760_v60 = vpop.eup %4759  ;;  %4767 = vrsqrt.f32 %v5614_v11  ;;  %v7519_v15 = vld [vmem:[#allocation4_spill] sm:$0xff] }
 0x281   : > { %v1530_v59 = vsel %vm1528_vm6, %v1529_v35, %v1527_v42  ;;  %vm1533_vm7 = vcmp.eq.f32.partialorder %v5671_v19, inf  ;;  %v7515_v45 = vand.u32 2147483648, %v5593_v0  ;;  %v4762_v56 = vpop.eup %4761  ;;  %v1758_v36 = vadd.f32 %v1709_v23, %v7517_v17  ;;  %v1705_v10 = vpop.permute.xlu0 %1704  ;;  %v7520_v17 = vld [vmem:[#allocation22_spill] sm:$0xff] }
 0x282   : > { %v1534_v49 = vsel %vm1533_vm7, %v5671_v19, %v1532_v46  ;;  %v1870_v54 = vadd.f32 %v5662_v13, %v1838_v9  ;;  %v1871_v48 = vadd.f32 %v5662_v13, %v1839_v7  ;;  %4769 = vrsqrt.f32 %v5620_v5  ;;  %v1711_v9 = vpop.permute.xlu1 %1710 }
 0x283   : > { %v1418_v34 = vsel %vm1416_vm15, %v7515_v45, %v1415_v12  ;;  %v1790_v42 = vmul.f32 %v5658_v51, %v1432_v26  ;;  %v1439_v0 = vsel %vm1437_vm1, %v1438_v55, %v1436_v1  ;;  %v1536_v12 = vand.u32 2147483648, %v5671_v19  ;;  %v7518_v26 = vld [vmem:[#allocation36_spill] sm:$0xff]  ;;  %2185 = vperm.xlu0 %4701, %v4145_v40   ;;  %1894 = vxpose.xlu1.c.b16.cont [7/8] (narrow) %v7519_v15, 64 }
 0x284   : > { %vm1535_vm8 = vcmp.eq.f32.partialorder %v5671_v19, 0.0  ;;  %v1422_v46 = vsel %vm1421_vm2, %v5606_v50, %v1420_v61  ;;  %v1511_v35 = vmul.f32 %v4760_v60, %v5622_v58  ;;  %v1887_v7 = vpack.c.bf16 %v1871_v48, %v1870_v54  ;;  %v4147_v61 = vld [vmem:[%s4900_s18 + $0x210] sm:$0xff] }
 0x285   : > { %v1804_v23 = vmul.f32 %v5658_v51, %v1530_v59  ;;  %v1772_v45 = vadd.f32 %v1737_v4, %v7518_v26  ;;  %v1537_v52 = vsel %vm1535_vm8, %v1536_v12, %v1534_v49  ;;  %v1518_v55 = vmul.f32 %v4762_v56, %v5630_v8  ;;  %v1733_v40 = vpop.permute.xlu0 %1732  ;;  %v4764_v49 = vpop.eup %4763  ;;  %v7521_v12 = vld [vmem:[#allocation5_spill] sm:$0xff] }
 0x286   : > { %v1822_v1 = vadd.f32 %v1790_v42, %v1758_v36  ;;  %v1791_v19 = vmul.f32 %v5658_v51, %v1439_v0  ;;  %v1759_v29 = vadd.f32 %v1711_v9, %v7520_v17  ;;  %v1424_v60 = vand.u32 2147483648, %v5606_v50  ;;  %4358 = vmatprep.subr.bf16.mxu1 %v1887_v7  ;;  %v1739_v48 = vpop.permute.xlu1 %1738  ;;  %v4149_v9 = vld [vmem:[%s4900_s18 + $0x220] sm:$0xff] }
 0x287   : > { %vm1393_vm9 = vcmp.eq.f32.partialorder %v5585_v63, inf  ;;  %4771 = vrsqrt.f32 %v5618_v53  ;;  %v1788_v4 = vmul.f32 %v5658_v51, %v1418_v34  ;;  %vm1512_vm10 = vcmp.eq.f32.partialorder %v5622_v58, inf  ;;  %2191 = vperm.xlu0 %4701, %v4147_v61   ;;  %1895 = vxpose.xlu1.c.b16.end [8/8] (narrow) %v7521_v12, 64  ;;  %v7523_v61 = vld [vmem:[#allocation32_spill] sm:$0xff] }
 0x288   : > { %vm1514_vm11 = vcmp.eq.f32.partialorder %v5622_v58, 0.0  ;;  %v1823_v59 = vadd.f32 %v1791_v19, %v1759_v29  ;;  %v1805_v56 = vmul.f32 %v5658_v51, %v1537_v52  ;;  %v1425_v36 = vsel %vm1423_vm5, %v1424_v60, %v1422_v46  ;;  %v4766_v0 = vpop.eup %4765  ;;  %v7522_v46 = vld [vmem:[#allocation21_spill] sm:$0xff] }
 0x289   : > { %vm1519_vm12 = vcmp.eq.f32.partialorder %v5630_v8, inf  ;;  %v1836_v54 = vadd.f32 %v1804_v23, %v1772_v45  ;;  %v1513_v34 = vsel %vm1512_vm10, %v5622_v58, %v1511_v35  ;;  %v1515_v42 = vand.u32 2147483648, %v5622_v58  ;;  %v4146_v45 = vld [vmem:[%s4900_s18 + $0x208] sm:$0xff] }
 0x28a   : > { %v1520_v29 = vsel %vm1519_vm12, %v5630_v8, %v1518_v55  ;;  %v1773_v50 = vadd.f32 %v1739_v48, %v5436_v33  ;;  %v1756_v7 = vadd.f32 %v1705_v10, %v7522_v46  ;;  %v1854_v26 = vadd.f32 %v5662_v13, %v1822_v1  ;;  %v1701_v10 = vpop.permute.xlu0 %1700  ;;  %v1707_v17 = vpop.permute.xlu1 %1706  ;;  %v7524_v48 = vld [vmem:[#allocation23_spill] sm:$0xff] }
 0x28b   : > { %v1855_v23 = vadd.f32 %v5662_v13, %v1823_v59  ;;  %4773 = vrsqrt.f32 %v5625_v38  ;;  %v1789_v35 = vmul.f32 %v5658_v51, %v1425_v36  ;;  %vm1521_vm13 = vcmp.eq.f32.partialorder %v5630_v8, 0.0  ;;  %2197 = vperm.xlu0 %4701, %v4149_v9   ;;  %2188 = vperm.xlu1 %4702, %v4146_v45  }
 0x28c   : > { %v1522_v52 = vand.u32 2147483648, %v5630_v8  ;;  %v1837_v55 = vadd.f32 %v1805_v56, %v1773_v50  ;;  %v1516_v33 = vsel %vm1514_vm11, %v1515_v42, %v1513_v34  ;;  %v1497_v1 = vmul.f32 %v4764_v49, %v5627_v62  ;;  %v4151_v49 = vld [vmem:[%s4900_s18 + $0x230] sm:$0xff] }
 0x28d   : > { %v1879_v15 = vpack.c.bf16 %v1855_v23, %v1854_v26  ;;  %v1868_v19 = vadd.f32 %v5662_v13, %v1836_v54  ;;  %v1770_v60 = vadd.f32 %v1733_v40, %v7523_v61  ;;  %v1504_v36 = vmul.f32 %v4766_v0, %v5639_v3  ;;  %v4768_v8 = vpop.eup %4767  ;;  %v4148_v54 = vld [vmem:[%s4900_s18 + $0x218] sm:$0xff]  ;;  %v7525_v26 = vld [vmem:[#allocation16_spill] sm:$0xff] }
 0x28e   : > { %v1523_v59 = vsel %vm1521_vm13, %v1522_v52, %v1520_v29  ;;  %4775 = vrsqrt.f32 %v5602_v31  ;;  %v1869_v58 = vadd.f32 %v5662_v13, %v1837_v55  ;;  %v1820_v56 = vadd.f32 %v1788_v4, %v1756_v7  ;;  %v1729_v50 = vpop.permute.xlu0 %1728  ;;  %v7526_v52 = vld [vmem:[#allocation34_spill] sm:$0xff] }
 0x28f   : > { %v1757_v34 = vadd.f32 %v1707_v17, %v7524_v48  ;;  %4359 = vmatpush3.bf16.msra.mxu1 %v1879_v15  ;;  %vm1395_vm14 = vcmp.eq.f32.partialorder %v5585_v63, 0.0  ;;  %v1802_v40 = vmul.f32 %v5658_v51, %v1516_v33  ;;  %vm1498_vm15 = vcmp.eq.f32.partialorder %v5627_v62, inf  ;;  %v4770_v29 = vpop.eup %4769  ;;  %2203 = vperm.xlu0 %4701, %v4151_v49   ;;  %v4153_v33 = vld [vmem:[%s4900_s18 + $0x240] sm:$0xff]  ;;  %v4150_v15 = vld [vmem:[%s4900_s18 + $0x228] sm:$0xff] }
 0x290   : > { %v5908_v42 = vmul.f32 %v5658_v51, %v5803_v16  ;;  %v1394_v4 = vsel %vm1393_vm9, %v5585_v63, %v5816_v24  ;;  %v1499_v12 = vsel %vm1498_vm15, %v5627_v62, %v1497_v1  ;;  %vm1505_vm0 = vcmp.eq.f32.partialorder %v5639_v3, inf  ;;  %v1735_v16 = vpop.permute.xlu1 %1734  ;;  %2194 = vperm.xlu1 %4702, %v4148_v54   ;;  %v7528_v54 = vld [vmem:[#allocation33_spill] sm:$0xff] }
 0x291   : > { %v1821_v0 = vadd.f32 %v1789_v35, %v1757_v34  ;;  %v1886_v46 = vpack.c.bf16 %v1869_v58, %v1868_v19  ;;  %v1834_v7 = vadd.f32 %v1802_v40, %v1770_v60  ;;  %v1803_v9 = vmul.f32 %v5658_v51, %v1523_v59 }
 0x292   : > { %v1754_v23 = vadd.f32 %v1701_v10, %v7525_v26  ;;  %v1506_v45 = vsel %vm1505_vm0, %v5639_v3, %v1504_v36  ;;  %4777 = vrsqrt.f32 %v5612_v57  ;;  %v1852_v24 = vadd.f32 %v5662_v13, %v1820_v56  ;;  %v1697_v59 = vpop.permute.xlu0 %1696 }
 0x293   : > { %v1853_v35 = vadd.f32 %v5662_v13, %v1821_v0  ;;  %v1771_v55 = vadd.f32 %v1735_v16, %v7526_v52  ;;  %4360 = vmatprep.subr.bf16.mxu1 %v1886_v46  ;;  %vm1500_vm1 = vcmp.eq.f32.partialorder %v5627_v62, 0.0  ;;  %v1501_v1 = vand.u32 2147483648, %v5627_v62  ;;  %2209 = vperm.xlu0 %4701, %v4153_v33   ;;  %v4155_v0 = vld [vmem:[%s4900_s18 + $0x250] sm:$0xff] }
 0x294   : > { %v1508_v10 = vand.u32 2147483648, %v5639_v3  ;;  %v1483_v19 = vmul.f32 %v4768_v8, %v5614_v11  ;;  %v4772_v17 = vpop.eup %4771  ;;  %vm1507_vm2 = vcmp.eq.f32.partialorder %v5639_v3, 0.0  ;;  %v1490_v36 = vmul.f32 %v4770_v29, %v5620_v5  ;;  %v1703_v48 = vpop.permute.xlu1 %1702  ;;  %2200 = vperm.xlu1 %4702, %v4150_v15   ;;  %v7527_v3 = vld [vmem:[#allocation18_spill] sm:$0xff]  ;;  %v4152_v29 = vld [vmem:[%s4900_s18 + $0x238] sm:$0xff] }
 0x295   : > { %v1835_v61 = vadd.f32 %v1803_v9, %v1771_v55  ;;  %v1878_v60 = vpack.c.bf16 %v1853_v35, %v1852_v24  ;;  %v1866_v58 = vadd.f32 %v5662_v13, %v1834_v7  ;;  %v1818_v56 = vadd.f32 %v5791_v47, %v1754_v23  ;;  %v7531_v55 = vld [vmem:[#allocation35_spill] sm:$0xff] }
 0x296   : > { %v1502_v62 = vsel %vm1500_vm1, %v1501_v1, %v1499_v12  ;;  %v1509_v34 = vsel %vm1507_vm2, %v1508_v10, %v1506_v45  ;;  %4779 = vrsqrt.f32 %v5608_v25  ;;  %v1755_v49 = vadd.f32 %v1703_v48, %v7527_v3  ;;  %v1725_v26 = vpop.permute.xlu0 %1724  ;;  %v7530_v45 = vld [vmem:[#allocation17_spill] sm:$0xff]  ;;  %v4157_v1 = vld [vmem:[%s4900_s18 + $0x260] sm:$0xff] }
 0x297   : > { %v1867_v8 = vadd.f32 %v5662_v13, %v1835_v61  ;;  %v1768_v40 = vadd.f32 %v1729_v50, %v7528_v54  ;;  %4361 = vmatpush3.bf16.msra.mxu1 %v1878_v60  ;;  %v7529_v46 = vand.u32 2147483648, %v5585_v63  ;;  %vm1484_vm3 = vcmp.eq.f32.partialorder %v5614_v11, inf  ;;  %2215 = vperm.xlu0 %4701, %v4155_v0  }
 0x298   : > { %vm1486_vm5 = vcmp.eq.f32.partialorder %v5614_v11, 0.0  ;;  %vm1491_vm6 = vcmp.eq.f32.partialorder %v5620_v5, inf  ;;  %v4774_v12 = vpop.eup %4773  ;;  %v1819_v7 = vadd.f32 %v5832_v21, %v1755_v49  ;;  %v1800_v9 = vmul.f32 %v5658_v51, %v1502_v62  ;;  %2206 = vperm.xlu1 %4702, %v4152_v29   ;;  %v4159_v29 = vld [vmem:[%s4900_s18 + $0x270] sm:$0xff] }
 0x299   : > { %v1397_v47 = vsel %vm1395_vm14, %v7529_v46, %v1394_v4  ;;  %v1885_v50 = vpack.c.bf16 %v1867_v8, %v1866_v58  ;;  %v1485_v16 = vsel %vm1484_vm3, %v5614_v11, %v1483_v19  ;;  %v1850_v23 = vadd.f32 %v5662_v13, %v1818_v56  ;;  %v1731_v4 = vpop.permute.xlu1 %1730  ;;  %v4154_v19 = vld [vmem:[%s4900_s18 + $0x248] sm:$0xff]  ;;  %v7532_v8 = vld [vmem:[#allocation28_spill] sm:$0xff] }
 0x29a   : > { %v1801_v63 = vmul.f32 %v5658_v51, %v1509_v34  ;;  %v1752_v24 = vadd.f32 %v1697_v59, %v7530_v45  ;;  %v1492_v35 = vsel %vm1491_vm6, %v5620_v5, %v1490_v36  ;;  %v1851_v21 = vadd.f32 %v5662_v13, %v1819_v7  ;;  %v1693_v56 = vpop.permute.xlu0 %1692 }
 0x29b   : > { %v1832_v52 = vadd.f32 %v1800_v9, %v1768_v40  ;;  %v1769_v33 = vadd.f32 %v1731_v4, %v7531_v55  ;;  %4362 = vmatprep.subr.bf16.mxu1 %v1885_v50  ;;  %v1487_v15 = vand.u32 2147483648, %v5614_v11  ;;  %vm1365_vm7 = vcmp.eq.f32.partialorder %v5565_v44, inf  ;;  %v4776_v10 = vpop.eup %4775  ;;  %2221 = vperm.xlu0 %4701, %v4157_v1   ;;  %v7533_v11 = vld [vmem:[#allocation19_spill] sm:$0xff] }
 0x29c   : > { %4781 = vrsqrt.f32 %v5616_v43  ;;  %v1785_v61 = vmul.f32 %v5658_v51, %v1397_v47  ;;  %vm1493_vm8 = vcmp.eq.f32.partialorder %v5620_v5, 0.0  ;;  %v1494_v60 = vand.u32 2147483648, %v5620_v5  ;;  %2212 = vperm.xlu1 %4702, %v4154_v19   ;;  %v4158_v1 = vld [vmem:[%s4900_s18 + $0x268] sm:$0xff] }
 0x29d   : > { %v1833_v59 = vadd.f32 %v1801_v63, %v1769_v33  ;;  %v1877_v36 = vpack.c.bf16 %v1851_v21, %v1850_v23  ;;  %v1488_v58 = vsel %vm1486_vm5, %v1487_v15, %v1485_v16  ;;  %v1469_v48 = vmul.f32 %v4772_v17, %v5618_v53  ;;  %v1699_v34 = vpop.permute.xlu1 %1698  ;;  %v7535_v21 = vld [vmem:[#allocation12_spill] sm:$0xff]  ;;  %v4161_v33 = vld [vmem:[%s4900_s18 + $0x280] sm:$0xff] }
 0x29e   : > { %v1816_v62 = vadd.f32 %v5908_v42, %v1752_v24  ;;  %v1766_v3 = vadd.f32 %v1725_v26, %v7532_v8  ;;  %v1495_v49 = vsel %vm1493_vm8, %v1494_v60, %v1492_v35  ;;  %v1476_v54 = vmul.f32 %v4774_v12, %v5625_v38  ;;  %v4156_v42 = vld [vmem:[%s4900_s18 + $0x258] sm:$0xff]  ;;  %v1721_v26 = vpop.permute.xlu0 %1720  ;;  %v7534_v24 = vld [vmem:[#allocation30_spill] sm:$0xff] }
 0x29f   : > { %v1864_v5 = vadd.f32 %v5662_v13, %v1832_v52  ;;  %v1865_v40 = vadd.f32 %v5662_v13, %v1833_v59  ;;  %v1753_v0 = vadd.f32 %v1699_v34, %v7533_v11  ;;  %4363 = vmatpush3.bf16.msra.mxu1 %v1877_v36  ;;  %v1368_v17 = vand.u32 2147483648, %v5565_v44  ;;  %v4778_v46 = vpop.eup %4777  ;;  %2227 = vperm.xlu0 %4701, %v4159_v29  }
 0x2a0   : > { %v1798_v47 = vmul.f32 %v5658_v51, %v1488_v58  ;;  %v1783_v7 = vmul.f32 %v5658_v51, %v5777_v41  ;;  %vm1470_vm9 = vcmp.eq.f32.partialorder %v5618_v53, inf  ;;  %v1364_v12 = vmul.f32 %v5763_v39, %v5565_v44  ;;  %2218 = vperm.xlu1 %4702, %v4156_v42  }
 0x2a1   : > { %v1817_v9 = vadd.f32 %v1785_v61, %v1753_v0  ;;  %v1884_v50 = vpack.c.bf16 %v1865_v40, %v1864_v5  ;;  %v1471_v16 = vsel %vm1470_vm9, %v5618_v53, %v1469_v48  ;;  %vm1477_vm10 = vcmp.eq.f32.partialorder %v5625_v38, inf  ;;  %v1727_v41 = vpop.permute.xlu1 %1726  ;;  %v4160_v40 = vld [vmem:[%s4900_s18 + $0x278] sm:$0xff] }
 0x2a2   : > { %v1848_v23 = vadd.f32 %v5662_v13, %v1816_v62  ;;  %v1830_v63 = vadd.f32 %v1798_v47, %v1766_v3  ;;  %v1799_v4 = vmul.f32 %v5658_v51, %v1495_v49  ;;  %v1478_v45 = vsel %vm1477_vm10, %v5625_v38, %v1476_v54  ;;  %v7537_v54 = vld [vmem:[#allocation14_spill] sm:$0xff] }
 0x2a3   : > { %v1849_v39 = vadd.f32 %v5662_v13, %v1817_v9  ;;  %v1767_v35 = vadd.f32 %v1727_v41, %v7534_v24  ;;  %4364 = vmatprep.subr.bf16.mxu1 %v1884_v50  ;;  %v1750_v52 = vadd.f32 %v1693_v56, %v7535_v21  ;;  %v1473_v55 = vand.u32 2147483648, %v5618_v53  ;;  %v4780_v15 = vpop.eup %4779  ;;  %v1689_v56 = vpop.permute.xlu0 %1688  ;;  %2233 = vperm.xlu0 %4701, %v4161_v33   ;;  %v4165_v41 = vld [vmem:[%s4900_s18 + $0x2a0] sm:$0xff] }
 0x2a4   : > { %vm1472_vm11 = vcmp.eq.f32.partialorder %v5618_v53, 0.0  ;;  %v1480_v19 = vand.u32 2147483648, %v5625_v38  ;;  %v1366_v61 = vsel %vm1365_vm7, %v5565_v44, %v1364_v12  ;;  %v1455_v60 = vmul.f32 %v4776_v10, %v5602_v31  ;;  %v7536_v53 = vld [vmem:[#allocation29_spill] sm:$0xff]  ;;  %2224 = vperm.xlu1 %4702, %v4158_v1  }
 0x2a5   : > { %v1831_v59 = vadd.f32 %v1799_v4, %v1767_v35  ;;  %v1876_v36 = vpack.c.bf16 %v1849_v39, %v1848_v23  ;;  %v1474_v58 = vsel %vm1472_vm11, %v1473_v55, %v1471_v16  ;;  %vm1479_vm12 = vcmp.eq.f32.partialorder %v5625_v38, 0.0  ;;  %v1695_v62 = vpop.permute.xlu1 %1694  ;;  %v4163_v38 = vld [vmem:[%s4900_s18 + $0x290] sm:$0xff]  ;;  %v7538_v16 = vld [vmem:[#allocation13_spill] sm:$0xff]  ;;  %v7539_v23 = vld [vmem:[#allocation31_spill] sm:$0xff] }
 0x2a6   : > { %v1862_v48 = vadd.f32 %v5662_v13, %v1830_v63  ;;  %v1764_v34 = vadd.f32 %v1721_v26, %v7536_v53  ;;  %v1481_v8 = vsel %vm1479_vm12, %v1480_v19, %v1478_v45  ;;  %v1462_v3 = vmul.f32 %v4778_v46, %v5612_v57  ;;  %v4162_v45 = vld [vmem:[%s4900_s18 + $0x288] sm:$0xff] }
 0x2a7   : > { %v1863_v49 = vadd.f32 %v5662_v13, %v1831_v59  ;;  %v1814_v10 = vadd.f32 %v5744_v20, %v1750_v52  ;;  %v1751_v5 = vadd.f32 %v1695_v62, %v7537_v54  ;;  %4365 = vmatpush3.bf16.msra.mxu1 %v1876_v36  ;;  %vm1367_vm13 = vcmp.eq.f32.partialorder %v5565_v44, 0.0  ;;  %v1717_v12 = vpop.permute.xlu0 %1716  ;;  %2239 = vperm.xlu0 %4701, %v4163_v38  }
 0x2a8   : > { %vm1353_vm14 = vcmp.eq.f32.partialorder %v5531_v37, 0.0  ;;  %v1796_v11 = vmul.f32 %v5658_v51, %v1474_v58  ;;  %v1780_v0 = vmul.f32 %v5658_v51, %v5783_v14  ;;  %v1369_v29 = vsel %vm1367_vm13, %v1368_v17, %v1366_v61  ;;  %2230 = vperm.xlu1 %4702, %v4160_v40   ;;  %v7541_v58 = vld [vmem:[#allocation24_spill] sm:$0xff] }
 0x2a9   : > { %vm1456_vm15 = vcmp.eq.f32.partialorder %v5602_v31, inf  ;;  %v4782_v46 = vpop.eup %4781  ;;  %v1815_v42 = vadd.f32 %v1783_v7, %v1751_v5  ;;  %v1883_v20 = vpack.c.bf16 %v1863_v49, %v1862_v48  ;;  %vm1463_vm0 = vcmp.eq.f32.partialorder %v5612_v57, inf  ;;  %v1723_v50 = vpop.permute.xlu1 %1722  ;;  %v4167_v48 = vld [vmem:[%s4900_s18 + $0x2b0] sm:$0xff]  ;;  %v7543_v5 = vld [vmem:[#allocation7_spill] sm:$0xff] }
 0x2aa   : > { %v1457_v47 = vsel %vm1456_vm15, %v5602_v31, %v1455_v60  ;;  %v1828_v44 = vadd.f32 %v1796_v11, %v1764_v34  ;;  %v1797_v9 = vmul.f32 %v5658_v51, %v1481_v8  ;;  %v1748_v26 = vadd.f32 %v1689_v56, %v7538_v16 }
 0x2ab   : > { %v1464_v14 = vsel %vm1463_vm0, %v5612_v57, %v1462_v3  ;;  %v1846_v17 = vadd.f32 %v5662_v13, %v1814_v10  ;;  %v1847_v7 = vadd.f32 %v5662_v13, %v1815_v42  ;;  %v1765_v63 = vadd.f32 %v1723_v50, %v7539_v23  ;;  %4366 = vmatprep.subr.bf16.mxu1 %v1883_v20  ;;  %v1685_v55 = vpop.permute.xlu0 %1684  ;;  %v4169_v20 = vld [vmem:[%s4900_s18 + $0x2c0] sm:$0xff] }
 0x2ac   : > { %v1459_v4 = vand.u32 2147483648, %v5602_v31  ;;  %vm1330_vm1 = vcmp.eq.f32.partialorder %v5529_v22, inf  ;;  %v1781_v39 = vmul.f32 %v5658_v51, %v1369_v29  ;;  %vm1458_vm2 = vcmp.eq.f32.partialorder %v5602_v31, 0.0  ;;  %2245 = vperm.xlu0 %4701, %v4165_v41   ;;  %2236 = vperm.xlu1 %4702, %v4162_v45   ;;  %v7544_v29 = vld [vmem:[#allocation26_spill] sm:$0xff] }
 0x2ad   : > { %vm1465_vm3 = vcmp.eq.f32.partialorder %v5612_v57, 0.0  ;;  %v1466_v24 = vand.u32 2147483648, %v5612_v57  ;;  %v1829_v35 = vadd.f32 %v1797_v9, %v1765_v63  ;;  %v1875_v21 = vpack.c.bf16 %v1847_v7, %v1846_v17  ;;  %v1691_v61 = vpop.permute.xlu1 %1690  ;;  %v7540_v57 = vld [vmem:[#allocation15_spill] sm:$0xff]  ;;  %v7545_v7 = vld [vmem:[#allocation25_spill] sm:$0xff]  ;;  %v7546_v41 = vld [vmem:[#allocation10_spill] sm:$0xff] }
 0x2ae   : > { %v1460_v52 = vsel %vm1458_vm2, %v1459_v4, %v1457_v47  ;;  %v1441_v33 = vmul.f32 %v4780_v15, %v5608_v25  ;;  %v1860_v1 = vadd.f32 %v5662_v13, %v1828_v44  ;;  %v1812_v19 = vadd.f32 %v1780_v0, %v1748_v26  ;;  %v4164_v15 = vld [vmem:[%s4900_s18 + $0x298] sm:$0xff]  ;;  %v4166_v47 = vld [vmem:[%s4900_s18 + $0x2a8] sm:$0xff] }
 0x2af   : > { %v1467_v60 = vsel %vm1465_vm3, %v1466_v24, %v1464_v14  ;;  %v1448_v31 = vmul.f32 %v4782_v46, %v5616_v43  ;;  %v1861_v59 = vadd.f32 %v5662_v13, %v1829_v35  ;;  %v1749_v36 = vadd.f32 %v1691_v61, %v7540_v57  ;;  %4367 = vmatpush3.bf16.msra.mxu1 %v1875_v21  ;;  %v1713_v40 = vpop.permute.xlu0 %1712 }
 0x2b0   : > { %v1762_v56 = vadd.f32 %v1717_v12, %v7541_v58  ;;  %vm1337_vm5 = vcmp.eq.f32.partialorder %v5541_v2, inf  ;;  %v7542_v62 = vand.u32 2147483648, %v5531_v37  ;;  %vm1442_vm6 = vcmp.eq.f32.partialorder %v5608_v25, inf  ;;  %2251 = vperm.xlu0 %4701, %v4167_v48   ;;  %2242 = vperm.xlu1 %4702, %v4164_v15  }
 0x2b1   : > { %vm1449_vm7 = vcmp.eq.f32.partialorder %v5616_v43, inf  ;;  %v1336_v34 = vmul.f32 %v5730_v18, %v5541_v2  ;;  %v1813_v8 = vadd.f32 %v1781_v39, %v1749_v36  ;;  %v1794_v3 = vmul.f32 %v5658_v51, %v1460_v52  ;;  %v4168_v39 = vld [vmem:[%s4900_s18 + $0x2b8] sm:$0xff] }
 0x2b2   : > { %v1355_v53 = vsel %vm1353_vm14, %v7542_v62, %v5716_v28  ;;  %v1882_v49 = vpack.c.bf16 %v1861_v59, %v1860_v1  ;;  %v1443_v10 = vsel %vm1442_vm6, %v5608_v25, %v1441_v33  ;;  %v1844_v54 = vadd.f32 %v5662_v13, %v1812_v19  ;;  %v1719_v28 = vpop.permute.xlu1 %1718  ;;  %v7547_v59 = vld [vmem:[#allocation27_spill] sm:$0xff]  ;;  %v7548_v36 = vld [vmem:[#allocation9_spill] sm:$0xff] }
 0x2b3   : > { %v1795_v37 = vmul.f32 %v5658_v51, %v1467_v60  ;;  %v1746_v38 = vadd.f32 %v1685_v55, %v7543_v5  ;;  %v1450_v11 = vsel %vm1449_vm7, %v5616_v43, %v1448_v31  ;;  %v1845_v18 = vadd.f32 %v5662_v13, %v1813_v8  ;;  %v1681_v35 = vpop.permute.xlu0 %1680 }
 0x2b4   : > { %v1826_v0 = vadd.f32 %v1794_v3, %v1762_v56  ;;  %v1763_v46 = vadd.f32 %v1719_v28, %v7544_v29  ;;  %4368 = vmatprep.subr.bf16.mxu1 %v1882_v49  ;;  %v1445_v42 = vand.u32 2147483648, %v5608_v25  ;;  %v1779_v12 = vmul.f32 %v5658_v51, %v1355_v53  ;;  %2257 = vperm.xlu0 %4701, %v4169_v20   ;;  %v4173_v56 = vld [vmem:[%s4900_s18 + $0x2e0] sm:$0xff]  ;;  %v4172_v28 = vld [vmem:[%s4900_s18 + $0x2d8] sm:$0xff]  ;;  %v4174_v29 = vld [vmem:[%s4900_s18 + $0x2e8] sm:$0xff] }
 0x2b5   : > { %vm1444_vm8 = vcmp.eq.f32.partialorder %v5608_v25, 0.0  ;;  %v1452_v44 = vand.u32 2147483648, %v5616_v43  ;;  %v1331_v9 = vsel %vm1330_vm1, %v5529_v22, %v5699_v30  ;;  %v1874_v16 = vpack.c.bf16 %v1845_v18, %v1844_v54  ;;  %2248 = vperm.xlu1 %4702, %v4166_v47   ;;  %v4177_v18 = vld [vmem:[%s4900_s18 + $0x300] sm:$0xff]  ;;  %v4176_v20 = vld [vmem:[%s4900_s18 + $0x2f8] sm:$0xff] }
 0x2b6   : > { %v1827_v50 = vadd.f32 %v1795_v37, %v1763_v46  ;;  %v1446_v26 = vsel %vm1444_vm8, %v1445_v42, %v1443_v10  ;;  %vm1451_vm9 = vcmp.eq.f32.partialorder %v5616_v43, 0.0  ;;  %v1810_v14 = vadd.f32 %v5711_v32, %v1746_v38  ;;  %v1687_v17 = vpop.permute.xlu1 %1686  ;;  %v4171_v43 = vld [vmem:[%s4900_s18 + $0x2d0] sm:$0xff]  ;;  %v7549_v10 = vld [vmem:[#allocation11_spill] sm:$0xff]  ;;  %v4181_v47 = vld [vmem:[%s4900_s18 + $0x320] sm:$0xff] }
 0x2b7   : > { %v1760_v23 = vadd.f32 %v1713_v40, %v7545_v7  ;;  %v1453_v25 = vsel %vm1451_vm9, %v1452_v44, %v1450_v11  ;;  %v1338_v63 = vsel %vm1337_vm5, %v5541_v2, %v1336_v34  ;;  %v1858_v30 = vadd.f32 %v5662_v13, %v1826_v0  ;;  %4369 = vmatpush3.bf16.msra.mxu1 %v1874_v16  ;;  %v4175_v37 = vld [vmem:[%s4900_s18 + $0x2f0] sm:$0xff] }
 0x2b8   : > { %v1859_v4 = vadd.f32 %v5662_v13, %v1827_v50  ;;  %v1747_v45 = vadd.f32 %v1687_v17, %v7546_v41  ;;  %v1333_v32 = vand.u32 2147483648, %v5529_v22  ;;  %v1792_v24 = vmul.f32 %v5658_v51, %v1446_v26  ;;  %2263 = vperm.xlu0 %4701, %v4171_v43   ;;  %v4179_v42 = vld [vmem:[%s4900_s18 + $0x310] sm:$0xff]  ;;  %v4185_v26 = vld [vmem:[%s4900_s18 + $0x340] sm:$0xff] }
 0x2b9   : > { %vm1332_vm10 = vcmp.eq.f32.partialorder %v5529_v22, 0.0  ;;  %v1340_v21 = vand.u32 2147483648, %v5541_v2  ;;  %vm1339_vm11 = vcmp.eq.f32.partialorder %v5541_v2, 0.0  ;;  %v1842_v1 = vadd.f32 %v5662_v13, %v1810_v14  ;;  %2254 = vperm.xlu1 %4702, %v4168_v39   ;;  %v4170_v2 = vld [vmem:[%s4900_s18 + $0x2c8] sm:$0xff]  ;;  %v4183_v44 = vld [vmem:[%s4900_s18 + $0x330] sm:$0xff] }
 0x2ba   : > { %v1811_v52 = vadd.f32 %v1779_v12, %v1747_v45  ;;  %v1881_v55 = vpack.c.bf16 %v1859_v4, %v1858_v30  ;;  %v1334_v33 = vsel %vm1332_vm10, %v1333_v32, %v1331_v9  ;;  %v1824_v19 = vadd.f32 %v1792_v24, %v1760_v23  ;;  %v1715_v60 = vpop.permute.xlu1 %1714  ;;  %v4178_v12 = vld [vmem:[%s4900_s18 + $0x308] sm:$0xff]  ;;  %v4180_v9 = vld [vmem:[%s4900_s18 + $0x318] sm:$0xff]  ;;  %v4187_v7 = vld [vmem:[%s4900_s18 + $0x350] sm:$0xff] }
 0x2bb   : > { %v1793_v61 = vmul.f32 %v5658_v51, %v1453_v25  ;;  %v1341_v31 = vsel %vm1339_vm11, %v1340_v21, %v1338_v63  ;;  %v1761_v57 = vadd.f32 %v1715_v60, %v7547_v59  ;;  %v1744_v58 = vadd.f32 %v1681_v35, %v7548_v36  ;;  %v4182_v14 = vld [vmem:[%s4900_s18 + $0x328] sm:$0xff]  ;;  %v4184_v23 = vld [vmem:[%s4900_s18 + $0x338] sm:$0xff]  ;;  %v4189_v63 = vld [vmem:[%s4900_s18 + $0x360] sm:$0xff] }
 0x2bc   : > { %v1843_v22 = vadd.f32 %v5662_v13, %v1811_v52  ;;  %4370 = vmatprep.subr.bf16.mxu1 %v1881_v55  ;;  %v1776_v15 = vmul.f32 %v5658_v51, %v1334_v33  ;;  %v1856_v53 = vadd.f32 %v5662_v13, %v1824_v19  ;;  %v1777_v34 = vmul.f32 %v5658_v51, %v1341_v31  ;;  %v4186_v30 = vld [vmem:[%s4900_s18 + $0x348] sm:$0xff]  ;;  %v4191_v41 = vld [vmem:[%s4900_s18 + $0x370] sm:$0xff]  ;;  %v4188_v45 = vld [vmem:[%s4900_s18 + $0x358] sm:$0xff] }
 0x2bd   : > { %v1825_v48 = vadd.f32 %v1793_v61, %v1761_v57  ;;  %2269 = vperm.xlu0 %4701, %v4173_v56   ;;  %2260 = vperm.xlu1 %4702, %v4170_v2   ;;  %v4193_v32 = vld [vmem:[%s4900_s18 + $0x380] sm:$0xff]  ;;  %v4190_v39 = vld [vmem:[%s4900_s18 + $0x368] sm:$0xff]  ;;  %v4195_v35 = vld [vmem:[%s4900_s18 + $0x390] sm:$0xff] }
 0x2be   : > { %v1873_v62 = vpack.c.bf16 %v1843_v22, %v1842_v1  ;;  %v1683_v8 = vpop.permute.xlu1 %1682  ;;  %v1808_v49 = vadd.f32 %v1776_v15, %v1744_v58  ;;  %v4192_v21 = vld [vmem:[%s4900_s18 + $0x378] sm:$0xff]  ;;  %v4197_v52 = vld [vmem:[%s4900_s18 + $0x3a0] sm:$0xff]  ;;  %v4194_v55 = vld [vmem:[%s4900_s18 + $0x388] sm:$0xff] }
 0x2bf   : > { %v1857_v3 = vadd.f32 %v5662_v13, %v1825_v48  ;;  %v1745_v54 = vadd.f32 %v1683_v8, %v7549_v10  ;;  %v4199_v33 = vld [vmem:[%s4900_s18 + $0x3b0] sm:$0xff]  ;;  %v4196_v1 = vld [vmem:[%s4900_s18 + $0x398] sm:$0xff]  ;;  %v4201_v19 = vld [vmem:[%s4900_s18 + $0x3c0] sm:$0xff] }
 0x2c0   : > { %4371 = vmatpush3.bf16.msra.mxu1 %v1873_v62  ;;  %v1840_v40 = vadd.f32 %v5662_v13, %v1808_v49  ;;  %v1912_v0 = vpop.trf.xlu0  ;;  %v4198_v61 = vld [vmem:[%s4900_s18 + $0x3a8] sm:$0xff]  ;;  %v4203_v60 = vld [vmem:[%s4900_s18 + $0x3d0] sm:$0xff]  ;;  %v4200_v31 = vld [vmem:[%s4900_s18 + $0x3b8] sm:$0xff] }
 0x2c1   : > { %v1809_v5 = vadd.f32 %v1777_v34, %v1745_v54  ;;  %v1880_v38 = vpack.c.bf16 %v1857_v3, %v1856_v53  ;;  %2275 = vperm.xlu0 %4701, %v4175_v37   ;;  %2266 = vperm.xlu1 %4702, %v4172_v28   ;;  %v4205_v22 = vld [vmem:[%s4900_s18 + $0x3e0] sm:$0xff]  ;;  %v4202_v59 = vld [vmem:[%s4900_s18 + $0x3c8] sm:$0xff]  ;;  %v4207_v57 = vld [vmem:[%s4900_s18 + $0x3f0] sm:$0xff] }
 0x2c2   : > { %1952 = vmatprep.mubr.bf16.mxu1 %v1912_v0  ;;  %v4204_v36 = vld [vmem:[%s4900_s18 + $0x3d8] sm:$0xff]  ;;  %v4206_v56 = vld [vmem:[%s4900_s18 + $0x3e8] sm:$0xff]  ;;  %v4708_v2 = vld [vmem:[%s7390_s2 + $0x30] sm:$0xff]  }
 0x2c3   : > { %v1841_v11 = vadd.f32 %v5662_v13, %v1809_v5  ;;  %4372 = vmatprep.subr.bf16.mxu1 %v1880_v38  ;;  %v4707_v58 = vld [vmem:[%s7390_s2 + $0x38] sm:$0xff]   ;;  %v4709_v15 = vld [vmem:[%s7390_s2 + $0x28] sm:$0xff]   ;;  %v4710_v62 = vld [vmem:[%s7390_s2 + $0x20] sm:$0xff]  }
 0x2c4   : > { %v1913_v50 = vpop.trf.xlu0  ;;  %v4208_v48 = vld [vmem:[%s4900_s18 + $0x3f8] sm:$0xff]  ;;  %v4712_v34 = vld [vmem:[%s7390_s2 + $0x10] sm:$0xff]   ;;  %v4713_v8 = vld [vmem:[%s7390_s2 + $0x8] sm:$0xff]   ;;  %s6473_s18 = scalar_lea.vmem %s7391_s3, %s4321_s15 }
 0x2c5   : > { %v1872_v46 = vpack.c.bf16 %v1841_v11, %v1840_v40  ;;  %2281 = vperm.xlu0 %4701, %v4177_v18   ;;  %2272 = vperm.xlu1 %4702, %v4174_v29   ;;  %v4711_v53 = vld [vmem:[%s7390_s2 + $0x18] sm:$0xff]   ;;  %v4714_v3 = vld [vmem:[%s7390_s2] sm:$0xff]  }
 0x2c6   : > { %v4715_v49 = vld [vmem:[%s4916_s22 + $0x38] sm:$0xff]  }
 0x2c7   : > { %4373 = vmatpush3.bf16.msra.mxu1 %v1872_v46 }
 0x2c8   : > { %v1914_v25 = vpop.trf.xlu0  ;;  %4570 = vmatprep.subr.bf16.mxu1 %v4707_v58 }
 0x2c9   : > { %2287 = vperm.xlu0 %4701, %v4179_v42   ;;  %2278 = vperm.xlu1 %4702, %v4176_v20  }
 0x2cc   : > { %v1915_v43 = vpop.trf.xlu0 }
 0x2cd   : > { %2293 = vperm.xlu0 %4701, %v4181_v47   ;;  %2284 = vperm.xlu1 %4702, %v4178_v12   ;;  %v1896_v16 = vpop.trf.xlu1 }
 0x2ce   : > { %1953 = vmatmul.mubr.bf16.vlgmr.msra.gmra.mxu1 %v1896_v16 }
 0x2cf   : > { %1960 = vmatprep.mubr.bf16.mxu1 %v1913_v50  ;;  %4571 = vmatpush3.bf16.msra.mxu1 %v4707_v58 }
 0x2d0   : > { %4572 = vmatprep.subr.bf16.mxu1 %v4708_v2 }
 0x2d1   : > { %2299 = vperm.xlu0 %4701, %v4183_v44   ;;  %2290 = vperm.xlu1 %4702, %v4180_v9   ;;  %v1897_v17 = vpop.trf.xlu1 }
 0x2d3   : > { %4573 = vmatpush3.bf16.msra.mxu1 %v4708_v2 }
 0x2d4   : > { %4574 = vmatprep.subr.bf16.mxu1 %v4709_v15 }
 0x2d5   : > { %2305 = vperm.xlu0 %4701, %v4185_v26   ;;  %2296 = vperm.xlu1 %4702, %v4182_v14   ;;  %v1898_v4 = vpop.trf.xlu1 }
 0x2d6   : > { %1961 = vmatmul.mubr.bf16.gmra.mxu1 %v1897_v17 }
 0x2d7   : > { %1968 = vmatprep.mubr.bf16.mxu1 %v1914_v25  ;;  %4575 = vmatpush3.bf16.msra.mxu1 %v4709_v15 }
 0x2d8   : > { %4576 = vmatprep.subr.bf16.mxu1 %v4710_v62 }
 0x2d9   : > { %2311 = vperm.xlu0 %4701, %v4187_v7   ;;  %2302 = vperm.xlu1 %4702, %v4184_v23   ;;  %v1899_v24 = vpop.trf.xlu1 }
 0x2db   : > { %4577 = vmatpush3.bf16.msra.mxu1 %v4710_v62 }
 0x2dc   : > { %4578 = vmatprep.subr.bf16.mxu1 %v4711_v53 }
 0x2dd   : > { %2317 = vperm.xlu0 %4701, %v4189_v63   ;;  %2308 = vperm.xlu1 %4702, %v4186_v30  }
 0x2de   : > { %1969 = vmatmul.mubr.bf16.gmra.mxu1 %v1898_v4 }
 0x2df   : > { %1976 = vmatprep.mubr.bf16.mxu1 %v1915_v43  ;;  %4579 = vmatpush3.bf16.msra.mxu1 %v4711_v53 }
 0x2e0   : > { %4580 = vmatprep.subr.bf16.mxu1 %v4712_v34 }
 0x2e1   : > { %2323 = vperm.xlu0 %4701, %v4191_v41   ;;  %2314 = vperm.xlu1 %4702, %v4188_v45  }
 0x2e3   : > { %4581 = vmatpush3.bf16.msra.mxu1 %v4712_v34 }
 0x2e4   : > { %4582 = vmatprep.subr.bf16.mxu1 %v4713_v8 }
 0x2e5   : > { %2329 = vperm.xlu0 %4701, %v4193_v32   ;;  %2320 = vperm.xlu1 %4702, %v4190_v39   ;;  %v4716_v39 = vld [vmem:[%s4916_s22 + $0x30] sm:$0xff]  }
 0x2e6   : > { %1977 = vmatmul.mubr.bf16.gmra.mxu1 %v1899_v24 }
 0x2e7   : > { %4583 = vmatpush3.bf16.msra.mxu1 %v4713_v8 }
 0x2e8   : > { %4584 = vmatprep.subr.bf16.mxu1 %v4714_v3 }
 0x2e9   : > { %2335 = vperm.xlu0 %4701, %v4195_v35   ;;  %2326 = vperm.xlu1 %4702, %v4192_v21  }
 0x2eb   : > { %4585 = vmatpush3.bf16.msra.mxu1 %v4714_v3 }
 0x2ec   : > { %4594 = vmatprep.subr.bf16.mxu1 %v4715_v49 }
 0x2ed   : > { %2341 = vperm.xlu0 %4701, %v4197_v52   ;;  %2332 = vperm.xlu1 %4702, %v4194_v55   ;;  %v4717_v55 = vld [vmem:[%s4916_s22 + $0x28] sm:$0xff]  }
 0x2f1   : > { %2347 = vperm.xlu0 %4701, %v4199_v33   ;;  %2338 = vperm.xlu1 %4702, %v4196_v1  }
 0x2f5   : > { %2353 = vperm.xlu0 %4701, %v4201_v19   ;;  %2344 = vperm.xlu1 %4702, %v4198_v61  }
 0x2f9   : > { %2359 = vperm.xlu0 %4701, %v4203_v60   ;;  %2350 = vperm.xlu1 %4702, %v4200_v31  }
 0x2fd   : > { %2365 = vperm.xlu0 %4701, %v4205_v22   ;;  %2356 = vperm.xlu1 %4702, %v4202_v59   ;;  %v4718_v22 = vld [vmem:[%s4916_s22 + $0x20] sm:$0xff]  }
 0x2fe   : > { %v6156_v54 = vpop.permute.xlu0 %2185 }
 0x2ff   : > { %vm2376_vm13 = vcmp.eq.s32.totalorder %v4976_v6, %v6156_v54 }
 0x300   : > { %v4209_v62 = vsel %vm2376_vm13, 1.0, %v7507_v27 }
 0x301   : > { %2371 = vperm.xlu0 %4701, %v4207_v57   ;;  %2362 = vperm.xlu1 %4702, %v4204_v36  }
 0x302   : > { %v6160_v28 = vpop.permute.xlu0 %2191 }
 0x303   : > { %vm2378_vm0 = vcmp.eq.s32.totalorder %v4976_v6, %v6160_v28 }
 0x305   : > { %2368 = vperm.xlu1 %4702, %v4206_v56  }
 0x306   : > { %v2189_v10 = vpop.permute.xlu1 %2188  ;;  %v6164_v38 = vpop.permute.xlu0 %2197 }
 0x307   : > { %vm2377_vm12 = vcmp.eq.s32.totalorder %v4976_v6, %v2189_v10  ;;  %vm2380_vm1 = vcmp.eq.s32.totalorder %v4976_v6, %v6164_v38 }
 0x308   : > { %v4210_v56 = vsel %vm2377_vm12, 1.0, %v7507_v27 }
 0x309   : > { %2374 = vperm.xlu1 %4702, %v4208_v48   ;;  %v2568_v8 = vpack.c.bf16 %v4210_v56, %v4209_v62 }
 0x30a   : > { %v6168_v11 = vpop.permute.xlu0 %2203 }
 0x30b   : > { %v6158_v37 = vpop.permute.xlu1 %2194  ;;  %vm2382_vm5 = vcmp.eq.s32.totalorder %v4976_v6, %v6168_v11 }
 0x30c   : > { %vm2379_vm14 = vcmp.eq.s32.totalorder %v4976_v6, %v6158_v37  ;;  %v4211_v37 = vsel %vm2378_vm0, 1.0, %v7507_v27 }
 0x30e   : > { %v6172_v0 = vpop.permute.xlu0 %2209 }
 0x30f   : > { %v6162_v5 = vpop.permute.xlu1 %2200  ;;  %vm2384_vm6 = vcmp.eq.s32.totalorder %v4976_v6, %v6172_v0 }
 0x310   : > { %vm2381_vm15 = vcmp.eq.s32.totalorder %v4976_v6, %v6162_v5  ;;  %v4213_v5 = vsel %vm2380_vm1, 1.0, %v7507_v27 }
 0x311   : > { %v4214_v10 = vsel %vm2381_vm15, 1.0, %v7507_v27 }
 0x312   : > { %v6176_v46 = vpop.permute.xlu0 %2215 }
 0x313   : > { %v6166_v40 = vpop.permute.xlu1 %2206  ;;  %vm2386_vm9 = vcmp.eq.s32.totalorder %v4976_v6, %v6176_v46 }
 0x314   : > { %vm2383_vm2 = vcmp.eq.s32.totalorder %v4976_v6, %v6166_v40 }
 0x316   : > { %v6180_v12 = vpop.permute.xlu0 %2221 }
 0x317   : > { %v6170_v18 = vpop.permute.xlu1 %2212  ;;  %vm2388_vm10 = vcmp.eq.s32.totalorder %v4976_v6, %v6180_v12 }
 0x318   : > { %vm2385_vm3 = vcmp.eq.s32.totalorder %v4976_v6, %v6170_v18 }
 0x319   : > { %v4218_v40 = vsel %vm2385_vm3, 1.0, %v7507_v27 }
 0x31a   : > { %v6184_v17 = vpop.permute.xlu0 %2227 }
 0x31b   : > { %v6174_v29 = vpop.permute.xlu1 %2218  ;;  %vm2390_vm13 = vcmp.eq.s32.totalorder %v4976_v6, %v6184_v17 }
 0x31c   : > { %vm2387_vm7 = vcmp.eq.s32.totalorder %v4976_v6, %v6174_v29 }
 0x31d   : > { %v4220_v0 = vsel %vm2387_vm7, 1.0, %v7507_v27 }
 0x31e   : > { %v6188_v4 = vpop.permute.xlu0 %2233 }
 0x31f   : > { %v6178_v20 = vpop.permute.xlu1 %2224 }
 0x320   : > { %vm2389_vm8 = vcmp.eq.s32.totalorder %v4976_v6, %v6178_v20 }
 0x322   : > { %v6193_v52 = vpop.permute.xlu0 %2239 }
 0x323   : > { %v6182_v50 = vpop.permute.xlu1 %2230  ;;  %vm2394_vm1 = vcmp.eq.s32.totalorder %v4976_v6, %v6193_v52 }
 0x324   : > { %vm2391_vm11 = vcmp.eq.s32.totalorder %v4976_v6, %v6182_v50 }
 0x325   : > { %v4224_v12 = vsel %vm2391_vm11, 1.0, %v7507_v27 }
 0x327   : > { %v6186_v63 = vpop.permute.xlu1 %2236  ;;  %v6199_v57 = vpop.permute.xlu0 %2245 }
 0x328   : > { %vm2393_vm12 = vcmp.eq.s32.totalorder %v4976_v6, %v6186_v63 }
 0x32b   : > { %v6191_v35 = vpop.permute.xlu1 %2242  ;;  %v6208_v53 = vpop.permute.xlu0 %2251 }
 0x32c   : > { %vm2395_vm15 = vcmp.eq.s32.totalorder %v4976_v6, %v6191_v35 }
 0x32f   : > { %v6223_v54 = vpop.permute.xlu0 %2257 }
 0x330   : > { %v6196_v60 = vpop.permute.xlu1 %2248  ;;  %vm2400_vm7 = vcmp.eq.s32.totalorder %v4976_v6, %v6223_v54 }
 0x331   : > { %vm2397_vm0 = vcmp.eq.s32.totalorder %v4976_v6, %v6196_v60 }
 0x332   : > { %v4230_v35 = vsel %vm2397_vm0, 1.0, %v7507_v27 }
 0x333   : > { %v6237_v38 = vpop.permute.xlu0 %2263 }
 0x334   : > { %v6205_v2 = vpop.permute.xlu1 %2254 }
 0x335   : > { %vm2399_vm3 = vcmp.eq.s32.totalorder %v4976_v6, %v6205_v2 }
 0x338   : > { %v6217_v3 = vpop.permute.xlu1 %2260  ;;  %v6249_v11 = vpop.permute.xlu0 %2269 }
 0x339   : > { %vm2404_vm11 = vcmp.eq.s32.totalorder %v4976_v6, %v6249_v11 }
 0x33c   : > { %v6229_v28 = vpop.permute.xlu1 %2266  ;;  %v6265_v20 = vpop.permute.xlu0 %2275 }
 0x340   : > { %v6245_v18 = vpop.permute.xlu1 %2272  ;;  %v2282_v50 = vpop.permute.xlu0 %2281 }
 0x344   : > { %v6261_v29 = vpop.permute.xlu1 %2278 }
 0x348   : > { %v6275_v46 = vpop.permute.xlu1 %2284 }
 0x34c   : > { %v6285_v17 = vpop.permute.xlu1 %2290 }
 0x34d   : > { %vm2411_vm0 = vcmp.eq.s32.totalorder %v4976_v6, %v6285_v17 }
 0x38e   : > { %v4374_v42 = vpop.f32.mrf.mxu1 }
 0x390   : > { %v4375_v47 = vpop.f32.mrf.mxu1 }
 0x391   : > { %v4376_v16 = vadd.f32 %v4375_v47, %v4374_v42  ;;  %v2570_v47 = vpack.c.bf16 %v4214_v10, %v4213_v5 }
 0x392   : > { %v4377_v44 = vpop.f32.mrf.mxu1 }
 0x394   : > { %v4378_v9 = vpop.f32.mrf.mxu1 }
 0x395   : > { %v4379_v26 = vadd.f32 %v4378_v9, %v4377_v44  ;;  %v4216_v44 = vsel %vm2383_vm2, 1.0, %v7507_v27  ;;  %v4215_v9 = vsel %vm2382_vm5, 1.0, %v7507_v27  ;;  %vm2396_vm2 = vcmp.eq.s32.totalorder %v4976_v6, %v6199_v57 }
 0x396   : > { %v4380_v14 = vpop.f32.mrf.mxu1  ;;  %vm2401_vm5 = vcmp.eq.s32.totalorder %v4976_v6, %v6217_v3  ;;  %v4233_v57 = vsel %vm2400_vm7, 1.0, %v7507_v27 }
 0x397   : > { %v1985_v7 = vpack.c.bf16 %v4379_v26, %v4376_v16  ;;  %v2571_v16 = vpack.c.bf16 %v4216_v44, %v4215_v9  ;;  %v4217_v26 = vsel %vm2384_vm6, 1.0, %v7507_v27  ;;  %vm2398_vm6 = vcmp.eq.s32.totalorder %v4976_v6, %v6208_v53 }
 0x398   : > { %v4381_v23 = vpop.f32.mrf.mxu1  ;;  %v4234_v60 = vsel %vm2401_vm5, 1.0, %v7507_v27  ;;  %v4244_v44 = vsel %vm2411_vm0, 1.0, %v7507_v27 }
 0x399   : > { %4586 = vmatprep.mubr.bf16.mxu1 %v1985_v7  ;;  %v4382_v41 = vadd.f32 %v4381_v23, %v4380_v14  ;;  %v2572_v14 = vpack.c.bf16 %v4218_v40, %v4217_v26  ;;  %v4222_v7 = vsel %vm2389_vm8, 1.0, %v7507_v27  ;;  %v4219_v23 = vsel %vm2386_vm9, 1.0, %v7507_v27 }
 0x39a   : > { %v4383_v25 = vpop.f32.mrf.mxu1  ;;  %vm2403_vm8 = vcmp.eq.s32.totalorder %v4976_v6, %v6229_v28  ;;  %vm2405_vm9 = vcmp.eq.s32.totalorder %v4976_v6, %v6245_v18 }
 0x39b   : > { %v4236_v2 = vsel %vm2403_vm8, 1.0, %v7507_v27 }
 0x39c   : > { %v4384_v30 = vpop.f32.mrf.mxu1 }
 0x39d   : > { %v4385_v45 = vadd.f32 %v4384_v30, %v4383_v25  ;;  %v2573_v25 = vpack.c.bf16 %v4220_v0, %v4219_v23  ;;  %v4221_v30 = vsel %vm2388_vm10, 1.0, %v7507_v27  ;;  %vm2402_vm10 = vcmp.eq.s32.totalorder %v4976_v6, %v6237_v38 }
 0x39e   : > { %v4386_v43 = vpop.f32.mrf.mxu1  ;;  %v4235_v62 = vsel %vm2402_vm10, 1.0, %v7507_v27 }
 0x39f   : > { %v1986_v32 = vpack.c.bf16 %v4385_v45, %v4382_v41  ;;  %v2574_v41 = vpack.c.bf16 %v4222_v7, %v4221_v30  ;;  %v4226_v45 = vsel %vm2393_vm12, 1.0, %v7507_v27  ;;  %v2581_v53 = vpack.c.bf16 %v4236_v2, %v4235_v62 }
 0x3a0   : > { %v4387_v24 = vpop.f32.mrf.mxu1  ;;  %vm2407_vm12 = vcmp.eq.s32.totalorder %v4976_v6, %v6261_v29 }
 0x3a1   : > { %4587 = vmatmul.mubr.bf16.vlgmr.msra.gmra.mxu1 %v1986_v32  ;;  %v4388_v1 = vadd.f32 %v4387_v24, %v4386_v43  ;;  %v4223_v43 = vsel %vm2390_vm13, 1.0, %v7507_v27  ;;  %v4228_v24 = vsel %vm2395_vm15, 1.0, %v7507_v27  ;;  %vm2409_vm13 = vcmp.eq.s32.totalorder %v4976_v6, %v6275_v46 }
 0x3a2   : > { %v4389_v21 = vpop.f32.mrf.mxu1  ;;  %4595 = vmatpush3.bf16.msra.mxu1 %v4715_v49  ;;  %v4212_v49 = vsel %vm2379_vm14, 1.0, %v7507_v27  ;;  %vm2392_vm14 = vcmp.eq.s32.totalorder %v4976_v6, %v6188_v4  ;;  %v2575_v32 = vpack.c.bf16 %v4224_v12, %v4223_v43  ;;  %v6293_v4 = vpop.permute.xlu0 %2287  ;;  %v4240_v10 = vsel %vm2407_vm12, 1.0, %v7507_v27 }
 0x3a3   : > { %4596 = vmatprep.subr.bf16.mxu1 %v4716_v39  ;;  %v2569_v42 = vpack.c.bf16 %v4212_v49, %v4211_v37  ;;  %v4225_v63 = vsel %vm2392_vm14, 1.0, %v7507_v27  ;;  %vm2406_vm14 = vcmp.eq.s32.totalorder %v4976_v6, %v6265_v20  ;;  %vm2408_vm15 = vcmp.eq.s32.totalorder %v4976_v6, %v2282_v50 }
 0x3a4   : > { %v4390_v33 = vpop.f32.mrf.mxu1  ;;  %v4242_v54 = vsel %vm2409_vm13, 1.0, %v7507_v27  ;;  %v4239_v37 = vsel %vm2406_vm14, 1.0, %v7507_v27  ;;  %v4241_v5 = vsel %vm2408_vm15, 1.0, %v7507_v27 }
 0x3a5   : > { %v4391_v19 = vadd.f32 %v4390_v33, %v4389_v21  ;;  %v4227_v21 = vsel %vm2394_vm1, 1.0, %v7507_v27  ;;  %v4229_v33 = vsel %vm2396_vm2, 1.0, %v7507_v27  ;;  %v6342_v28 = vpack.c.bf16 %v4242_v54, %v4241_v5 }
 0x3a6   : > { %v4392_v61 = vpop.f32.mrf.mxu1  ;;  %4597 = vmatpush3.bf16.msra.mxu1 %v4716_v39  ;;  %v2576_v39 = vpack.c.bf16 %v4226_v45, %v4225_v63  ;;  %v2294_v52 = vpop.permute.xlu0 %2293  ;;  %vm2410_vm2 = vcmp.eq.s32.totalorder %v4976_v6, %v6293_v4 }
 0x3a7   : > { %v1987_v31 = vpack.c.bf16 %v4391_v19, %v4388_v1  ;;  %4598 = vmatprep.subr.bf16.mxu1 %v4717_v55  ;;  %v2297_v1 = vpop.permute.xlu1 %2296  ;;  %v2578_v19 = vpack.c.bf16 %v4230_v35, %v4229_v33 }
 0x3a8   : > { %v4393_v59 = vpop.f32.mrf.mxu1  ;;  %vm2413_vm1 = vcmp.eq.s32.totalorder %v4976_v6, %v2297_v1 }
 0x3a9   : > { %4590 = vmatprep.mubr.bf16.mxu1 %v1987_v31  ;;  %v4394_v48 = vadd.f32 %v4393_v59, %v4392_v61  ;;  %v4232_v61 = vsel %vm2399_vm3, 1.0, %v7507_v27  ;;  %vm2412_vm3 = vcmp.eq.s32.totalorder %v4976_v6, %v2294_v52  ;;  %v4246_v40 = vsel %vm2413_vm1, 1.0, %v7507_v27 }
 0x3aa   : > { %v4395_v36 = vpop.f32.mrf.mxu1  ;;  %4599 = vmatpush3.bf16.msra.mxu1 %v4717_v55  ;;  %v2577_v55 = vpack.c.bf16 %v4228_v24, %v4227_v21  ;;  %v4245_v18 = vsel %vm2412_vm3, 1.0, %v7507_v27 }
 0x3ab   : > { %4600 = vmatprep.subr.bf16.mxu1 %v4718_v22  ;;  %v2303_v31 = vpop.permute.xlu1 %2302  ;;  %v6359_v11 = vpack.c.bf16 %v4246_v40, %v4245_v18 }
 0x3ac   : > { %v4396_v58 = vpop.f32.mrf.mxu1  ;;  %vm2415_vm5 = vcmp.eq.s32.totalorder %v4976_v6, %v2303_v31 }
 0x3ad   : > { %v4397_v15 = vadd.f32 %v4396_v58, %v4395_v36  ;;  %v2300_v36 = vpop.permute.xlu0 %2299  ;;  %v2580_v58 = vpack.c.bf16 %v4234_v60, %v4233_v57  ;;  %v4248_v7 = vsel %vm2415_vm5, 1.0, %v7507_v27 }
 0x3ae   : > { %4601 = vmatpush3.bf16.msra.mxu1 %v4718_v22  ;;  %v4231_v22 = vsel %vm2398_vm6, 1.0, %v7507_v27  ;;  %vm2414_vm7 = vcmp.eq.s32.totalorder %v4976_v6, %v2300_v36 }
 0x3af   : > { %v1988_v34 = vpack.c.bf16 %v4397_v15, %v4394_v48  ;;  %v2579_v59 = vpack.c.bf16 %v4232_v61, %v4231_v22  ;;  %v2309_v56 = vpop.permute.xlu1 %2308  ;;  %v4238_v48 = vsel %vm2405_vm9, 1.0, %v7507_v27 }
 0x3b0   : > { %vm2417_vm6 = vcmp.eq.s32.totalorder %v4976_v6, %v2309_v56 }
 0x3b1   : > { %4591 = vmatmul.mubr.bf16.gmra.mxu1 %v1988_v34  ;;  %v2306_v15 = vpop.permute.xlu0 %2305  ;;  %v4237_v34 = vsel %vm2404_vm11, 1.0, %v7507_v27  ;;  %v4250_v29 = vsel %vm2417_vm6, 1.0, %v7507_v27 }
 0x3b2   : > { %4602 = vmatprep.mubr.msk.bf16.mxu1 %vm744_vm4, %v2568_v8  ;;  %v2582_v8 = vpack.c.bf16 %v4238_v48, %v4237_v34  ;;  %vm2416_vm8 = vcmp.eq.s32.totalorder %v4976_v6, %v2306_v15 }
 0x3b3   : > { %v2315_v3 = vpop.permute.xlu1 %2314  ;;  %v4249_v20 = vsel %vm2416_vm8, 1.0, %v7507_v27 }
 0x3b4   : > { %vm2419_vm9 = vcmp.eq.s32.totalorder %v4976_v6, %v2315_v3 }
 0x3b5   : > { %v2312_v49 = vpop.permute.xlu0 %2311  ;;  %v4252_v45 = vsel %vm2419_vm9, 1.0, %v7507_v27 }
 0x3b6   : > { %vm2418_vm11 = vcmp.eq.s32.totalorder %v4976_v6, %v2312_v49 }
 0x3b7   : > { %v4251_v43 = vsel %vm2418_vm11, 1.0, %v7507_v27 }
 0x3b9   : > { %4603 = vmatmul.mubr.msk.bf16.vlgmr.msra.gmra.mxu1 %vm744_vm4, %v2569_v42  ;;  %v2583_v42 = vpack.c.bf16 %v4240_v10, %v4239_v37  ;;  %v2318_v38 = vpop.permute.xlu0 %2317 }
 0x3ba   : > { %4606 = vmatprep.mubr.msk.bf16.mxu1 %vm744_vm4, %v2570_v47  ;;  %v2321_v47 = vpop.permute.xlu1 %2320  ;;  %vm2420_vm12 = vcmp.eq.s32.totalorder %v4976_v6, %v2318_v38 }
 0x3bb   : > { %vm2421_vm10 = vcmp.eq.s32.totalorder %v4976_v6, %v2321_v47  ;;  %v4253_v63 = vsel %vm2420_vm12, 1.0, %v7507_v27 }
 0x3bc   : > { %v4254_v50 = vsel %vm2421_vm10, 1.0, %v7507_v27 }
 0x3bd   : > { %v6391_v17 = vpack.c.bf16 %v4254_v50, %v4253_v63 }
 0x3be   : > { %v2327_v9 = vpop.permute.xlu1 %2326 }
 0x3bf   : > { %7552 = vst [vmem:[#allocation2_spill] sm:$0xff] %v6391_v17  ;;  %vm2423_vm13 = vcmp.eq.s32.totalorder %v4976_v6, %v2327_v9 }
 0x3c0   : > { %v4256_v24 = vsel %vm2423_vm13, 1.0, %v7507_v27 }
 0x3c1   : > { %4607 = vmatmul.mubr.msk.bf16.gmra.mxu1 %vm744_vm4, %v2571_v16  ;;  %v4243_v16 = vsel %vm2410_vm2, 1.0, %v7507_v27 }
 0x3c2   : > { %4610 = vmatprep.mubr.msk.bf16.mxu1 %vm744_vm4, %v2572_v14  ;;  %v6356_v26 = vpack.c.bf16 %v4244_v44, %v4243_v16  ;;  %v2324_v14 = vpop.permute.xlu0 %2323  ;;  %v2333_v0 = vpop.permute.xlu1 %2332 }
 0x3c3   : > { %vm2425_vm14 = vcmp.eq.s32.totalorder %v4976_v6, %v2333_v0  ;;  %vm2422_vm15 = vcmp.eq.s32.totalorder %v4976_v6, %v2324_v14 }
 0x3c4   : > { %v4258_v35 = vsel %vm2425_vm14, 1.0, %v7507_v27 }
 0x3c6   : > { %v2330_v23 = vpop.permute.xlu0 %2329  ;;  %v2339_v46 = vpop.permute.xlu1 %2338 }
 0x3c7   : > { %vm2424_vm0 = vcmp.eq.s32.totalorder %v4976_v6, %v2330_v23  ;;  %vm2427_vm1 = vcmp.eq.s32.totalorder %v4976_v6, %v2339_v46 }
 0x3c8   : > { %v4257_v1 = vsel %vm2424_vm0, 1.0, %v7507_v27  ;;  %v4260_v60 = vsel %vm2427_vm1, 1.0, %v7507_v27 }
 0x3c9   : > { %4611 = vmatmul.mubr.msk.bf16.gmra.mxu1 %vm744_vm4, %v2573_v25  ;;  %v4247_v25 = vsel %vm2414_vm7, 1.0, %v7507_v27  ;;  %v6407_v52 = vpack.c.bf16 %v4258_v35, %v4257_v1 }
 0x3ca   : > { %4614 = vmatprep.mubr.msk.bf16.mxu1 %vm744_vm4, %v2574_v41  ;;  %v6372_v30 = vpack.c.bf16 %v4248_v7, %v4247_v25  ;;  %v6375_v41 = vpack.c.bf16 %v4250_v29, %v4249_v20  ;;  %v2336_v12 = vpop.permute.xlu0 %2335 }
 0x3cb   : > { %vm2426_vm3 = vcmp.eq.s32.totalorder %v4976_v6, %v2336_v12 }
 0x3cc   : > { %7550 = vst [vmem:[#allocation6_spill] sm:$0xff] %v6375_v41 }
 0x3ce   : > { %v2342_v4 = vpop.permute.xlu0 %2341 }
 0x3cf   : > { %vm2428_vm5 = vcmp.eq.s32.totalorder %v4976_v6, %v2342_v4 }
 0x3d0   : > { %v4261_v36 = vsel %vm2428_vm5, 1.0, %v7507_v27 }
 0x3d1   : > { %4615 = vmatmul.mubr.msk.bf16.gmra.mxu1 %vm744_vm4, %v2575_v32  ;;  %v6388_v32 = vpack.c.bf16 %v4252_v45, %v4251_v43 }
 0x3d2   : > { %4618 = vmatprep.mubr.msk.bf16.mxu1 %vm744_vm4, %v2576_v39  ;;  %v2345_v39 = vpop.permute.xlu1 %2344 }
 0x3d3   : > { %7551 = vst [vmem:[#allocation38_spill] sm:$0xff] %v6388_v32  ;;  %vm2429_vm2 = vcmp.eq.s32.totalorder %v4976_v6, %v2345_v39 }
 0x3d4   : > { %v4262_v31 = vsel %vm2429_vm2, 1.0, %v7507_v27 }
 0x3d6   : > { %v2351_v21 = vpop.permute.xlu1 %2350 }
 0x3d7   : > { %vm2431_vm6 = vcmp.eq.s32.totalorder %v4976_v6, %v2351_v21 }
 0x3d8   : > { %v4264_v48 = vsel %vm2431_vm6, 1.0, %v7507_v27 }
 0x3d9   : > { %4619 = vmatmul.mubr.msk.bf16.gmra.mxu1 %vm744_vm4, %v2577_v55  ;;  %v4255_v55 = vsel %vm2422_vm15, 1.0, %v7507_v27 }
 0x3da   : > { %4622 = vmatprep.mubr.msk.bf16.mxu1 %vm744_vm4, %v2578_v19  ;;  %v6404_v33 = vpack.c.bf16 %v4256_v24, %v4255_v55  ;;  %v2348_v19 = vpop.permute.xlu0 %2347  ;;  %v2357_v61 = vpop.permute.xlu1 %2356 }
 0x3db   : > { %vm2433_vm7 = vcmp.eq.s32.totalorder %v4976_v6, %v2357_v61  ;;  %vm2430_vm8 = vcmp.eq.s32.totalorder %v4976_v6, %v2348_v19 }
 0x3dc   : > { %7553 = vst [vmem:[#allocation37_spill] sm:$0xff] %v6404_v33  ;;  %v4266_v15 = vsel %vm2433_vm7, 1.0, %v7507_v27  ;;  %v4263_v62 = vsel %vm2430_vm8, 1.0, %v7507_v27 }
 0x3de   : > { %v2354_v22 = vpop.permute.xlu0 %2353  ;;  %v2363_v56 = vpop.permute.xlu1 %2362 }
 0x3df   : > { %vm2432_vm9 = vcmp.eq.s32.totalorder %v4976_v6, %v2354_v22  ;;  %vm2435_vm10 = vcmp.eq.s32.totalorder %v4976_v6, %v2363_v56 }
 0x3e0   : > { %v4265_v34 = vsel %vm2432_vm9, 1.0, %v7507_v27  ;;  %v4268_v10 = vsel %vm2435_vm10, 1.0, %v7507_v27 }
 0x3e1   : > { %4623 = vmatmul.mubr.msk.bf16.gmra.mxu1 %vm744_vm4, %v2579_v59  ;;  %v4259_v59 = vsel %vm2426_vm3, 1.0, %v7507_v27  ;;  %v6439_v3 = vpack.c.bf16 %v4266_v15, %v4265_v34 }
 0x3e2   : > { %4626 = vmatprep.mubr.msk.bf16.mxu1 %vm744_vm4, %v2580_v58  ;;  %v6420_v57 = vpack.c.bf16 %v4260_v60, %v4259_v59  ;;  %v6423_v58 = vpack.c.bf16 %v4262_v31, %v4261_v36  ;;  %v2360_v2 = vpop.permute.xlu0 %2359 }
 0x3e3   : > { %vm2434_vm12 = vcmp.eq.s32.totalorder %v4976_v6, %v2360_v2 }
 0x3e4   : > { %v4267_v37 = vsel %vm2434_vm12, 1.0, %v7507_v27 }
 0x3e5   : > { %v6452_v5 = vpack.c.bf16 %v4268_v10, %v4267_v37 }
 0x3e6   : > { %v2366_v49 = vpop.permute.xlu0 %2365 }
 0x3e7   : > { %vm2436_vm13 = vcmp.eq.s32.totalorder %v4976_v6, %v2366_v49 }
 0x3e8   : > { %v4269_v47 = vsel %vm2436_vm13, 1.0, %v7507_v27 }
 0x3e9   : > { %4627 = vmatmul.mubr.msk.bf16.gmra.mxu1 %vm744_vm4, %v2581_v53  ;;  %v6436_v53 = vpack.c.bf16 %v4264_v48, %v4263_v62 }
 0x3ea   : > { %4630 = vmatprep.mubr.msk.bf16.mxu1 %vm744_vm4, %v2582_v8  ;;  %v2369_v8 = vpop.permute.xlu1 %2368  ;;  %v2372_v44 = vpop.permute.xlu0 %2371 }
 0x3eb   : > { %vm2437_vm11 = vcmp.eq.s32.totalorder %v4976_v6, %v2369_v8  ;;  %vm2438_vm15 = vcmp.eq.s32.totalorder %v4976_v6, %v2372_v44 }
 0x3ec   : > { %v4270_v54 = vsel %vm2437_vm11, 1.0, %v7507_v27  ;;  %v4271_v9 = vsel %vm2438_vm15, 1.0, %v7507_v27 }
 0x3ed   : > { %v6455_v38 = vpack.c.bf16 %v4270_v54, %v4269_v47 }
 0x3f1   : > { %4631 = vmatmul.mubr.msk.bf16.gmra.mxu1 %vm744_vm4, %v2583_v42  ;;  %v2375_v42 = vpop.permute.xlu1 %2374 }
 0x3f2   : > { %4634 = vmatprep.mubr.msk.bf16.mxu1 %vm744_vm4, %v6342_v28  ;;  %vm2439_vm14 = vcmp.eq.s32.totalorder %v4976_v6, %v2375_v42 }
 0x3f3   : > { %v4272_v40 = vsel %vm2439_vm14, 1.0, %v7507_v27 }
 0x3f4   : > { %v6465_v16 = vpack.c.bf16 %v4272_v40, %v4271_v9 }
 0x3f6   : > { %7554 = vst [vmem:[#allocation3_spill] sm:$0xff] %v6465_v16 }
 0x3f9   : > { %4635 = vmatmul.mubr.msk.bf16.gmra.mxu1 %vm744_vm4, %v6356_v26 }
 0x3fa   : > { %4638 = vmatprep.mubr.msk.bf16.mxu1 %vm744_vm4, %v6359_v11 }
 0x401   : > { %4639 = vmatmul.mubr.msk.bf16.gmra.mxu1 %vm744_vm4, %v6372_v30 }
 0x402   : > { %4642 = vmatprep.mubr.msk.bf16.mxu1 %vm744_vm4, %v6375_v41 }
 0x409   : > { %4643 = vmatmul.mubr.msk.bf16.gmra.mxu1 %vm744_vm4, %v6388_v32 }
 0x40a   : > { %4646 = vmatprep.mubr.msk.bf16.mxu1 %vm744_vm4, %v6391_v17 }
 0x411   : > { %4647 = vmatmul.mubr.msk.bf16.gmra.mxu1 %vm744_vm4, %v6404_v33 }
 0x412   : > { %4650 = vmatprep.mubr.msk.bf16.mxu1 %vm744_vm4, %v6407_v52 }
 0x419   : > { %4651 = vmatmul.mubr.msk.bf16.gmra.mxu1 %vm744_vm4, %v6420_v57 }
 0x41a   : > { %4654 = vmatprep.mubr.msk.bf16.mxu1 %vm744_vm4, %v6423_v58 }
 0x421   : > { %4655 = vmatmul.mubr.msk.bf16.gmra.mxu1 %vm744_vm4, %v6436_v53 }
 0x422   : > { %4658 = vmatprep.mubr.msk.bf16.mxu1 %vm744_vm4, %v6439_v3 }
 0x429   : > { %4659 = vmatmul.mubr.msk.bf16.gmra.mxu1 %vm744_vm4, %v6452_v5 }
 0x42a   : > { %4662 = vmatprep.mubr.msk.bf16.mxu1 %vm744_vm4, %v6455_v38 }
 0x431   : > { %4663 = vmatmul.mubr.msk.bf16.gmra.mxu1 %vm744_vm4, %v6465_v16 }
 0x461   : > { %v4588_v6 = vpop.f32.mrf.mxu1 }
 0x462   : > { %2104 = vst [vmem:[%s6473_s18 + $0x10] sm:$0xff] %v4588_v6 }
 0x463   : > { %v2071_v27 = vpop.f32.mrf.mxu1 }
 0x464   : > { %2102 = vst [vmem:[%s6473_s18] sm:$0xff] %v2071_v27 }
 0x465   : > { %v4589_v18 = vpop.f32.mrf.mxu1 }
 0x466   : > { %2105 = vst [vmem:[%s6473_s18 + $0x18] sm:$0xff] %v4589_v18  ;;  %v7558_v18 = vld [vmem:[#allocation8_spill] sm:$0xff] }
 0x467   : > { %v2074_v14 = vpop.f32.mrf.mxu1 }
 0x468   : > { %2103 = vst [vmem:[%s6473_s18 + $0x8] sm:$0xff] %v2074_v14 }
 0x471   : > { %v4592_v0 = vpop.f32.mrf.mxu1 }
 0x472   : > { %2108 = vst [vmem:[%s6473_s18 + $0x30] sm:$0xff] %v4592_v0 }
 0x473   : > { %v2087_v7 = vpop.f32.mrf.mxu1 }
 0x474   : > { %2106 = vst [vmem:[%s6473_s18 + $0x20] sm:$0xff] %v2087_v7 }
 0x475   : > { %v4593_v29 = vpop.f32.mrf.mxu1 }
 0x476   : > { %2109 = vst [vmem:[%s6473_s18 + $0x38] sm:$0xff] %v4593_v29 }
 0x477   : > { %v2090_v23 = vpop.f32.mrf.mxu1 }
 0x478   : > { %2107 = vst [vmem:[%s6473_s18 + $0x28] sm:$0xff] %v2090_v23 }
 0x479   : > { %v6483_v25 = vpop.f32.mrf.mxu1 }
 0x47b   : > { %v6485_v20 = vpop.f32.mrf.mxu1 }
 0x47d   : > { %v6487_v46 = vpop.f32.mrf.mxu1 }
 0x47f   : > { %v6489_v12 = vpop.f32.mrf.mxu1 }
 0x481   : > { %v6491_v45 = vpop.f32.mrf.mxu1 }
 0x483   : > { %v6493_v50 = vpop.f32.mrf.mxu1 }
 0x485   : > { %v6495_v43 = vpop.f32.mrf.mxu1 }
 0x487   : > { %v6497_v63 = vpop.f32.mrf.mxu1 }
 0x489   : > { %v6499_v39 = vpop.f32.mrf.mxu1 }
 0x48b   : > { %v6501_v4 = vpop.f32.mrf.mxu1 }
 0x48d   : > { %v6503_v24 = vpop.f32.mrf.mxu1 }
 0x48f   : > { %v6505_v35 = vpop.f32.mrf.mxu1 }
 0x491   : > { %v6507_v21 = vpop.f32.mrf.mxu1 }
 0x493   : > { %v6509_v55 = vpop.f32.mrf.mxu1 }
 0x495   : > { %v6511_v1 = vpop.f32.mrf.mxu1 }
 0x497   : > { %v6513_v19 = vpop.f32.mrf.mxu1 }
 0x499   : > { %v6515_v61 = vpop.f32.mrf.mxu1 }
 0x49b   : > { %v6517_v60 = vpop.f32.mrf.mxu1 }
 0x49d   : > { %v6519_v31 = vpop.f32.mrf.mxu1 }
 0x49f   : > { %v6521_v22 = vpop.f32.mrf.mxu1 }
 0x4a1   : > { %v6523_v59 = vpop.f32.mrf.mxu1 }
 0x4a3   : > { %v6525_v36 = vpop.f32.mrf.mxu1 }
 0x4a5   : > { %v6527_v56 = vpop.f32.mrf.mxu1 }
 0x4a7   : > { %v6529_v2 = vpop.f32.mrf.mxu1 }
 0x4a9   : > { %v6531_v48 = vpop.f32.mrf.mxu1 }
 0x4ab   : > { %v6533_v15 = vpop.f32.mrf.mxu1 }
 0x4ad   : > { %v6535_v62 = vpop.f32.mrf.mxu1 }
 0x4af   : > { %v6537_v34 = vpop.f32.mrf.mxu1 }
 0x4b1   : > { %v6539_v8 = vpop.f32.mrf.mxu1 }
 0x4b3   : > { %v6541_v49 = vpop.f32.mrf.mxu1 }
 0x4b5   : > { %v6543_v10 = vpop.f32.mrf.mxu1 }
 0x4b7   : > { %v6545_v54 = vpop.f32.mrf.mxu1 }
 0x4b9   : > { %v4636_v37 = vpop.f32.mrf.mxu1 }
 0x4ba   : > { %v6548_v42 = vsub.f32 %v4636_v37, %v6483_v25 }
 0x4bb   : > { %v2882_v47 = vpop.f32.mrf.mxu1 }
 0x4bc   : > { %7555 = vst [vmem:[#allocation20_spill] sm:$0xff] %v6548_v42  ;;  %v3081_v44 = vmul.f32 %v6548_v42, %v6548_v42  ;;  %v6553_v40 = vsub.f32 %v2882_v47, %v6485_v20 }
 0x4bd   : > { %v4637_v9 = vpop.f32.mrf.mxu1 }
 0x4be   : > { %7556 = vst [vmem:[#allocation36_spill] sm:$0xff] %v6553_v40  ;;  %v3079_v6 = vmul.f32 %v6553_v40, %v6553_v40  ;;  %v6558_v27 = vsub.f32 %v4637_v9, %v6487_v46  ;;  %v3113_v14 = vmul.f32 %v7558_v18, %v3081_v44 }
 0x4bf   : > { %v2885_v0 = vpop.f32.mrf.mxu1 }
 0x4c0   : > { %7557 = vst [vmem:[#allocation4_spill] sm:$0xff] %v6558_v27  ;;  %v3082_v7 = vmul.f32 %v6558_v27, %v6558_v27  ;;  %v3009_v29 = vadd.f32 %v2885_v0, %v2882_v47  ;;  %v6564_v23 = vsub.f32 %v2885_v0, %v6489_v12  ;;  %3147 = vadd.xlane.f32.xlu1 %v3113_v14 }
 0x4c1   : > { %v4640_v42 = vpop.f32.mrf.mxu1  ;;  %v3111_v33 = vmul.f32 %v7558_v18, %v3079_v6 }
 0x4c2   : > { %7559 = vst [vmem:[#allocation22_spill] sm:$0xff] %v6564_v23  ;;  %v3010_v17 = vadd.f32 %v4636_v37, %v3009_v29  ;;  %v3080_v40 = vmul.f32 %v6564_v23, %v6564_v23  ;;  %v6570_v32 = vsub.f32 %v4640_v42, %v6491_v45  ;;  %v3114_v44 = vmul.f32 %v7558_v18, %v3082_v7 }
 0x4c3   : > { %v2898_v13 = vpop.f32.mrf.mxu1 }
 0x4c4   : > { %7560 = vst [vmem:[#allocation5_spill] sm:$0xff] %v6570_v32  ;;  %v3085_v47 = vmul.f32 %v6570_v32, %v6570_v32  ;;  %v3011_v27 = vadd.f32 %v4637_v9, %v3010_v17  ;;  %v6576_v0 = vsub.f32 %v2898_v13, %v6493_v50  ;;  %3143 = vadd.xlane.f32.xlu1 %v3111_v33 }
 0x4c5   : > { %3149 = vadd.xlane.f32.xlu0 %v3114_v44  ;;  %v4641_v6 = vpop.f32.mrf.mxu1  ;;  %v3112_v37 = vmul.f32 %v7558_v18, %v3080_v40 }
 0x4c6   : > { %7561 = vst [vmem:[#allocation21_spill] sm:$0xff] %v6576_v0  ;;  %v3012_v14 = vadd.f32 %v3011_v27, %v2898_v13  ;;  %v3083_v29 = vmul.f32 %v6576_v0, %v6576_v0  ;;  %v6582_v23 = vsub.f32 %v4641_v6, %v6495_v43  ;;  %v3117_v7 = vmul.f32 %v7558_v18, %v3085_v47 }
 0x4c7   : > { %v2901_v41 = vpop.f32.mrf.mxu1 }
 0x4c8   : > { %7562 = vst [vmem:[#allocation32_spill] sm:$0xff] %v6582_v23  ;;  %v3086_v17 = vmul.f32 %v6582_v23, %v6582_v23  ;;  %v3013_v9 = vadd.f32 %v3012_v14, %v2901_v41  ;;  %v6588_v33 = vsub.f32 %v2901_v41, %v6497_v63  ;;  %3155 = vadd.xlane.f32.xlu1 %v3117_v7 }
 0x4c9   : > { %3145 = vadd.xlane.f32.xlu0 %v3112_v37  ;;  %v4644_v40 = vpop.f32.mrf.mxu1  ;;  %v3115_v13 = vmul.f32 %v7558_v18, %v3083_v29 }
 0x4ca   : > { %7563 = vst [vmem:[#allocation23_spill] sm:$0xff] %v6588_v33  ;;  %v3014_v27 = vadd.f32 %v4640_v42, %v3013_v9  ;;  %v3084_v44 = vmul.f32 %v6588_v33, %v6588_v33  ;;  %v6594_v0 = vsub.f32 %v4644_v40, %v6499_v39  ;;  %v3118_v47 = vmul.f32 %v7558_v18, %v3086_v17 }
 0x4cb   : > { %v2914_v32 = vpop.f32.mrf.mxu1 }
 0x4cc   : > { %7564 = vst [vmem:[#allocation16_spill] sm:$0xff] %v6594_v0  ;;  %v3089_v14 = vmul.f32 %v6594_v0, %v6594_v0  ;;  %v3015_v41 = vadd.f32 %v4641_v6, %v3014_v27  ;;  %v6600_v37 = vsub.f32 %v2914_v32, %v6501_v4  ;;  %3151 = vadd.xlane.f32.xlu1 %v3115_v13 }
 0x4cd   : > { %3157 = vadd.xlane.f32.xlu0 %v3118_v47  ;;  %v4645_v29 = vpop.f32.mrf.mxu1  ;;  %v3116_v42 = vmul.f32 %v7558_v18, %v3084_v44 }
 0x4ce   : > { %7565 = vst [vmem:[#allocation34_spill] sm:$0xff] %v6600_v37  ;;  %v3016_v7 = vadd.f32 %v3015_v41, %v2914_v32  ;;  %v3087_v9 = vmul.f32 %v6600_v37, %v6600_v37  ;;  %v6606_v33 = vsub.f32 %v4645_v29, %v6503_v24  ;;  %v3121_v17 = vmul.f32 %v7558_v18, %v3089_v14 }
 0x4cf   : > { %v2917_v23 = vpop.f32.mrf.mxu1 }
 0x4d0   : > { %7566 = vst [vmem:[#allocation18_spill] sm:$0xff] %v6606_v33  ;;  %v3090_v6 = vmul.f32 %v6606_v33, %v6606_v33  ;;  %v3017_v27 = vadd.f32 %v3016_v7, %v2917_v23  ;;  %v6612_v13 = vsub.f32 %v2917_v23, %v6505_v35  ;;  %3163 = vadd.xlane.f32.xlu1 %v3121_v17 }
 0x4d1   : > { %3153 = vadd.xlane.f32.xlu0 %v3116_v42  ;;  %v4648_v44 = vpop.f32.mrf.mxu1  ;;  %v3119_v32 = vmul.f32 %v7558_v18, %v3087_v9 }
 0x4d2   : > { %7567 = vst [vmem:[#allocation33_spill] sm:$0xff] %v6612_v13  ;;  %v3018_v47 = vadd.f32 %v4644_v40, %v3017_v27  ;;  %v3088_v41 = vmul.f32 %v6612_v13, %v6612_v13  ;;  %v6618_v37 = vsub.f32 %v4648_v44, %v6507_v21  ;;  %v3122_v14 = vmul.f32 %v7558_v18, %v3090_v6 }
 0x4d3   : > { %v2930_v0 = vpop.f32.mrf.mxu1 }
 0x4d4   : > { %7568 = vst [vmem:[#allocation17_spill] sm:$0xff] %v6618_v37  ;;  %v3019_v33 = vadd.f32 %v4645_v29, %v3018_v47  ;;  %v6622_v7 = vsub.f32 %v2930_v0, %v6509_v55  ;;  %3159 = vadd.xlane.f32.xlu1 %v3119_v32  ;;  %v3093_v23 = vmul.f32 %v6618_v37, %v6618_v37 }
 0x4d5   : > { %3165 = vadd.xlane.f32.xlu0 %v3122_v14  ;;  %v4649_v42 = vpop.f32.mrf.mxu1  ;;  %v3120_v6 = vmul.f32 %v7558_v18, %v3088_v41 }
 0x4d6   : > { %7569 = vst [vmem:[#allocation35_spill] sm:$0xff] %v6622_v7  ;;  %v3020_v40 = vadd.f32 %v3019_v33, %v2930_v0  ;;  %v3091_v9 = vmul.f32 %v6622_v7, %v6622_v7  ;;  %v6629_v17 = vsub.f32 %v4649_v42, %v6511_v1  ;;  %v3125_v7 = vmul.f32 %v7558_v18, %v3093_v23 }
 0x4d7   : > { %v2933_v27 = vpop.f32.mrf.mxu1 }
 0x4d8   : > { %7570 = vst [vmem:[#allocation28_spill] sm:$0xff] %v6629_v17  ;;  %v3021_v29 = vadd.f32 %v3020_v40, %v2933_v27  ;;  %v3123_v47 = vmul.f32 %v7558_v18, %v3091_v9  ;;  %v3094_v32 = vmul.f32 %v6629_v17, %v6629_v17  ;;  %v6636_v14 = vsub.f32 %v2933_v27, %v6513_v19 }
 0x4d9   : > { %3161 = vadd.xlane.f32.xlu0 %v3120_v6  ;;  %v4652_v0 = vpop.f32.mrf.mxu1 }
 0x4da   : > { %7571 = vst [vmem:[#allocation19_spill] sm:$0xff] %v6636_v14  ;;  %v3022_v33 = vadd.f32 %v4648_v44, %v3021_v29  ;;  %v6639_v13 = vsub.f32 %v4652_v0, %v6515_v61  ;;  %3167 = vadd.xlane.f32.xlu1 %v3123_v47  ;;  %v3092_v27 = vmul.f32 %v6636_v14, %v6636_v14 }
 0x4db   : > { %v2946_v41 = vpop.f32.mrf.mxu1  ;;  %v3126_v44 = vmul.f32 %v7558_v18, %v3094_v32 }
 0x4dc   : > { %7572 = vst [vmem:[#allocation30_spill] sm:$0xff] %v6639_v13  ;;  %v3097_v40 = vmul.f32 %v6639_v13, %v6639_v13  ;;  %v3023_v6 = vadd.f32 %v4649_v42, %v3022_v33  ;;  %v6645_v9 = vsub.f32 %v2946_v41, %v6517_v60 }
 0x4dd   : > { %3171 = vadd.xlane.f32.xlu0 %v3125_v7  ;;  %v4653_v17 = vpop.f32.mrf.mxu1 }
 0x4de   : > { %7573 = vst [vmem:[#allocation12_spill] sm:$0xff] %v6645_v9  ;;  %v3024_v29 = vadd.f32 %v3023_v6, %v2946_v41  ;;  %v3095_v47 = vmul.f32 %v6645_v9, %v6645_v9  ;;  %v6653_v23 = vsub.f32 %v4653_v17, %v6519_v31  ;;  %v3129_v13 = vmul.f32 %v7558_v18, %v3097_v40 }
 0x4df   : > { %v2949_v42 = vpop.f32.mrf.mxu1  ;;  %v3124_v9 = vmul.f32 %v7558_v18, %v3092_v27 }
 0x4e0   : > { %7574 = vst [vmem:[#allocation29_spill] sm:$0xff] %v6653_v23  ;;  %v3025_v33 = vadd.f32 %v3024_v29, %v2949_v42  ;;  %3179 = vadd.xlane.f32.xlu1 %v3129_v13  ;;  %v3098_v7 = vmul.f32 %v6653_v23, %v6653_v23  ;;  %v6659_v14 = vsub.f32 %v2949_v42, %v6521_v22 }
 0x4e1   : > { %3173 = vadd.xlane.f32.xlu0 %v3126_v44  ;;  %v4656_v32 = vpop.f32.mrf.mxu1  ;;  %v3127_v37 = vmul.f32 %v7558_v18, %v3095_v47 }
 0x4e2   : > { %7575 = vst [vmem:[#allocation14_spill] sm:$0xff] %v6659_v14  ;;  %v3026_v41 = vadd.f32 %v4652_v0, %v3025_v33  ;;  %v6662_v6 = vsub.f32 %v4656_v32, %v6523_v59  ;;  %v3096_v0 = vmul.f32 %v6659_v14, %v6659_v14  ;;  %v3130_v33 = vmul.f32 %v7558_v18, %v3098_v7 }
 0x4e3   : > { %v2962_v40 = vpop.f32.mrf.mxu1 }
 0x4e4   : > { %7576 = vst [vmem:[#allocation13_spill] sm:$0xff] %v6662_v6  ;;  %v3101_v44 = vmul.f32 %v6662_v6, %v6662_v6  ;;  %v3027_v13 = vadd.f32 %v4653_v17, %v3026_v41  ;;  %v6669_v29 = vsub.f32 %v2962_v40, %v6525_v36  ;;  %3175 = vadd.xlane.f32.xlu1 %v3127_v37 }
 0x4e5   : > { %3169 = vadd.xlane.f32.xlu0 %v3124_v9  ;;  %v4657_v42 = vpop.f32.mrf.mxu1  ;;  %v3128_v14 = vmul.f32 %v7558_v18, %v3096_v0 }
 0x4e6   : > { %7577 = vst [vmem:[#allocation31_spill] sm:$0xff] %v6669_v29  ;;  %v3028_v23 = vadd.f32 %v3027_v13, %v2962_v40  ;;  %v3099_v27 = vmul.f32 %v6669_v29, %v6669_v29  ;;  %v6677_v47 = vsub.f32 %v4657_v42, %v6527_v56  ;;  %v3133_v17 = vmul.f32 %v7558_v18, %v3101_v44 }
 0x4e7   : > { %v2965_v41 = vpop.f32.mrf.mxu1 }
 0x4e8   : > { %7578 = vst [vmem:[#allocation15_spill] sm:$0xff] %v6677_v47  ;;  %v3029_v6 = vadd.f32 %v3028_v23, %v2965_v41  ;;  %3187 = vadd.xlane.f32.xlu1 %v3133_v17  ;;  %v3102_v37 = vmul.f32 %v6677_v47, %v6677_v47  ;;  %v6683_v9 = vsub.f32 %v2965_v41, %v6529_v2 }
 0x4e9   : > { %3181 = vadd.xlane.f32.xlu0 %v3130_v33  ;;  %v4660_v7 = vpop.f32.mrf.mxu1  ;;  %v3131_v29 = vmul.f32 %v7558_v18, %v3099_v27 }
 0x4ea   : > { %7579 = vst [vmem:[#allocation24_spill] sm:$0xff] %v6683_v9  ;;  %v3030_v40 = vadd.f32 %v4656_v32, %v3029_v6  ;;  %v6686_v13 = vsub.f32 %v4660_v7, %v6531_v48  ;;  %v3100_v32 = vmul.f32 %v6683_v9, %v6683_v9  ;;  %v3134_v41 = vmul.f32 %v7558_v18, %v3102_v37 }
 0x4eb   : > { %v2978_v44 = vpop.f32.mrf.mxu1 }
 0x4ec   : > { %7580 = vst [vmem:[#allocation7_spill] sm:$0xff] %v6686_v13  ;;  %v3105_v23 = vmul.f32 %v6686_v13, %v6686_v13  ;;  %v3031_v33 = vadd.f32 %v4657_v42, %v3030_v40  ;;  %v6693_v17 = vsub.f32 %v2978_v44, %v6533_v15  ;;  %3183 = vadd.xlane.f32.xlu1 %v3131_v29 }
 0x4ed   : > { %3177 = vadd.xlane.f32.xlu0 %v3128_v14  ;;  %v4661_v6 = vpop.f32.mrf.mxu1 }
 0x4ee   : > { %7581 = vst [vmem:[#allocation26_spill] sm:$0xff] %v6693_v17  ;;  %v3032_v47 = vadd.f32 %v3031_v33, %v2978_v44  ;;  %v3103_v0 = vmul.f32 %v6693_v17, %v6693_v17  ;;  %v6701_v27 = vsub.f32 %v4661_v6, %v6535_v62  ;;  %v3137_v42 = vmul.f32 %v7558_v18, %v3105_v23 }
 0x4ef   : > { %v2981_v40 = vpop.f32.mrf.mxu1  ;;  %v3132_v33 = vmul.f32 %v7558_v18, %v3100_v32 }
 0x4f0   : > { %7582 = vst [vmem:[#allocation25_spill] sm:$0xff] %v6701_v27  ;;  %v3033_v13 = vadd.f32 %v3032_v47, %v2981_v40  ;;  %3195 = vadd.xlane.f32.xlu1 %v3137_v42  ;;  %v6705_v14 = vsub.f32 %v2981_v40, %v6537_v34  ;;  %v3106_v37 = vmul.f32 %v6701_v27, %v6701_v27 }
 0x4f1   : > { %3189 = vadd.xlane.f32.xlu0 %v3134_v41  ;;  %v4664_v29 = vpop.f32.mrf.mxu1  ;;  %v3135_v9 = vmul.f32 %v7558_v18, %v3103_v0 }
 0x4f2   : > { %7583 = vst [vmem:[#allocation10_spill] sm:$0xff] %v6705_v14  ;;  %v3034_v44 = vadd.f32 %v4660_v7, %v3033_v13  ;;  %v3104_v47 = vmul.f32 %v6705_v14, %v6705_v14  ;;  %v6717_v41 = vsub.f32 %v4664_v29, %v6539_v8  ;;  %v3138_v32 = vmul.f32 %v7558_v18, %v3106_v37 }
 0x4f3   : > { %v2994_v17 = vpop.f32.mrf.mxu1 }
 0x4f4   : > { %v3035_v16 = vadd.f32 %v4661_v6, %v3034_v44  ;;  %v6712_v23 = vsub.f32 %v2994_v17, %v6541_v49  ;;  %3191 = vadd.xlane.f32.xlu1 %v3135_v9  ;;  %7585 = vst [vmem:[#allocation9_spill] sm:$0xff] %v6717_v41  ;;  %v3109_v44 = vmul.f32 %v6717_v41, %v6717_v41 }
 0x4f5   : > { %3185 = vadd.xlane.f32.xlu0 %v3132_v33  ;;  %v4665_v42 = vpop.f32.mrf.mxu1 }
 0x4f6   : > { %7584 = vst [vmem:[#allocation27_spill] sm:$0xff] %v6712_v23  ;;  %v3036_v40 = vadd.f32 %v3035_v16, %v2994_v17  ;;  %v3107_v7 = vmul.f32 %v6712_v23, %v6712_v23  ;;  %v6722_v13 = vsub.f32 %v4665_v42, %v6543_v10  ;;  %v3136_v17 = vmul.f32 %v7558_v18, %v3104_v47 }
 0x4f7   : > { %v2997_v6 = vpop.f32.mrf.mxu1 }
 0x4f8   : > { %7586 = vst [vmem:[#allocation11_spill] sm:$0xff] %v6722_v13  ;;  %v3110_v9 = vmul.f32 %v6722_v13, %v6722_v13  ;;  %v3139_v0 = vmul.f32 %v7558_v18, %v3107_v7  ;;  %v3037_v33 = vadd.f32 %v3036_v40, %v2997_v6  ;;  %v6731_v16 = vsub.f32 %v2997_v6, %v6545_v54 }
 0x4f9   : > { %3197 = vadd.xlane.f32.xlu0 %v3138_v32  ;;  %v3141_v7 = vmul.f32 %v7558_v18, %v3109_v44 }
 0x4fa   : > { %3199 = vadd.xlane.f32.xlu1 %v3139_v0  ;;  %v3142_v37 = vmul.f32 %v7558_v18, %v3110_v9  ;;  %v3038_v14 = vadd.f32 %v4664_v29, %v3037_v33  ;;  %v3108_v27 = vmul.f32 %v6731_v16, %v6731_v16 }
 0x4fc   : > { %v3039_v32 = vadd.f32 %v4665_v42, %v3038_v14  ;;  %v3140_v40 = vmul.f32 %v7558_v18, %v3108_v27 }
 0x4fd   : > { %3193 = vadd.xlane.f32.xlu0 %v3136_v17 }
 0x4fe   : > { %3205 = vadd.xlane.f32.xlu1 %v3142_v37  ;;  %v3040_v6 = vrot.slane %v3039_v32, 4 }
 0x500   : > { %v3041_v23 = vadd.f32 %v3040_v6, %v3039_v32 }
 0x501   : > { %3203 = vadd.xlane.f32.xlu0 %v3141_v7 }
 0x502   : > { %v3042_v0 = vrot.slane %v3041_v23, 2 }
 0x504   : > { %v3043_v13 = vadd.f32 %v3042_v0, %v3041_v23 }
 0x505   : > { %3201 = vadd.xlane.f32.xlu0 %v3140_v40 }
 0x506   : > { %v3044_v47 = vrot.slane %v3043_v13, 1 }
 0x508   : > { %v3045_v17 = vadd.f32 %v3044_v47, %v3043_v13 }
 0x50a   : > { %v6739_v41 = vmul.f32 0.00390625, %v3045_v17 }
 0x50c   : > { %v3461_v29 = vsub.f32 %v6539_v8, %v6739_v41  ;;  %v3462_v9 = vsub.f32 %v6543_v10, %v6739_v41  ;;  %v3445_v14 = vsub.f32 %v6507_v21, %v6739_v41  ;;  %v3459_v27 = vsub.f32 %v6541_v49, %v6739_v41 }
 0x50d   : > { %v3443_v23 = vsub.f32 %v6509_v55, %v6739_v41  ;;  %v3446_v13 = vsub.f32 %v6511_v1, %v6739_v41  ;;  %v3457_v10 = vsub.f32 %v6531_v48, %v6739_v41  ;;  %v3460_v21 = vsub.f32 %v6545_v54, %v6739_v41 }
 0x50e   : > { %v3493_v42 = vand.u32 2147483647, %v3461_v29  ;;  %v3494_v44 = vand.u32 2147483647, %v3462_v9  ;;  %v3477_v33 = vand.u32 2147483647, %v3445_v14  ;;  %v3441_v1 = vsub.f32 %v6499_v39, %v6739_v41 }
 0x50f   : > { %v3491_v37 = vand.u32 2147483647, %v3459_v27  ;;  %v3475_v32 = vand.u32 2147483647, %v3443_v23  ;;  %v3478_v49 = vand.u32 2147483647, %v3446_v13  ;;  %v3444_v48 = vsub.f32 %v6513_v19, %v6739_v41 }
 0x510   : > { %v3525_v8 = vmul.f32 0.0625, %v3493_v42  ;;  %v3526_v7 = vmul.f32 0.0625, %v3494_v44  ;;  %v3509_v40 = vmul.f32 0.0625, %v3477_v33  ;;  %v3489_v47 = vand.u32 2147483647, %v3457_v10 }
 0x511   : > { %v3523_v6 = vmul.f32 0.0625, %v3491_v37  ;;  %v3492_v54 = vand.u32 2147483647, %v3460_v21  ;;  %v3507_v17 = vmul.f32 0.0625, %v3475_v32  ;;  %v3510_v29 = vmul.f32 0.0625, %v3478_v49 }
 0x512   : > { %v3557_v0 = vmul.f32 %v7558_v18, %v3525_v8  ;;  %v3558_v55 = vmul.f32 %v7558_v18, %v3526_v7  ;;  %v3541_v9 = vmul.f32 %v7558_v18, %v3509_v40  ;;  %v3455_v27 = vsub.f32 %v6533_v15, %v6739_v41 }
 0x513   : > { %v3555_v14 = vmul.f32 %v7558_v18, %v3523_v6  ;;  %v3458_v39 = vsub.f32 %v6535_v62, %v6739_v41  ;;  %v3473_v42 = vand.u32 2147483647, %v3441_v1  ;;  %v3476_v19 = vand.u32 2147483647, %v3444_v48 }
 0x514   : > { %3619 = vrot.lane.b32.xlu1 %v3557_v0, %s4865_s23  ;;  %v3521_v44 = vmul.f32 0.0625, %v3489_v47  ;;  %v3524_v23 = vmul.f32 0.0625, %v3492_v54  ;;  %v3539_v13 = vmul.f32 %v7558_v18, %v3507_v17  ;;  %v3542_v33 = vmul.f32 %v7558_v18, %v3510_v29 }
 0x515   : > { %v3439_v37 = vsub.f32 %v6501_v4, %v6739_v41  ;;  %v3442_v15 = vsub.f32 %v6503_v24, %v6739_v41  ;;  %v3487_v8 = vand.u32 2147483647, %v3455_v27  ;;  %v3490_v62 = vand.u32 2147483647, %v3458_v39 }
 0x516   : > { %v3505_v7 = vmul.f32 0.0625, %v3473_v42  ;;  %v3508_v10 = vmul.f32 0.0625, %v3476_v19  ;;  %v3553_v21 = vmul.f32 %v7558_v18, %v3521_v44  ;;  %v3556_v32 = vmul.f32 %v7558_v18, %v3524_v23 }
 0x517   : > { %v3453_v49 = vsub.f32 %v6523_v59, %v6739_v41  ;;  %v3456_v4 = vsub.f32 %v6537_v34, %v6739_v41  ;;  %v3471_v40 = vand.u32 2147483647, %v3439_v37  ;;  %v3474_v24 = vand.u32 2147483647, %v3442_v15 }
 0x518   : > { %3587 = vrot.lane.b32.xlu1 %v3541_v9, %s4865_s23  ;;  %v3519_v6 = vmul.f32 0.0625, %v3487_v8  ;;  %v3522_v0 = vmul.f32 0.0625, %v3490_v62  ;;  %v3540_v1 = vmul.f32 %v7558_v18, %v3508_v10  ;;  %v3437_v48 = vsub.f32 %v6491_v45, %v6739_v41 }
 0x519   : > { %v3440_v59 = vsub.f32 %v6505_v35, %v6739_v41  ;;  %v3485_v47 = vand.u32 2147483647, %v3453_v49  ;;  %v3488_v34 = vand.u32 2147483647, %v3456_v4  ;;  %v3503_v54 = vmul.f32 0.0625, %v3471_v40 }
 0x51a   : > { %v3506_v17 = vmul.f32 0.0625, %v3474_v24  ;;  %v3551_v29 = vmul.f32 %v7558_v18, %v3519_v6  ;;  %v3554_v9 = vmul.f32 %v7558_v18, %v3522_v0  ;;  %v3454_v45 = vsub.f32 %v6527_v56, %v6739_v41 }
 0x51b   : > { %3621 = vrot.lane.b32.xlu0 %v3558_v55, %s4865_s23  ;;  %v3537_v55 = vmul.f32 %v7558_v18, %v3505_v7  ;;  %v3469_v27 = vand.u32 2147483647, %v3437_v48  ;;  %v3472_v35 = vand.u32 2147483647, %v3440_v59  ;;  %v3517_v39 = vmul.f32 0.0625, %v3485_v47 }
 0x51c   : > { %3589 = vrot.lane.b32.xlu1 %v3542_v33, %s4865_s23  ;;  %v3520_v42 = vmul.f32 0.0625, %v3488_v34  ;;  %v3535_v19 = vmul.f32 %v7558_v18, %v3503_v54  ;;  %v3538_v44 = vmul.f32 %v7558_v18, %v3506_v17  ;;  %v3435_v23 = vsub.f32 %v6493_v50, %v6739_v41 }
 0x51d   : > { %v3486_v56 = vand.u32 2147483647, %v3454_v45  ;;  %v3501_v37 = vmul.f32 0.0625, %v3469_v27  ;;  %v3504_v15 = vmul.f32 0.0625, %v3472_v35  ;;  %v3549_v8 = vmul.f32 %v7558_v18, %v3517_v39 }
 0x51e   : > { %v3552_v62 = vmul.f32 %v7558_v18, %v3520_v42  ;;  %v3449_v50 = vsub.f32 %v6515_v61, %v6739_v41  ;;  %v3467_v7 = vand.u32 2147483647, %v3435_v23  ;;  %v3433_v61 = vsub.f32 %v6483_v25, %v6739_v41 }
 0x51f   : > { %3615 = vrot.lane.b32.xlu0 %v3555_v14, %s4865_s23  ;;  %v3451_v14 = vsub.f32 %v6525_v36, %v6739_v41  ;;  %v3438_v36 = vsub.f32 %v6495_v43, %v6739_v41  ;;  %v3452_v43 = vsub.f32 %v6529_v2, %v6739_v41  ;;  %v3518_v4 = vmul.f32 0.0625, %v3486_v56 }
 0x520   : > { %3617 = vrot.lane.b32.xlu1 %v3556_v32, %s4865_s23  ;;  %v3533_v40 = vmul.f32 %v7558_v18, %v3501_v37  ;;  %v3536_v24 = vmul.f32 %v7558_v18, %v3504_v15  ;;  %v3436_v2 = vsub.f32 %v6497_v63, %v6739_v41  ;;  %v3481_v6 = vand.u32 2147483647, %v3449_v50 }
 0x521   : > { %v3470_v10 = vand.u32 2147483647, %v3438_v36  ;;  %v3484_v0 = vand.u32 2147483647, %v3452_v43  ;;  %v3499_v48 = vmul.f32 0.0625, %v3467_v7  ;;  %v3550_v34 = vmul.f32 %v7558_v18, %v3518_v4 }
 0x522   : > { %v3447_v25 = vsub.f32 %v6517_v60, %v6739_v41  ;;  %v3450_v63 = vsub.f32 %v6519_v31, %v6739_v41  ;;  %v3465_v54 = vand.u32 2147483647, %v3433_v61  ;;  %v3468_v17 = vand.u32 2147483647, %v3436_v2 }
 0x523   : > { %3583 = vrot.lane.b32.xlu0 %v3539_v13, %s4865_s23  ;;  %v3483_v13 = vand.u32 2147483647, %v3451_v14  ;;  %v3502_v59 = vmul.f32 0.0625, %v3470_v10  ;;  %v3513_v14 = vmul.f32 0.0625, %v3481_v6  ;;  %v3516_v45 = vmul.f32 0.0625, %v3484_v0 }
 0x524   : > { %3585 = vrot.lane.b32.xlu1 %v3540_v1, %s4865_s23  ;;  %v3531_v27 = vmul.f32 %v7558_v18, %v3499_v48  ;;  %v3431_v60 = vsub.f32 %v6485_v20, %v6739_v41  ;;  %v3434_v31 = vsub.f32 %v6487_v46, %v6739_v41  ;;  %v3479_v39 = vand.u32 2147483647, %v3447_v25 }
 0x525   : > { %v3515_v49 = vmul.f32 0.0625, %v3483_v13  ;;  %v3534_v35 = vmul.f32 %v7558_v18, %v3502_v59  ;;  %v3482_v42 = vand.u32 2147483647, %v3450_v63  ;;  %v3500_v23 = vmul.f32 0.0625, %v3468_v17 }
 0x526   : > { %v3545_v36 = vmul.f32 %v7558_v18, %v3513_v14  ;;  %v3548_v13 = vmul.f32 %v7558_v18, %v3516_v45  ;;  %v3448_v20 = vsub.f32 %v6521_v22, %v6739_v41  ;;  %v3463_v46 = vand.u32 2147483647, %v3431_v60 }
 0x527   : > { %3611 = vrot.lane.b32.xlu0 %v3553_v21, %s4865_s23  ;;  %v3547_v47 = vmul.f32 %v7558_v18, %v3515_v49  ;;  %v3466_v37 = vand.u32 2147483647, %v3434_v31  ;;  %v3532_v43 = vmul.f32 %v7558_v18, %v3500_v23  ;;  %v3432_v7 = vsub.f32 %v6489_v12, %v6739_v41 }
 0x528   : > { %3613 = vrot.lane.b32.xlu1 %v3554_v9, %s4865_s23  ;;  %v3480_v10 = vand.u32 2147483647, %v3448_v20  ;;  %v3495_v4 = vmul.f32 0.0625, %v3463_v46 }
 0x529   : > { %v3464_v12 = vand.u32 2147483647, %v3432_v7 }
 0x52a   : > { %v3512_v41 = vmul.f32 0.0625, %v3480_v10  ;;  %v3527_v0 = vmul.f32 %v7558_v18, %v3495_v4  ;;  %v7591_v4 = vld [vmem:[#allocation11_spill] sm:$0xff] }
 0x52b   : > { %3579 = vrot.lane.b32.xlu0 %v3537_v55, %s4865_s23 }
 0x52c   : > { %3581 = vrot.lane.b32.xlu1 %v3538_v44, %s4865_s23  ;;  %v3497_v44 = vmul.f32 0.0625, %v3465_v54  ;;  %v3544_v25 = vmul.f32 %v7558_v18, %v3512_v41 }
 0x52e   : > { %v3529_v50 = vmul.f32 %v7558_v18, %v3497_v44 }
 0x52f   : > { %3607 = vrot.lane.b32.xlu0 %v3551_v29, %s4865_s23 }
 0x530   : > { %3609 = vrot.lane.b32.xlu1 %v3552_v62, %s4865_s23  ;;  %v3514_v62 = vmul.f32 0.0625, %v3482_v42 }
 0x532   : > { %v3546_v61 = vmul.f32 %v7558_v18, %v3514_v62 }
 0x533   : > { %3575 = vrot.lane.b32.xlu0 %v3535_v19, %s4865_s23 }
 0x534   : > { %3577 = vrot.lane.b32.xlu1 %v3536_v24, %s4865_s23 }
 0x537   : > { %3603 = vrot.lane.b32.xlu0 %v3549_v8, %s4865_s23  ;;  %v3511_v8 = vmul.f32 0.0625, %v3479_v39 }
 0x538   : > { %3605 = vrot.lane.b32.xlu1 %v3550_v34, %s4865_s23  ;;  %v3496_v34 = vmul.f32 0.0625, %v3464_v12 }
 0x539   : > { %v3543_v24 = vmul.f32 %v7558_v18, %v3511_v8 }
 0x53a   : > { %v3528_v17 = vmul.f32 %v7558_v18, %v3496_v34 }
 0x53b   : > { %3571 = vrot.lane.b32.xlu0 %v3533_v40, %s4865_s23  ;;  %v3498_v40 = vmul.f32 0.0625, %v3466_v37 }
 0x53c   : > { %3573 = vrot.lane.b32.xlu1 %v3534_v35, %s4865_s23 }
 0x53d   : > { %v3530_v48 = vmul.f32 %v7558_v18, %v3498_v40 }
 0x53f   : > { %3599 = vrot.lane.b32.xlu0 %v3547_v47, %s4865_s23 }
 0x540   : > { %3601 = vrot.lane.b32.xlu1 %v3548_v13, %s4865_s23 }
 0x543   : > { %3567 = vrot.lane.b32.xlu0 %v3531_v27, %s4865_s23 }
 0x544   : > { %3569 = vrot.lane.b32.xlu1 %v3532_v43, %s4865_s23 }
 0x547   : > { %3595 = vrot.lane.b32.xlu0 %v3545_v36, %s4865_s23 }
 0x548   : > { %3597 = vrot.lane.b32.xlu1 %v3546_v61, %s4865_s23 }
 0x549   : > { %v6813_v33 = vpop.xlane.xlu1 %3147 }
 0x54a   : > { %4783 = vrsqrt.f32 %v6813_v33  ;;  %vm3223_vm4 = vcmp.eq.f32.partialorder %v6813_v33, inf  ;;  %vm3225_vm0 = vcmp.eq.f32.partialorder %v6813_v33, 0.0 }
 0x54b   : > { %3563 = vrot.lane.b32.xlu0 %v3529_v50, %s4865_s23 }
 0x54c   : > { %3565 = vrot.lane.b32.xlu1 %v3530_v48, %s4865_s23 }
 0x54d   : > { %v6823_v21 = vpop.xlane.xlu1 %3143 }
 0x54e   : > { %v6825_v32 = vpop.xlane.xlu0 %3149 }
 0x54f   : > { %3591 = vrot.lane.b32.xlu0 %v3543_v24, %s4865_s23 }
 0x550   : > { %3593 = vrot.lane.b32.xlu1 %v3544_v25, %s4865_s23 }
 0x551   : > { %v6835_v55 = vpop.xlane.xlu1 %3155 }
 0x552   : > { %v6837_v1 = vpop.xlane.xlu0 %3145  ;;  %4785 = vrsqrt.f32 %v6835_v55  ;;  %vm3251_vm1 = vcmp.eq.f32.partialorder %v6835_v55, inf  ;;  %vm3253_vm2 = vcmp.eq.f32.partialorder %v6835_v55, 0.0  ;;  %v3254_v43 = vand.u32 2147483648, %v6835_v55 }
 0x553   : > { %3559 = vrot.lane.b32.xlu0 %v3527_v0, %s4865_s23  ;;  %4787 = vrsqrt.f32 %v6823_v21 }
 0x554   : > { %3561 = vrot.lane.b32.xlu1 %v3528_v17, %s4865_s23 }
 0x555   : > { %v6847_v29 = vpop.xlane.xlu1 %3151 }
 0x556   : > { %v6849_v9 = vpop.xlane.xlu0 %3157  ;;  %vm3237_vm6 = vcmp.eq.f32.partialorder %v6847_v29, inf }
 0x557   : > { %4789 = vrsqrt.f32 %v6849_v9  ;;  %v4784_v20 = vpop.eup %4783  ;;  %vm3258_vm3 = vcmp.eq.f32.partialorder %v6849_v9, inf  ;;  %vm3260_vm5 = vcmp.eq.f32.partialorder %v6849_v9, 0.0  ;;  %v3261_v10 = vand.u32 2147483648, %v6849_v9 }
 0x559   : > { %v6863_v56 = vpop.xlane.xlu1 %3163 }
 0x55a   : > { %v6859_v19 = vpop.xlane.xlu0 %3153  ;;  %4791 = vrsqrt.f32 %v6863_v56  ;;  %vm3279_vm7 = vcmp.eq.f32.partialorder %v6863_v56, inf  ;;  %vm3281_vm8 = vcmp.eq.f32.partialorder %v6863_v56, 0.0  ;;  %v3282_v12 = vand.u32 2147483648, %v6863_v56 }
 0x55b   : > { %4793 = vrsqrt.f32 %v6825_v32 }
 0x55c   : > { %4795 = vrsqrt.f32 %v6847_v29 }
 0x55d   : > { %v6877_v49 = vpop.xlane.xlu1 %3159 }
 0x55e   : > { %v6869_v15 = vpop.xlane.xlu0 %3165  ;;  %vm3265_vm15 = vcmp.eq.f32.partialorder %v6877_v49, inf }
 0x55f   : > { %v4786_v46 = vpop.eup %4785  ;;  %vm3286_vm11 = vcmp.eq.f32.partialorder %v6869_v15, inf }
 0x560   : > { %v4788_v37 = vpop.eup %4787  ;;  %v3250_v8 = vmul.f32 %v4786_v46, %v6835_v55 }
 0x561   : > { %v6981_v0 = vmul.f32 %v4788_v37, %v6823_v21 }
 0x562   : > { %v6879_v22 = vpop.xlane.xlu0 %3161 }
 0x563   : > { %v6885_v2 = vpop.xlane.xlu1 %3167  ;;  %7587 = vst [vmem:[#allocation8_spill] sm:$0xff] %v6981_v0 }
 0x564   : > { %v4790_v50 = vpop.eup %4789  ;;  %vm3293_vm10 = vcmp.eq.f32.partialorder %v6885_v2, inf }
 0x565   : > { %v3257_v61 = vmul.f32 %v4790_v50, %v6849_v9 }
 0x566   : > { %v6887_v6 = vpop.xlane.xlu0 %3171 }
 0x567   : > { %v4792_v7 = vpop.eup %4791  ;;  %vm3307_vm9 = vcmp.eq.f32.partialorder %v6887_v6, inf  ;;  %vm3309_vm14 = vcmp.eq.f32.partialorder %v6887_v6, 0.0 }
 0x568   : > { %v4794_v40 = vpop.eup %4793  ;;  %v3278_v48 = vmul.f32 %v4792_v7, %v6863_v56 }
 0x569   : > { %v6893_v59 = vpop.xlane.xlu1 %3179  ;;  %v4796_v24 = vpop.eup %4795  ;;  %v6987_v25 = vmul.f32 %v4794_v40, %v6825_v32  ;;  %v3296_v40 = vand.u32 2147483648, %v6885_v2 }
 0x56a   : > { %v6895_v47 = vpop.xlane.xlu0 %3173  ;;  %v3236_v37 = vmul.f32 %v4796_v24, %v6847_v29 }
 0x56d   : > { %v6899_v63 = vpop.xlane.xlu1 %3175 }
 0x56e   : > { %v6901_v54 = vpop.xlane.xlu0 %3169 }
 0x571   : > { %v6905_v14 = vpop.xlane.xlu1 %3187  ;;  %3783 = vxpose.xlu0.c.b16.start [1/8] (narrow) %v6407_v52, 64  ;;  %v3222_v52 = vmul.f32 %v4784_v20, %v6813_v33 }
 0x572   : > { %v6907_v45 = vpop.xlane.xlu0 %3181 }
 0x575   : > { %v6909_v27 = vpop.xlane.xlu1 %3183  ;;  %3784 = vxpose.xlu0.c.b16.cont [2/8] (narrow) %v6420_v57, 64  ;;  %v3226_v57 = vand.u32 2147483648, %v6813_v33 }
 0x576   : > { %v6911_v35 = vpop.xlane.xlu0 %3177 }
 0x577   : > { %3767 = vxpose.xlu1.c.b16.start [1/8] (narrow) %v6342_v28, 64  ;;  %v3252_v28 = vsel %vm3251_vm1, %v6835_v55, %v3250_v8  ;;  %v3280_v55 = vsel %vm3279_vm7, %v6863_v56, %v3278_v48  ;;  %v7035_v48 = vsel %vm3237_vm6, %v6847_v29, %v3236_v37  ;;  %vm3314_vm1 = vcmp.eq.f32.partialorder %v6895_v47, inf }
 0x578   : > { %vm3288_vm7 = vcmp.eq.f32.partialorder %v6869_v15, 0.0 }
 0x579   : > { %v6913_v60 = vpop.xlane.xlu1 %3195  ;;  %3785 = vxpose.xlu0.c.b16.cont [3/8] (narrow) %v6423_v58, 64 }
 0x57a   : > { %v6915_v31 = vpop.xlane.xlu0 %3189 }
 0x57b   : > { %3768 = vxpose.xlu1.c.b16.cont [2/8] (narrow) %v6356_v26, 64  ;;  %v3310_v26 = vand.u32 2147483648, %v6887_v6 }
 0x57d   : > { %v6920_v42 = vpop.xlane.xlu1 %3191  ;;  %3786 = vxpose.xlu0.c.b16.cont [4/8] (narrow) %v6436_v53, 64  ;;  %v3224_v53 = vsel %vm3223_vm4, %v6813_v33, %v3222_v52 }
 0x57e   : > { %v6917_v39 = vpop.xlane.xlu0 %3185  ;;  %v6994_v46 = vsel %vm3225_vm0, %v3226_v57, %v3224_v53  ;;  %v3259_v57 = vsel %vm3258_vm3, %v6849_v9, %v3257_v61  ;;  %vm3316_vm3 = vcmp.eq.f32.partialorder %v6895_v47, 0.0 }
 0x57f   : > { %3769 = vxpose.xlu1.c.b16.cont [3/8] (narrow) %v6359_v11, 64 }
 0x581   : > { %3787 = vxpose.xlu0.c.b16.cont [5/8] (narrow) %v6439_v3, 64  ;;  %v3255_v3 = vsel %vm3253_vm2, %v3254_v43, %v3252_v28  ;;  %vm3295_vm2 = vcmp.eq.f32.partialorder %v6885_v2, 0.0 }
 0x582   : > { %v6923_v18 = vpop.xlane.xlu0 %3197  ;;  %v7021_v24 = vmul.f32 %v5658_v51, %v3255_v3 }
 0x583   : > { %v6926_v44 = vpop.xlane.xlu1 %3199  ;;  %3770 = vxpose.xlu1.c.b16.cont [4/8] (narrow) %v6372_v30, 64 }
 0x584   : > { %vm3405_vm6 = vcmp.eq.f32.partialorder %v6926_v44, inf }
 0x585   : > { %3788 = vxpose.xlu0.c.b16.cont [6/8] (narrow) %v6452_v5, 64  ;;  %v7030_v5 = vsel %vm3260_vm5, %v3261_v10, %v3259_v57  ;;  %vm3300_vm5 = vcmp.eq.f32.partialorder %v6901_v54, inf }
 0x586   : > { %v6930_v23 = vpop.xlane.xlu0 %3193 }
 0x587   : > { %v6935_v36 = vpop.xlane.xlu1 %3205 }
 0x588   : > { %4797 = vrsqrt.f32 %v6935_v36  ;;  %vm3426_vm13 = vcmp.eq.f32.partialorder %v6935_v36, inf  ;;  %v3429_v3 = vand.u32 2147483648, %v6935_v36  ;;  %vm3428_vm0 = vcmp.eq.f32.partialorder %v6935_v36, 0.0 }
 0x589   : > { %3789 = vxpose.xlu0.c.b16.cont [7/8] (narrow) %v6455_v38, 64 }
 0x58a   : > { %v6938_v13 = vpop.xlane.xlu0 %3203 }
 0x58b   : > { %4799 = vrsqrt.f32 %v6938_v13  ;;  %vm3419_vm12 = vcmp.eq.f32.partialorder %v6938_v13, inf  ;;  %v3422_v11 = vand.u32 2147483648, %v6938_v13  ;;  %vm3421_vm4 = vcmp.eq.f32.partialorder %v6938_v13, 0.0 }
 0x58c   : > { %4801 = vrsqrt.f32 %v6877_v49 }
 0x58d   : > { %4803 = vrsqrt.f32 %v6869_v15 }
 0x58e   : > { %4805 = vrsqrt.f32 %v6887_v6  ;;  %v6954_v62 = vpop.xlane.xlu0 %3201 }
 0x58f   : > { %4807 = vrsqrt.f32 %v6885_v2 }
 0x590   : > { %4809 = vrsqrt.f32 %v6926_v44 }
 0x591   : > { %4811 = vrsqrt.f32 %v6895_v47 }
 0x592   : > { %4813 = vrsqrt.f32 %v6837_v1 }
 0x593   : > { %4815 = vrsqrt.f32 %v6954_v62 }
 0x594   : > { %4817 = vrsqrt.f32 %v6859_v19 }
 0x595   : > { %v4798_v41 = vpop.eup %4797  ;;  %4819 = vrsqrt.f32 %v6901_v54 }
 0x596   : > { %4821 = vrsqrt.f32 %v6879_v22  ;;  %v3425_v8 = vmul.f32 %v4798_v41, %v6935_v36 }
 0x597   : > { %4823 = vrsqrt.f32 %v6913_v60 }
 0x598   : > { %v4800_v52 = vpop.eup %4799  ;;  %4825 = vrsqrt.f32 %v6923_v18  ;;  %v3427_v41 = vsel %vm3426_vm13, %v6935_v36, %v3425_v8  ;;  %v3283_v8 = vsel %vm3281_vm8, %v3282_v12, %v3280_v55  ;;  %v3317_v36 = vand.u32 2147483648, %v6895_v47 }
 0x599   : > { %v4802_v50 = vpop.eup %4801  ;;  %v3418_v7 = vmul.f32 %v4800_v52, %v6938_v13  ;;  %4827 = vrsqrt.f32 %v6893_v59  ;;  %v3430_v12 = vsel %vm3428_vm0, %v3429_v3, %v3427_v41  ;;  %v7588_v3 = vld [vmem:[#allocation3_spill] sm:$0xff]  ;;  %vm3302_vm8 = vcmp.eq.f32.partialorder %v6901_v54, 0.0 }
 0x59a   : > { %v4804_v53 = vpop.eup %4803  ;;  %v3264_v55 = vmul.f32 %v4802_v50, %v6877_v49  ;;  %4829 = vrsqrt.f32 %v6899_v63  ;;  %v3686_v41 = vmul.f32 %v5658_v51, %v3430_v12  ;;  %3790 = vxpose.xlu0.c.b16.end [8/8] (narrow) %v7588_v3, 64  ;;  %v7590_v12 = vld [vmem:[#allocation9_spill] sm:$0xff]  ;;  %vm3272_vm13 = vcmp.eq.f32.partialorder %v6879_v22, inf }
 0x59b   : > { %v4806_v43 = vpop.eup %4805  ;;  %v3420_v28 = vsel %vm3419_vm12, %v6938_v13, %v3418_v7  ;;  %v3285_v37 = vmul.f32 %v4804_v53, %v6869_v15  ;;  %4831 = vrsqrt.f32 %v6920_v42  ;;  %vm3267_vm12 = vcmp.eq.f32.partialorder %v6877_v49, 0.0 }
 0x59c   : > { %v4808_v61 = vpop.eup %4807  ;;  %v3306_v9 = vmul.f32 %v4806_v43, %v6887_v6  ;;  %v3423_v56 = vsel %vm3421_vm4, %v3422_v11, %v3420_v28  ;;  %v7058_v43 = vmul.f32 %v5658_v51, %v3283_v8  ;;  %4833 = vrsqrt.f32 %v6930_v23  ;;  %v3620_v11 = vpop.permute.xlu1 %3619 }
 0x59d   : > { %v4810_v52 = vpop.eup %4809  ;;  %v3292_v57 = vmul.f32 %v4808_v61, %v6885_v2  ;;  %v3685_v30 = vmul.f32 %v5658_v51, %v3423_v56  ;;  %v3622_v8 = vpop.permute.xlu0 %3621  ;;  %v3287_v56 = vsel %vm3286_vm11, %v6869_v15, %v3285_v37  ;;  %v3653_v58 = vadd.f32 %v3620_v11, %v7590_v12  ;;  %v7592_v12 = vld [vmem:[#allocation39_spill] sm:$0xff] }
 0x59e   : > { %v4812_v7 = vpop.eup %4811  ;;  %v3404_v13 = vmul.f32 %v4810_v52, %v6926_v44  ;;  %v3308_v28 = vsel %vm3307_vm9, %v6887_v6, %v3306_v9  ;;  %v7589_v9 = vld [vmem:[#allocation6_spill] sm:$0xff]  ;;  %v3654_v33 = vadd.f32 %v3622_v8, %v7591_v4  ;;  %v3408_v11 = vand.u32 2147483648, %v6926_v44 }
 0x59f   : > { %v7047_v10 = vpop.eup %4813  ;;  %v3313_v61 = vmul.f32 %v4812_v7, %v6895_v47  ;;  %v3294_v7 = vsel %vm3293_vm10, %v6885_v2, %v3292_v57  ;;  %3771 = vxpose.xlu1.c.b16.cont [5/8] (narrow) %v7589_v9, 64  ;;  %v3311_v57 = vsel %vm3309_vm14, %v3310_v26, %v3308_v28  ;;  %v7099_v4 = vsel %vm3265_vm15, %v6877_v49, %v3264_v55 }
 0x5a0   : > { %v4816_v53 = vpop.eup %4815  ;;  %v3406_v3 = vsel %vm3405_vm6, %v6926_v44, %v3404_v13  ;;  %v3718_v8 = vadd.f32 %v3686_v41, %v3654_v33  ;;  %vm3407_vm9 = vcmp.eq.f32.partialorder %v6926_v44, 0.0  ;;  %4835 = vrsqrt.f32 %v6905_v14  ;;  %v3588_v26 = vpop.permute.xlu1 %3587  ;;  %v7594_v33 = vld [vmem:[#allocation17_spill] sm:$0xff] }
 0x5a1   : > { %v7064_v50 = vpop.eup %4817  ;;  %v3411_v34 = vmul.f32 %v4816_v53, %v6954_v62  ;;  %v3315_v37 = vsel %vm3314_vm1, %v6895_v47, %v3313_v61  ;;  %v3717_v53 = vadd.f32 %v3685_v30, %v3653_v58  ;;  %v3409_v61 = vsel %vm3407_vm9, %v3408_v11, %v3406_v3  ;;  %v3616_v28 = vpop.permute.xlu0 %3615  ;;  %v7593_v58 = vld [vmem:[#allocation38_spill] sm:$0xff]  ;;  %v7595_v47 = vld [vmem:[#allocation27_spill] sm:$0xff] }
 0x5a2   : > { %v4820_v52 = vpop.eup %4819  ;;  %vm3412_vm10 = vcmp.eq.f32.partialorder %v6954_v62, inf  ;;  %v3297_v55 = vsel %vm3295_vm2, %v3296_v40, %v3294_v7  ;;  %v3637_v44 = vadd.f32 %v3588_v26, %v7594_v33  ;;  %v3750_v30 = vadd.f32 %v7592_v12, %v3718_v8 }
 0x5a3   : > { %v4822_v20 = vpop.eup %4821  ;;  %v3299_v13 = vmul.f32 %v4820_v52, %v6901_v54  ;;  %v3749_v52 = vadd.f32 %v7592_v12, %v3717_v53  ;;  %3772 = vxpose.xlu1.c.b16.cont [6/8] (narrow) %v7593_v58, 64  ;;  %v3413_v41 = vsel %vm3412_vm10, %v6954_v62, %v3411_v34  ;;  %4837 = vrsqrt.f32 %v6915_v31 }
 0x5a4   : > { %v4824_v6 = vpop.eup %4823  ;;  %v3669_v3 = vmul.f32 %v5658_v51, %v3311_v57  ;;  %v3318_v11 = vsel %vm3316_vm3, %v3317_v36, %v3315_v37  ;;  %v3415_v2 = vand.u32 2147483648, %v6954_v62  ;;  %vm3414_vm11 = vcmp.eq.f32.partialorder %v6954_v62, 0.0  ;;  %v3590_v26 = vpop.permute.xlu1 %3589  ;;  %v7597_v62 = vld [vmem:[#allocation28_spill] sm:$0xff] }
 0x5a5   : > { %v4826_v9 = vpop.eup %4825  ;;  %v3390_v7 = vmul.f32 %v4824_v6, %v6913_v60  ;;  %v3301_v53 = vsel %vm3300_vm5, %v6901_v54, %v3299_v13  ;;  %v3766_v34 = vpack.c.bf16 %v3750_v30, %v3749_v52  ;;  %v3683_v57 = vmul.f32 %v5658_v51, %v3409_v61  ;;  %v3584_v58 = vpop.permute.xlu0 %3583  ;;  %v7596_v6 = vld [vmem:[#allocation2_spill] sm:$0xff] }
 0x5a6   : > { %v7119_v40 = vpop.eup %4827  ;;  %v3397_v8 = vmul.f32 %v4826_v9, %v6923_v18  ;;  %v3651_v36 = vadd.f32 %v3616_v28, %v7595_v47  ;;  %v3416_v37 = vsel %vm3414_vm11, %v3415_v2, %v3413_v41  ;;  %v3271_v33 = vmul.f32 %v4822_v20, %v6879_v22 }
 0x5a7   : > { %v3701_v38 = vadd.f32 %v3669_v3, %v3637_v44  ;;  %3773 = vxpose.xlu1.c.b16.cont [7/8] (narrow) %v7596_v6, 64  ;;  %v3638_v17 = vadd.f32 %v3590_v26, %v7597_v62  ;;  %v3670_v0 = vmul.f32 %v5658_v51, %v3318_v11  ;;  %4839 = vrsqrt.f32 %v6909_v27  ;;  %4446 = vmatprep.subr.bf16.mxu0 %v3766_v34  ;;  %v7142_v28 = vpop.eup %4829  ;;  %v7600_v26 = vld [vmem:[#allocation37_spill] sm:$0xff]  ;;  %v7602_v62 = vld [vmem:[#allocation7_spill] sm:$0xff] }
 0x5a8   : > { %v3667_v13 = vmul.f32 %v5658_v51, %v3297_v55  ;;  %vm3391_vm14 = vcmp.eq.f32.partialorder %v6913_v60, inf  ;;  %v7598_v61 = vand.u32 2147483648, %v6869_v15  ;;  %v3684_v52 = vmul.f32 %v5658_v51, %v3416_v37  ;;  %v4832_v55 = vpop.eup %4831  ;;  %v3618_v3 = vpop.permute.xlu1 %3617 }
 0x5a9   : > { %v3702_v9 = vadd.f32 %v3670_v0, %v3638_v17  ;;  %v7599_v44 = vand.u32 2147483648, %v6901_v54  ;;  %vm3398_vm15 = vcmp.eq.f32.partialorder %v6923_v18, inf  ;;  %v3715_v41 = vadd.f32 %v3683_v57, %v3651_v36  ;;  %v4834_v0 = vpop.eup %4833 }
 0x5aa   : > { %v3290_v20 = vsel %vm3288_vm7, %v7598_v61, %v3287_v56  ;;  %v3392_v11 = vsel %vm3391_vm14, %v6913_v60, %v3390_v7  ;;  %v3394_v15 = vand.u32 2147483648, %v6913_v60  ;;  %v3612_v56 = vpop.permute.xlu0 %3611  ;;  %v3399_v2 = vsel %vm3398_vm15, %v6923_v18, %v3397_v8 }
 0x5ab   : > { %v3304_v30 = vsel %vm3302_vm8, %v7599_v44, %v3301_v53  ;;  %v3733_v17 = vadd.f32 %v7592_v12, %v3701_v38  ;;  %v3734_v34 = vadd.f32 %v7592_v12, %v3702_v9  ;;  %3774 = vxpose.xlu1.c.b16.end [8/8] (narrow) %v7600_v26, 64  ;;  %v3652_v54 = vadd.f32 %v3618_v3, %v6731_v16  ;;  %v7601_v53 = vld [vmem:[#allocation35_spill] sm:$0xff] }
 0x5ac   : > { %v3635_v47 = vadd.f32 %v3584_v58, %v7601_v53  ;;  %4841 = vrsqrt.f32 %v6917_v39  ;;  %v3668_v7 = vmul.f32 %v5658_v51, %v3304_v30  ;;  %vm3393_vm4 = vcmp.eq.f32.partialorder %v6913_v60, 0.0  ;;  %v3586_v16 = vpop.permute.xlu1 %3585  ;;  %v7605_v53 = vld [vmem:[#allocation25_spill] sm:$0xff] }
 0x5ad   : > { %v3401_v57 = vand.u32 2147483648, %v6923_v18  ;;  %v3758_v8 = vpack.c.bf16 %v3734_v34, %v3733_v17  ;;  %v3716_v36 = vadd.f32 %v3684_v52, %v3652_v54  ;;  %v3395_v37 = vsel %vm3393_vm4, %v3394_v15, %v3392_v11  ;;  %v4836_v44 = vpop.eup %4835  ;;  %v7603_v17 = vld [vmem:[#allocation19_spill] sm:$0xff] }
 0x5ae   : > { %vm3400_vm0 = vcmp.eq.f32.partialorder %v6923_v18, 0.0  ;;  %v3376_v38 = vmul.f32 %v4832_v55, %v6920_v42  ;;  %v3383_v6 = vmul.f32 %v4834_v0, %v6930_v23  ;;  %v3649_v58 = vadd.f32 %v3612_v56, %v7602_v62  ;;  %v3580_v9 = vpop.permute.xlu0 %3579 }
 0x5af   : > { %v3402_v61 = vsel %vm3400_vm0, %v3401_v57, %v3399_v2  ;;  %v3747_v30 = vadd.f32 %v7592_v12, %v3715_v41  ;;  %v3748_v60 = vadd.f32 %v7592_v12, %v3716_v36  ;;  %v3699_v3 = vadd.f32 %v3667_v13, %v3635_v47  ;;  %4447 = vmatpush3.bf16.msra.mxu0 %v3758_v8 }
 0x5b0   : > { %v3636_v52 = vadd.f32 %v3586_v16, %v7603_v17  ;;  %vm3274_vm1 = vcmp.eq.f32.partialorder %v6879_v22, 0.0  ;;  %v3681_v18 = vmul.f32 %v5658_v51, %v3395_v37  ;;  %v3666_v55 = vmul.f32 %v5658_v51, %v3290_v20  ;;  %v4838_v13 = vpop.eup %4837  ;;  %v3614_v34 = vpop.permute.xlu1 %3613  ;;  %v7607_v17 = vld [vmem:[#allocation18_spill] sm:$0xff] }
 0x5b1   : > { %v7604_v11 = vand.u32 2147483648, %v6877_v49  ;;  %v3273_v41 = vsel %vm3272_vm13, %v6879_v22, %v3271_v33  ;;  %vm3377_vm2 = vcmp.eq.f32.partialorder %v6920_v42, inf  ;;  %vm3384_vm3 = vcmp.eq.f32.partialorder %v6930_v23, inf }
 0x5b2   : > { %v3700_v56 = vadd.f32 %v3668_v7, %v3636_v52  ;;  %v3765_v2 = vpack.c.bf16 %v3748_v60, %v3747_v30  ;;  %v3713_v0 = vadd.f32 %v3681_v18, %v3649_v58  ;;  %v3682_v20 = vmul.f32 %v5658_v51, %v3402_v61  ;;  %v3608_v54 = vpop.permute.xlu0 %3607  ;;  %v7606_v7 = vld [vmem:[#allocation16_spill] sm:$0xff]  ;;  %v7608_v18 = vld [vmem:[#allocation26_spill] sm:$0xff] }
 0x5b3   : > { %v3269_v15 = vsel %vm3267_vm12, %v7604_v11, %v7099_v4  ;;  %v3378_v26 = vsel %vm3377_vm2, %v6920_v42, %v3376_v38  ;;  %v3385_v49 = vsel %vm3384_vm3, %v6930_v23, %v3383_v6  ;;  %v3731_v4 = vadd.f32 %v7592_v12, %v3699_v3 }
 0x5b4   : > { %v3732_v33 = vadd.f32 %v7592_v12, %v3700_v56  ;;  %v3650_v47 = vadd.f32 %v3614_v34, %v7605_v53  ;;  %v3633_v57 = vadd.f32 %v3580_v9, %v7606_v7  ;;  %4448 = vmatprep.subr.bf16.mxu0 %v3765_v2  ;;  %4843 = vrsqrt.f32 %v6907_v45  ;;  %v4840_v37 = vpop.eup %4839  ;;  %v3582_v61 = vpop.permute.xlu1 %3581 }
 0x5b5   : > { %vm3379_vm5 = vcmp.eq.f32.partialorder %v6920_v42, 0.0  ;;  %v3380_v8 = vand.u32 2147483648, %v6920_v42  ;;  %v3387_v36 = vand.u32 2147483648, %v6930_v23  ;;  %v3362_v38 = vmul.f32 %v4836_v44, %v6905_v14 }
 0x5b6   : > { %v3757_v6 = vpack.c.bf16 %v3732_v33, %v3731_v4  ;;  %v3714_v16 = vadd.f32 %v3682_v20, %v3650_v47  ;;  %vm3386_vm6 = vcmp.eq.f32.partialorder %v6930_v23, 0.0  ;;  %v3369_v62 = vmul.f32 %v4838_v13, %v6915_v31  ;;  %v3576_v60 = vpop.permute.xlu0 %3575  ;;  %v7611_v33 = vld [vmem:[#allocation10_spill] sm:$0xff] }
 0x5b7   : > { %v3745_v58 = vadd.f32 %v7592_v12, %v3713_v0  ;;  %v3381_v9 = vsel %vm3379_vm5, %v3380_v8, %v3378_v26  ;;  %v3388_v30 = vsel %vm3386_vm6, %v3387_v36, %v3385_v49  ;;  %v3697_v42 = vadd.f32 %v7058_v43, %v3633_v57 }
 0x5b8   : > { %v3746_v3 = vadd.f32 %v7592_v12, %v3714_v16  ;;  %v3634_v52 = vadd.f32 %v3582_v61, %v7607_v17  ;;  %v3647_v44 = vadd.f32 %v3608_v54, %v7608_v18  ;;  %4449 = vmatpush3.bf16.msra.mxu0 %v3757_v6  ;;  %vm3239_vm7 = vcmp.eq.f32.partialorder %v6847_v29, 0.0  ;;  %v3610_v34 = vpop.permute.xlu1 %3609 }
 0x5b9   : > { %v3663_v23 = vmul.f32 %v5658_v51, %v3269_v15  ;;  %v7609_v11 = vand.u32 2147483648, %v6879_v22  ;;  %vm3363_vm8 = vcmp.eq.f32.partialorder %v6905_v14, inf  ;;  %vm3365_vm9 = vcmp.eq.f32.partialorder %v6905_v14, 0.0  ;;  %v4842_v56 = vpop.eup %4841  ;;  %v7610_v15 = vld [vmem:[#allocation34_spill] sm:$0xff] }
 0x5ba   : > { %v3698_v43 = vadd.f32 %v3666_v55, %v3634_v52  ;;  %v3679_v2 = vmul.f32 %v5658_v51, %v3381_v9  ;;  %v3764_v0 = vpack.c.bf16 %v3746_v3, %v3745_v58  ;;  %vm3370_vm10 = vcmp.eq.f32.partialorder %v6915_v31, inf  ;;  %v3604_v22 = vpop.permute.xlu0 %3603  ;;  %v7612_v3 = vld [vmem:[#allocation33_spill] sm:$0xff] }
 0x5bb   : > { %v3276_v13 = vsel %vm3274_vm1, %v7609_v11, %v3273_v41  ;;  %v3680_v20 = vmul.f32 %v5658_v51, %v3388_v30  ;;  %v3631_v26 = vadd.f32 %v3576_v60, %v7610_v15  ;;  %v3364_v54 = vsel %vm3363_vm8, %v6905_v14, %v3362_v38 }
 0x5bc   : > { %v3371_v41 = vsel %vm3370_vm10, %v6915_v31, %v3369_v62  ;;  %v3729_v49 = vadd.f32 %v7592_v12, %v3697_v42  ;;  %v3730_v4 = vadd.f32 %v7592_v12, %v3698_v43  ;;  %v3711_v55 = vadd.f32 %v3679_v2, %v3647_v44  ;;  %4450 = vmatprep.subr.bf16.mxu0 %v3764_v0  ;;  %v3578_v62 = vpop.permute.xlu1 %3577 }
 0x5bd   : > { %v3648_v53 = vadd.f32 %v3610_v34, %v7611_v33  ;;  %vm3244_vm11 = vcmp.eq.f32.partialorder %v6859_v19, inf  ;;  %4845 = vrsqrt.f32 %v6911_v35  ;;  %v3664_v47 = vmul.f32 %v5658_v51, %v3276_v13 }
 0x5be   : > { %v3366_v7 = vand.u32 2147483648, %v6905_v14  ;;  %v3373_v57 = vand.u32 2147483648, %v6915_v31  ;;  %v3348_v8 = vmul.f32 %v4840_v37, %v6909_v27  ;;  %v3756_v36 = vpack.c.bf16 %v3730_v4, %v3729_v49  ;;  %v3572_v9 = vpop.permute.xlu0 %3571  ;;  %v7613_v37 = vld [vmem:[#allocation13_spill] sm:$0xff] }
 0x5bf   : > { %v3712_v38 = vadd.f32 %v3680_v20, %v3648_v53  ;;  %vm3372_vm12 = vcmp.eq.f32.partialorder %v6915_v31, 0.0  ;;  %v3355_v6 = vmul.f32 %v4842_v56, %v6917_v39  ;;  %v3695_v16 = vadd.f32 %v3663_v23, %v3631_v26  ;;  %v7615_v20 = vld [vmem:[#allocation15_spill] sm:$0xff]  ;;  %v7616_v26 = vld [vmem:[#allocation5_spill] sm:$0xff] }
 0x5c0   : > { %v3367_v58 = vsel %vm3365_vm9, %v3366_v7, %v3364_v54  ;;  %v3374_v61 = vsel %vm3372_vm12, %v3373_v57, %v3371_v41  ;;  %v3743_v30 = vadd.f32 %v7592_v12, %v3711_v55  ;;  %v3632_v42 = vadd.f32 %v3578_v62, %v7612_v3  ;;  %4451 = vmatpush3.bf16.msra.mxu0 %v3756_v36  ;;  %v3606_v56 = vpop.permute.xlu1 %3605 }
 0x5c1   : > { %v3744_v60 = vadd.f32 %v7592_v12, %v3712_v38  ;;  %v3645_v17 = vadd.f32 %v3604_v22, %v7613_v37  ;;  %vm3230_vm13 = vcmp.eq.f32.partialorder %v6825_v32, inf  ;;  %v3243_v31 = vmul.f32 %v7064_v50, %v6859_v19  ;;  %v4844_v44 = vpop.eup %4843 }
 0x5c2   : > { %vm3349_vm14 = vcmp.eq.f32.partialorder %v6909_v27, inf  ;;  %v3352_v14 = vand.u32 2147483648, %v6909_v27  ;;  %v7614_v52 = vand.u32 2147483648, %v6847_v29  ;;  %vm3246_vm15 = vcmp.eq.f32.partialorder %v6859_v19, 0.0  ;;  %v3600_v0 = vpop.permute.xlu0 %3599 }
 0x5c3   : > { %v3696_v23 = vadd.f32 %v3664_v47, %v3632_v42  ;;  %v3677_v11 = vmul.f32 %v5658_v51, %v3367_v58  ;;  %v3763_v13 = vpack.c.bf16 %v3744_v60, %v3743_v30  ;;  %vm3356_vm4 = vcmp.eq.f32.partialorder %v6917_v39, inf }
 0x5c4   : > { %v3241_v18 = vsel %vm3239_vm7, %v7614_v52, %v7035_v48  ;;  %v3727_v50 = vadd.f32 %v7592_v12, %v3695_v16  ;;  %v3678_v43 = vmul.f32 %v5658_v51, %v3374_v61  ;;  %v3350_v2 = vsel %vm3349_vm14, %v6909_v27, %v3348_v8  ;;  %v3574_v7 = vpop.permute.xlu1 %3573  ;;  %v7618_v16 = vld [vmem:[#allocation32_spill] sm:$0xff] }
 0x5c5   : > { %v3357_v29 = vsel %vm3356_vm4, %v6917_v39, %v3355_v6  ;;  %v3728_v48 = vadd.f32 %v7592_v12, %v3696_v23  ;;  %v3709_v34 = vadd.f32 %v3677_v11, %v3645_v17  ;;  %v3646_v15 = vadd.f32 %v3606_v56, %v7615_v20  ;;  %4452 = vmatprep.subr.bf16.mxu0 %v3763_v13 }
 0x5c6   : > { %v3629_v54 = vadd.f32 %v3572_v9, %v7616_v26  ;;  %v3662_v22 = vmul.f32 %v5658_v51, %v7030_v5  ;;  %vm3351_vm0 = vcmp.eq.f32.partialorder %v6909_v27, 0.0  ;;  %v3359_v41 = vand.u32 2147483648, %v6917_v39  ;;  %v7617_v5 = vld [vmem:[#allocation31_spill] sm:$0xff]  ;;  %v3568_v8 = vpop.permute.xlu0 %3567 }
 0x5c7   : > { %v3245_v49 = vsel %vm3244_vm11, %v6859_v19, %v3243_v31  ;;  %v3755_v4 = vpack.c.bf16 %v3728_v48, %v3727_v50  ;;  %v3710_v55 = vadd.f32 %v3678_v43, %v3646_v15  ;;  %v3353_v33 = vsel %vm3351_vm0, %v3352_v14, %v3350_v2 }
 0x5c8   : > { %vm3358_vm1 = vcmp.eq.f32.partialorder %v6917_v39, 0.0  ;;  %v3334_v53 = vmul.f32 %v7119_v40, %v6893_v59  ;;  %v3341_v47 = vmul.f32 %v4844_v44, %v6907_v45  ;;  %v3643_v57 = vadd.f32 %v3600_v0, %v7617_v5  ;;  %v3602_v42 = vpop.permute.xlu1 %3601 }
 0x5c9   : > { %v3360_v27 = vsel %vm3358_vm1, %v3359_v41, %v3357_v29  ;;  %v3741_v36 = vadd.f32 %v7592_v12, %v3709_v34  ;;  %v3742_v38 = vadd.f32 %v7592_v12, %v3710_v55  ;;  %v3693_v6 = vadd.f32 %v7021_v24, %v3629_v54  ;;  %4453 = vmatpush3.bf16.msra.mxu0 %v3755_v4  ;;  %v7622_v54 = vld [vmem:[#allocation23_spill] sm:$0xff] }
 0x5ca   : > { %v3630_v62 = vadd.f32 %v3574_v7, %v7618_v16  ;;  %vm3232_vm2 = vcmp.eq.f32.partialorder %v6825_v32, 0.0  ;;  %v3675_v39 = vmul.f32 %v5658_v51, %v3353_v33  ;;  %v3659_v40 = vmul.f32 %v5658_v51, %v3241_v18  ;;  %v4846_v61 = vpop.eup %4845  ;;  %v3596_v31 = vpop.permute.xlu0 %3595  ;;  %v7620_v18 = vld [vmem:[#allocation24_spill] sm:$0xff] }
 0x5cb   : > { %vm3335_vm3 = vcmp.eq.f32.partialorder %v6893_v59, inf  ;;  %v3231_v58 = vsel %vm3230_vm13, %v6825_v32, %v6987_v25  ;;  %v3762_v30 = vpack.c.bf16 %v3742_v38, %v3741_v36  ;;  %v7619_v24 = vand.u32 2147483648, %v6859_v19  ;;  %v7621_v19 = vld [vmem:[#allocation21_spill] sm:$0xff] }
 0x5cc   : > { %v3694_v9 = vadd.f32 %v3662_v22, %v3630_v62  ;;  %vm3342_vm5 = vcmp.eq.f32.partialorder %v6907_v45, inf  ;;  %v3707_v3 = vadd.f32 %v3675_v39, %v3643_v57  ;;  %v3676_v37 = vmul.f32 %v5658_v51, %v3360_v27  ;;  %v3570_v48 = vpop.permute.xlu1 %3569 }
 0x5cd   : > { %v3248_v60 = vsel %vm3246_vm15, %v7619_v24, %v3245_v49  ;;  %v3336_v17 = vsel %vm3335_vm3, %v6893_v59, %v3334_v53  ;;  %v3343_v14 = vsel %vm3342_vm5, %v6907_v45, %v3341_v47  ;;  %v3725_v25 = vadd.f32 %v7592_v12, %v3693_v6  ;;  %4454 = vmatprep.subr.bf16.mxu0 %v3762_v30  ;;  %v7626_v6 = vld [vmem:[#allocation29_spill] sm:$0xff] }
 0x5ce   : > { %v3726_v52 = vadd.f32 %v7592_v12, %v3694_v9  ;;  %v3644_v44 = vadd.f32 %v3602_v42, %v7620_v18  ;;  %v3627_v23 = vadd.f32 %v3568_v8, %v7621_v19  ;;  %vm3209_vm6 = vcmp.eq.f32.partialorder %v6823_v21, inf  ;;  %v3564_v15 = vpop.permute.xlu0 %3563 }
 0x5cf   : > { %v3660_v11 = vmul.f32 %v5658_v51, %v3248_v60  ;;  %vm3337_vm7 = vcmp.eq.f32.partialorder %v6893_v59, 0.0  ;;  %v3338_v13 = vand.u32 2147483648, %v6893_v59  ;;  %v3345_v50 = vand.u32 2147483648, %v6907_v45 }
 0x5d0   : > { %v3320_v56 = vmul.f32 %v7142_v28, %v6899_v63  ;;  %v3754_v43 = vpack.c.bf16 %v3726_v52, %v3725_v25  ;;  %v3708_v2 = vadd.f32 %v3676_v37, %v3644_v44  ;;  %vm3344_vm8 = vcmp.eq.f32.partialorder %v6907_v45, 0.0  ;;  %v7623_v28 = vld [vmem:[#allocation30_spill] sm:$0xff]  ;;  %v3598_v7 = vpop.permute.xlu1 %3597  ;;  %v7629_v52 = vld [vmem:[#allocation12_spill] sm:$0xff] }
 0x5d1   : > { %vm3216_vm9 = vcmp.eq.f32.partialorder %v6837_v1, inf  ;;  %v3327_v0 = vmul.f32 %v4846_v61, %v6911_v35  ;;  %v3739_v29 = vadd.f32 %v7592_v12, %v3707_v3  ;;  %v3339_v34 = vsel %vm3337_vm7, %v3338_v13, %v3336_v17 }
 0x5d2   : > { %v3346_v20 = vsel %vm3344_vm8, %v3345_v50, %v3343_v14  ;;  %v3740_v59 = vadd.f32 %v7592_v12, %v3708_v2  ;;  %v3691_v26 = vadd.f32 %v3659_v40, %v3627_v23  ;;  %v3628_v22 = vadd.f32 %v3570_v48, %v7622_v54  ;;  %4455 = vmatpush3.bf16.msra.mxu0 %v3754_v43  ;;  %v3592_v27 = vpop.permute.xlu0 %3591  ;;  %v7628_v14 = vld [vmem:[#allocation4_spill] sm:$0xff] }
 0x5d3   : > { %v3641_v41 = vadd.f32 %v3596_v31, %v7623_v28  ;;  %v3215_v45 = vmul.f32 %v7047_v10, %v6837_v1  ;;  %v3657_v49 = vmul.f32 %v5658_v51, %v6994_v46  ;;  %v7624_v4 = vand.u32 2147483648, %v6825_v32  ;;  %v7625_v10 = vld [vmem:[#allocation20_spill] sm:$0xff] }
 0x5d4   : > { %vm3321_vm10 = vcmp.eq.f32.partialorder %v6899_v63, inf  ;;  %v3692_v33 = vadd.f32 %v3660_v11, %v3628_v22  ;;  %v3673_v53 = vmul.f32 %v5658_v51, %v3339_v34  ;;  %v3761_v47 = vpack.c.bf16 %v3740_v59, %v3739_v29  ;;  %v3566_v60 = vpop.permute.xlu1 %3565  ;;  %v7631_v34 = vld [vmem:[#allocation36_spill] sm:$0xff] }
 0x5d5   : > { %v3234_v55 = vsel %vm3232_vm2, %v7624_v4, %v3231_v58  ;;  %vm3328_vm11 = vcmp.eq.f32.partialorder %v6911_v35, inf  ;;  %v3674_v5 = vmul.f32 %v5658_v51, %v3346_v20  ;;  %v3625_v57 = vadd.f32 %v3564_v15, %v7625_v10  ;;  %v7627_v58 = vld [vmem:[#allocation8_spill] sm:$0xff] }
 0x5d6   : > { %v3322_v46 = vsel %vm3321_vm10, %v6899_v63, %v3320_v56  ;;  %v3329_v8 = vsel %vm3328_vm11, %v6911_v35, %v3327_v0  ;;  %v3723_v32 = vadd.f32 %v7592_v12, %v3691_v26  ;;  %v3724_v36 = vadd.f32 %v7592_v12, %v3692_v33  ;;  %4456 = vmatprep.subr.bf16.mxu0 %v3761_v47 }
 0x5d7   : > { %v3705_v38 = vadd.f32 %v3673_v53, %v3641_v41  ;;  %v3642_v16 = vadd.f32 %v3598_v7, %v7626_v6  ;;  %v3658_v62 = vmul.f32 %v5658_v51, %v3234_v55  ;;  %v3324_v39 = vand.u32 2147483648, %v6899_v63  ;;  %v4852_v6 = vld [vmem:[%s7390_s2 + $0x10] sm:$0xff]  }
 0x5d8   : > { %v3331_v40 = vand.u32 2147483648, %v6911_v35  ;;  %v3210_v61 = vsel %vm3209_vm6, %v6823_v21, %v7627_v58  ;;  %v3753_v9 = vpack.c.bf16 %v3724_v36, %v3723_v32  ;;  %vm3323_vm12 = vcmp.eq.f32.partialorder %v6899_v63, 0.0  ;;  %v3594_v50 = vpop.permute.xlu1 %3593 }
 0x5d9   : > { %v3706_v30 = vadd.f32 %v3674_v5, %v3642_v16  ;;  %vm3330_vm13 = vcmp.eq.f32.partialorder %v6911_v35, 0.0  ;;  %v3689_v24 = vadd.f32 %v3657_v49, %v3625_v57  ;;  %v3325_v3 = vsel %vm3323_vm12, %v3324_v39, %v3322_v46  ;;  %v3560_v35 = vpop.permute.xlu0 %3559  ;;  %v4848_v57 = vld [vmem:[%s7390_s2 + $0x30] sm:$0xff]   ;;  %v4854_v39 = vld [vmem:[%s7390_s2] sm:$0xff]  }
 0x5da   : > { %v3332_v42 = vsel %vm3330_vm13, %v3331_v40, %v3329_v8  ;;  %v3217_v37 = vsel %vm3216_vm9, %v6837_v1, %v3215_v45  ;;  %v3737_v17 = vadd.f32 %v7592_v12, %v3705_v38  ;;  %v3626_v25 = vadd.f32 %v3566_v60, %v7628_v14  ;;  %4457 = vmatpush3.bf16.msra.mxu0 %v3753_v9  ;;  %v7632_v45 = vld [vmem:[#allocation22_spill] sm:$0xff]  ;;  %v4851_v38 = vld [vmem:[%s7390_s2 + $0x18] sm:$0xff]  }
 0x5db   : > { %v3738_v31 = vadd.f32 %v7592_v12, %v3706_v30  ;;  %v3639_v18 = vadd.f32 %v3592_v27, %v7629_v52  ;;  %vm3211_vm14 = vcmp.eq.f32.partialorder %v6823_v21, 0.0  ;;  %v3212_v63 = vand.u32 2147483648, %v6823_v21  ;;  %v7630_v21 = vld [vmem:[#allocation14_spill] sm:$0xff]  ;;  %v4849_v27 = vld [vmem:[%s7390_s2 + $0x28] sm:$0xff]  }
 0x5dc   : > { %v3219_v44 = vand.u32 2147483648, %v6837_v1  ;;  %v3690_v19 = vadd.f32 %v3658_v62, %v3626_v25  ;;  %v3671_v23 = vmul.f32 %v5658_v51, %v3325_v3  ;;  %vm3218_vm15 = vcmp.eq.f32.partialorder %v6837_v1, 0.0  ;;  %v3562_v1 = vpop.permute.xlu1 %3561  ;;  %v4850_v8 = vld [vmem:[%s7390_s2 + $0x20] sm:$0xff]   ;;  %v4853_v62 = vld [vmem:[%s7390_s2 + $0x8] sm:$0xff]  }
 0x5dd   : > { %v3760_v11 = vpack.c.bf16 %v3738_v31, %v3737_v17  ;;  %v3721_v13 = vadd.f32 %v7592_v12, %v3689_v24  ;;  %v3672_v56 = vmul.f32 %v5658_v51, %v3332_v42  ;;  %v3213_v43 = vsel %vm3211_vm14, %v3212_v63, %v3210_v61 }
 0x5de   : > { %v3220_v2 = vsel %vm3218_vm15, %v3219_v44, %v3217_v37  ;;  %v3722_v0 = vadd.f32 %v7592_v12, %v3690_v19  ;;  %v3703_v29 = vadd.f32 %v3671_v23, %v3639_v18  ;;  %v3640_v48 = vadd.f32 %v3594_v50, %v7630_v21 }
 0x5df   : > { %4458 = vmatprep.subr.bf16.mxu0 %v3760_v11  ;;  %v3623_v20 = vadd.f32 %v3560_v35, %v7631_v34  ;;  %v3655_v26 = vmul.f32 %v5658_v51, %v3213_v43  ;;  %v3656_v54 = vmul.f32 %v5658_v51, %v3220_v2  ;;  %v3624_v49 = vadd.f32 %v3562_v1, %v7632_v45  ;;  %v4847_v51 = vld [vmem:[%s7390_s2 + $0x38] sm:$0xff]  }
 0x5e0   : > { %v3752_v15 = vpack.c.bf16 %v3722_v0, %v3721_v13  ;;  %v3704_v59 = vadd.f32 %v3672_v56, %v3640_v48  ;;  %v3735_v22 = vadd.f32 %v7592_v12, %v3703_v29  ;;  %v3791_v47 = vpop.trf.xlu0 }
 0x5e1   : > { %v3687_v41 = vadd.f32 %v3655_v26, %v3623_v20  ;;  %v3688_v4 = vadd.f32 %v3656_v54, %v3624_v49  ;;  %3831 = vmatprep.mubr.bf16.mxu0 %v3791_v47 }
 0x5e2   : > { %v3736_v28 = vadd.f32 %v7592_v12, %v3704_v59  ;;  %4459 = vmatpush3.bf16.msra.mxu0 %v3752_v15 }
 0x5e3   : > { %v3719_v33 = vadd.f32 %v7592_v12, %v3687_v41  ;;  %v3720_v53 = vadd.f32 %v7592_v12, %v3688_v4 }
 0x5e4   : > { %v3759_v55 = vpack.c.bf16 %v3736_v28, %v3735_v22  ;;  %v3792_v5 = vpop.trf.xlu0 }
 0x5e5   : > { %v3751_v7 = vpack.c.bf16 %v3720_v53, %v3719_v33 }
 0x5e6   : > { %4460 = vmatprep.subr.bf16.mxu0 %v3759_v55 }
 0x5e7   : > { %4461 = vmatpush3.bf16.msra.mxu0 %v3751_v7 }
 0x5e8   : > { %4666 = vmatprep.subr.bf16.mxu0 %v4847_v51  ;;  %v3793_v46 = vpop.trf.xlu0 }
 0x5ec   : > { %v3794_v36 = vpop.trf.xlu0 }
 0x5f1   : > { %v3775_v10 = vpop.trf.xlu1 }
 0x5f2   : > { %3832 = vmatmul.mubr.bf16.vlgmr.msra.gmra.mxu0 %v3775_v10 }
 0x5f3   : > { %3839 = vmatprep.mubr.bf16.mxu0 %v3792_v5  ;;  %4667 = vmatpush3.bf16.msra.mxu0 %v4847_v51 }
 0x5f4   : > { %4668 = vmatprep.subr.bf16.mxu0 %v4848_v57 }
 0x5f5   : > { %v3776_v12 = vpop.trf.xlu1 }
 0x5f7   : > { %4669 = vmatpush3.bf16.msra.mxu0 %v4848_v57 }
 0x5f8   : > { %4670 = vmatprep.subr.bf16.mxu0 %v4849_v27 }
 0x5f9   : > { %v3777_v32 = vpop.trf.xlu1 }
 0x5fa   : > { %3840 = vmatmul.mubr.bf16.gmra.mxu0 %v3776_v12 }
 0x5fb   : > { %3847 = vmatprep.mubr.bf16.mxu0 %v3793_v46  ;;  %4671 = vmatpush3.bf16.msra.mxu0 %v4849_v27 }
 0x5fc   : > { %4672 = vmatprep.subr.bf16.mxu0 %v4850_v8 }
 0x5fd   : > { %v3778_v16 = vpop.trf.xlu1 }
 0x5ff   : > { %4673 = vmatpush3.bf16.msra.mxu0 %v4850_v8 }
 0x600   : > { %4674 = vmatprep.subr.bf16.mxu0 %v4851_v38 }
 0x602   : > { %3848 = vmatmul.mubr.bf16.gmra.mxu0 %v3777_v32 }
 0x603   : > { %3855 = vmatprep.mubr.bf16.mxu0 %v3794_v36  ;;  %4675 = vmatpush3.bf16.msra.mxu0 %v4851_v38 }
 0x604   : > { %4676 = vmatprep.subr.bf16.mxu0 %v4852_v6 }
 0x607   : > { %4677 = vmatpush3.bf16.msra.mxu0 %v4852_v6 }
 0x608   : > { %4678 = vmatprep.subr.bf16.mxu0 %v4853_v62 }
 0x60a   : > { %3856 = vmatmul.mubr.bf16.gmra.mxu0 %v3778_v16 }
 0x60b   : > { %4679 = vmatpush3.bf16.msra.mxu0 %v4853_v62 }
 0x60c   : > { %4680 = vmatprep.subr.bf16.mxu0 %v4854_v39 }
 0x60f   : > { %4681 = vmatpush3.bf16.msra.mxu0 %v4854_v39 }
 0x6b2   : > { %v4462_v40 = vpop.f32.mrf.mxu0 }
 0x6b4   : > { %v4463_v58 = vpop.f32.mrf.mxu0 }
 0x6b5   : > { %v4464_v30 = vadd.f32 %v4463_v58, %v4462_v40 }
 0x6b6   : > { %v4465_v61 = vpop.f32.mrf.mxu0 }
 0x6b8   : > { %v4466_v9 = vpop.f32.mrf.mxu0 }
 0x6b9   : > { %v4467_v24 = vadd.f32 %v4466_v9, %v4465_v61 }
 0x6ba   : > { %v4468_v60 = vpop.f32.mrf.mxu0 }
 0x6bb   : > { %v3864_v3 = vpack.c.bf16 %v4467_v24, %v4464_v30 }
 0x6bc   : > { %v4469_v42 = vpop.f32.mrf.mxu0 }
 0x6bd   : > { %4682 = vmatprep.mubr.bf16.mxu0 %v3864_v3  ;;  %v4470_v31 = vadd.f32 %v4469_v42, %v4468_v60 }
 0x6be   : > { %v4471_v37 = vpop.f32.mrf.mxu0 }
 0x6c0   : > { %v4472_v17 = vpop.f32.mrf.mxu0 }
 0x6c1   : > { %v4473_v14 = vadd.f32 %v4472_v17, %v4471_v37 }
 0x6c2   : > { %v4474_v25 = vpop.f32.mrf.mxu0 }
 0x6c3   : > { %v3865_v52 = vpack.c.bf16 %v4473_v14, %v4470_v31 }
 0x6c4   : > { %v4475_v18 = vpop.f32.mrf.mxu0 }
 0x6c5   : > { %4683 = vmatmul.mubr.bf16.vlgmr.msra.gmra.mxu0 %v3865_v52  ;;  %v4476_v44 = vadd.f32 %v4475_v18, %v4474_v25 }
 0x6c6   : > { %v4477_v63 = vpop.f32.mrf.mxu0 }
 0x6c8   : > { %v4478_v35 = vpop.f32.mrf.mxu0 }
 0x6c9   : > { %v4479_v19 = vadd.f32 %v4478_v35, %v4477_v63 }
 0x6ca   : > { %v4480_v23 = vpop.f32.mrf.mxu0 }
 0x6cb   : > { %v3866_v11 = vpack.c.bf16 %v4479_v19, %v4476_v44 }
 0x6cc   : > { %v4481_v13 = vpop.f32.mrf.mxu0 }
 0x6cd   : > { %4686 = vmatprep.mubr.bf16.mxu0 %v3866_v11  ;;  %v4482_v43 = vadd.f32 %v4481_v13, %v4480_v23 }
 0x6ce   : > { %v4483_v50 = vpop.f32.mrf.mxu0 }
 0x6d0   : > { %v4484_v56 = vpop.f32.mrf.mxu0 }
 0x6d1   : > { %v4485_v2 = vadd.f32 %v4484_v56, %v4483_v50 }
 0x6d3   : > { %v3867_v0 = vpack.c.bf16 %v4485_v2, %v4482_v43 }
 0x6d5   : > { %4687 = vmatmul.mubr.bf16.gmra.mxu0 %v3867_v0 }
 0x785   : > { %v4684_v29 = vpop.f32.mrf.mxu0 }
 0x786   : > { %4311 = vst [vmem:[%s6473_s18 + $0x50] sm:$0xff] %v4684_v29 }
 0x787   : > { %v3902_v21 = vpop.f32.mrf.mxu0 }
 0x788   : > { %4309 = vst [vmem:[%s6473_s18 + $0x40] sm:$0xff] %v3902_v21 }
 0x789   : > { %v4685_v48 = vpop.f32.mrf.mxu0 }
 0x78a   : > { %4312 = vst [vmem:[%s6473_s18 + $0x58] sm:$0xff] %v4685_v48 }
 0x78b   : > { %v3905_v34 = vpop.f32.mrf.mxu0 }
 0x78c   : > { %4310 = vst [vmem:[%s6473_s18 + $0x48] sm:$0xff] %v3905_v34 }
 0x795   : > { %v4688_v20 = vpop.f32.mrf.mxu0 }
 0x796   : > { %4315 = vst [vmem:[%s6473_s18 + $0x70] sm:$0xff] %v4688_v20 }
 0x797   : > { %v3918_v15 = vpop.f32.mrf.mxu0 }
 0x798   : > { %4313 = vst [vmem:[%s6473_s18 + $0x60] sm:$0xff] %v3918_v15 }
 0x799   : > { %v4689_v59 = vpop.f32.mrf.mxu0 }
 0x79a   : > { %4316 = vst [vmem:[%s6473_s18 + $0x78] sm:$0xff] %v4689_v59 }
 0x79b   : > { %v3921_v26 = vpop.f32.mrf.mxu0 }
 0x79c   : > { %4314 = vst [vmem:[%s6473_s18 + $0x68] sm:$0xff] %v3921_v26 }
 0x79d PF: > { %s13_s12 = sadd.s32 1, %s4861_s12  }
 0x79e   : > { %p10_p4 = scmp.ge.s32.totalorder %s13_s12, 4  }
 0x7a0   :  { %12 = sbr.rel (!%p10_p4) target bundleno = 1 (0x1), region = 68 }

</bundles_post_ra>
